<compile_context>
chip_gen: v5e
topology: v5e:2x2
jax: 0.10.0
libtpu: 0.0.40
codegen_flags: <defaults>
</compile_context>

<pallas_src>
import jax
import jax.numpy as jnp
from jax.experimental import pallas as pl
from jax.experimental.pallas import tpu as pltpu

# Problem sizes (match the module's input torch.Size([1, 160, 12, 12]))
N, CIN, H, W = 1, 160, 12, 12
COUT = 192
KH = 7
PAD = 3
EPS = 1e-3

WP = 16                       # W padded 12 -> 16 (sublane alignment of tap offsets)
HP = H + 2 * PAD              # padded height = 18
ROWS_IN_P = HP * WP           # 288 rows in the padded input slab
ROWS_OUT_P = H * WP           # 192 rows in the (W-padded) output slab
ROWS_REAL = H * W             # 144 real output positions (BN divisor)

COUT_P = 256                  # Cout padded 192 -> 256 (lane-dense output)
HALF = 128                    # register-accumulated Cout half inside the kernel


def relu_conv_bn_kernel(xp_ref, w_ref, g_ref, b_ref, out_ref):
    # xp_ref:  [ROWS_IN_P, CIN]      bf16, ReLU'd + H/W-padded NHWC slab
    # w_ref:   [KH, CIN, COUT_P]     bf16 conv weights (Cout padded to 256)
    # g_ref:   [1, COUT_P]           f32 BN scale (gamma; padding = 1.0)
    # b_ref:   [1, COUT_P]           f32 BN shift (beta;  padding = 0.0)
    # out_ref: [ROWS_OUT_P, COUT_P]  f32 output slab
    #
    # Two 128-wide Cout halves, each with a register-carried f32 accumulator
    # (192x128 f32 = 24 vregs) -> no VMEM accumulator round trips.
    for j in range(COUT_P // HALF):
        c0 = j * HALF
        acc = None
        for kh in range(KH):
            # Tap kh reads rows [kh*16, kh*16 + 192): sublane-aligned window.
            xs = xp_ref[kh * WP: kh * WP + ROWS_OUT_P, :]
            wk = w_ref[kh, :, c0:c0 + HALF]
            p = jnp.dot(xs, wk, preferred_element_type=jnp.float32)
            acc = p if acc is None else acc + p

        # BatchNorm (training-mode) over the 144 real positions per channel.
        # Padded-W rows of acc are exactly zero (zero inputs, H-only taps), so
        # they contribute nothing to the sums; divide by 144 regardless.
        s1 = jnp.sum(acc, axis=0, keepdims=True)
        s2 = jnp.sum(acc * acc, axis=0, keepdims=True)
        mean = s1 * (1.0 / ROWS_REAL)
        var = s2 * (1.0 / ROWS_REAL) - mean * mean          # biased variance
        scale = jax.lax.rsqrt(var + EPS) * g_ref[:, c0:c0 + HALF]
        shift = b_ref[:, c0:c0 + HALF] - mean * scale
        out_ref[:, c0:c0 + HALF] = acc * scale + shift       # fused scale/shift


@jax.jit
def relu_conv_bn(x_nchw, w_oihw, gamma, beta):
    """x_nchw: [1,160,12,12], w_oihw: [192,160,7,1] -> [1,192,12,12] float32."""
    # NCHW -> NHWC, ReLU (fuses into prologue; pad is zero so ReLU∘pad==pad∘ReLU),
    # pad H by 3 each side, pad W 12->16, cast bf16, flatten.
    x_nhwc = jnp.transpose(x_nchw, (0, 2, 3, 1))                      # [1,H,W,Cin]
    x_relu = jnp.maximum(x_nhwc, 0.0)
    x_pad = jnp.pad(x_relu, ((0, 0), (PAD, PAD), (0, WP - W), (0, 0)))
    xp = x_pad.astype(jnp.bfloat16).reshape(ROWS_IN_P, CIN)           # [288,160]

    # [Cout,Cin,7,1] -> [7,Cin,Cout_padded] bf16.  Padded Cout channels get
    # zero weights (=> zero conv output) and are sliced off below.  Note gamma
    # padding with 1.0 (not 0) keeps the padded channels' BN math benign.
    w_k = jnp.transpose(w_oihw[:, :, :, 0], (2, 1, 0)).astype(jnp.bfloat16)
    w_k = jnp.pad(w_k, ((0, 0), (0, 0), (0, COUT_P - COUT)))          # [7,160,256]
    g = jnp.pad(gamma.astype(jnp.float32), (0, COUT_P - COUT),
                constant_values=1.0).reshape(1, COUT_P)
    b = jnp.pad(beta.astype(jnp.float32),
                (0, COUT_P - COUT)).reshape(1, COUT_P)

    out = pl.pallas_call(
        relu_conv_bn_kernel,
        out_shape=jax.ShapeDtypeStruct((ROWS_OUT_P, COUT_P), jnp.float32),
        grid=(1,),                                                    # single step
        in_specs=[
            pl.BlockSpec((ROWS_IN_P, CIN), lambda i: (0, 0)),
            pl.BlockSpec((KH, CIN, COUT_P), lambda i: (0, 0, 0)),
            pl.BlockSpec((1, COUT_P), lambda i: (0, 0)),
            pl.BlockSpec((1, COUT_P), lambda i: (0, 0)),
        ],
        out_specs=pl.BlockSpec((ROWS_OUT_P, COUT_P), lambda i: (0, 0)),
        compiler_params=pltpu.CompilerParams(
            dimension_semantics=("arbitrary",)),
    )(xp, w_k, g, b)

    # Strip the W and Cout padding, back to NCHW.
    out = out.reshape(N, H, WP, COUT_P)[:, :, :W, :COUT]
    return jnp.transpose(out, (0, 3, 1, 2))                           # [1,192,12,12]


def reference(x_nchw, w_oihw, gamma, beta):
    """Pure-JAX f32 reference for validation."""
    x = jnp.maximum(x_nchw, 0.0)
    y = jax.lax.conv_general_dilated(
        x, w_oihw, window_strides=(1, 1), padding=((PAD, PAD), (0, 0)),
        dimension_numbers=("NCHW", "OIHW", "NCHW"))
    mean = jnp.mean(y, axis=(0, 2, 3), keepdims=True)
    var = jnp.mean((y - mean) ** 2, axis=(0, 2, 3), keepdims=True)
    g = gamma.reshape(1, COUT, 1, 1)
    b = beta.reshape(1, COUT, 1, 1)
    return (y - mean) * jax.lax.rsqrt(var + EPS) * g + b


if __name__ == "__main__":
    key = jax.random.PRNGKey(0)
    kx, kw = jax.random.split(key)

    # Deterministic synthetic parameters (shapes from the module __init__).
    x = jax.random.normal(kx, (N, CIN, H, W), dtype=jnp.float32)
    fan_in = CIN * KH * 1
    w = jax.random.normal(kw, (COUT, CIN, KH, 1), dtype=jnp.float32) * (
        (2.0 / fan_in) ** 0.5)
    gamma = jnp.ones((COUT,), dtype=jnp.float32)   # BN affine weight init
    beta = jnp.zeros((COUT,), dtype=jnp.float32)   # BN affine bias init

    out = jax.block_until_ready(relu_conv_bn(x, w, gamma, beta))
    ref = jax.block_until_ready(reference(x, w, gamma, beta))

    assert out.shape == (N, COUT, H, W), out.shape
    assert jnp.allclose(out, ref, atol=3e-2, rtol=3e-2), (
        float(jnp.max(jnp.abs(out - ref))))

    # TODO(synk): BatchNorm running_mean/running_var buffer updates (momentum
    # side-effects) are not implemented; they do not affect the forward output.
    print("KERNEL_OK")
</pallas_src>

<mosaic_0001>
module attributes {stable_mosaic.version = 11 : i64} {
  func.func @relu_conv_bn_kernel(%arg0: i32, %arg1: memref<288x160xbf16, #tpu.memory_space<vmem>>, %arg2: memref<7x160x256xbf16, #tpu.memory_space<vmem>>, %arg3: memref<1x256xf32, #tpu.memory_space<vmem>>, %arg4: memref<1x256xf32, #tpu.memory_space<vmem>>, %arg5: memref<192x256xf32, #tpu.memory_space<vmem>>) attributes {dimension_semantics = [#tpu.dimension_semantics<arbitrary>], iteration_bounds = array<i64: 1>, scalar_prefetch = 0 : i64, scratch_operands = 0 : i64, tpu.core_type = #tpu.core_type<tc>, window_params = [{pipeline_mode = #tpu.pipeline_mode<synchronous>, transform_indices = @transform_0, window_bounds = array<i64: 288, 160>}, {pipeline_mode = #tpu.pipeline_mode<synchronous>, transform_indices = @transform_1, window_bounds = array<i64: 7, 160, 256>}, {pipeline_mode = #tpu.pipeline_mode<synchronous>, transform_indices = @transform_2, window_bounds = array<i64: 1, 256>}, {pipeline_mode = #tpu.pipeline_mode<synchronous>, transform_indices = @transform_3, window_bounds = array<i64: 1, 256>}, {pipeline_mode = #tpu.pipeline_mode<synchronous>, transform_indices = @transform_4, window_bounds = array<i64: 192, 256>}]} {
    %c0 = arith.constant 0 : index
    %c0_0 = arith.constant 0 : index
    %0 = vector.load %arg1[%c0, %c0_0] : memref<288x160xbf16, #tpu.memory_space<vmem>>, vector<192x160xbf16>
    %c0_1 = arith.constant 0 : index
    %c0_2 = arith.constant 0 : index
    %c0_3 = arith.constant 0 : index
    %1 = vector.load %arg2[%c0_1, %c0_2, %c0_3] : memref<7x160x256xbf16, #tpu.memory_space<vmem>>, vector<1x160x128xbf16>
    %2 = vector.shape_cast %1 : vector<1x160x128xbf16> to vector<160x128xbf16>
    %cst = arith.constant dense<0.000000e+00> : vector<192x128xf32>
    %3 = tpu.matmul %0, %2, %cst {dimension_numbers = #tpu.dot_dimension_numbers<[1], [0], [0], [1], [0, 0, 1, 1], [], []>} : vector<192x160xbf16>, vector<160x128xbf16>, vector<192x128xf32> -> vector<192x128xf32>
    %c16 = arith.constant 16 : index
    %c0_4 = arith.constant 0 : index
    %4 = vector.load %arg1[%c16, %c0_4] : memref<288x160xbf16, #tpu.memory_space<vmem>>, vector<192x160xbf16>
    %c1 = arith.constant 1 : index
    %c0_5 = arith.constant 0 : index
    %c0_6 = arith.constant 0 : index
    %5 = vector.load %arg2[%c1, %c0_5, %c0_6] : memref<7x160x256xbf16, #tpu.memory_space<vmem>>, vector<1x160x128xbf16>
    %6 = vector.shape_cast %5 : vector<1x160x128xbf16> to vector<160x128xbf16>
    %cst_7 = arith.constant dense<0.000000e+00> : vector<192x128xf32>
    %7 = tpu.matmul %4, %6, %cst_7 {dimension_numbers = #tpu.dot_dimension_numbers<[1], [0], [0], [1], [0, 0, 1, 1], [], []>} : vector<192x160xbf16>, vector<160x128xbf16>, vector<192x128xf32> -> vector<192x128xf32>
    %8 = arith.addf %3, %7 : vector<192x128xf32>
    %c32 = arith.constant 32 : index
    %c0_8 = arith.constant 0 : index
    %9 = vector.load %arg1[%c32, %c0_8] : memref<288x160xbf16, #tpu.memory_space<vmem>>, vector<192x160xbf16>
    %c2 = arith.constant 2 : index
    %c0_9 = arith.constant 0 : index
    %c0_10 = arith.constant 0 : index
    %10 = vector.load %arg2[%c2, %c0_9, %c0_10] : memref<7x160x256xbf16, #tpu.memory_space<vmem>>, vector<1x160x128xbf16>
    %11 = vector.shape_cast %10 : vector<1x160x128xbf16> to vector<160x128xbf16>
    %cst_11 = arith.constant dense<0.000000e+00> : vector<192x128xf32>
    %12 = tpu.matmul %9, %11, %cst_11 {dimension_numbers = #tpu.dot_dimension_numbers<[1], [0], [0], [1], [0, 0, 1, 1], [], []>} : vector<192x160xbf16>, vector<160x128xbf16>, vector<192x128xf32> -> vector<192x128xf32>
    %13 = arith.addf %8, %12 : vector<192x128xf32>
    %c48 = arith.constant 48 : index
    %c0_12 = arith.constant 0 : index
    %14 = vector.load %arg1[%c48, %c0_12] : memref<288x160xbf16, #tpu.memory_space<vmem>>, vector<192x160xbf16>
    %c3 = arith.constant 3 : index
    %c0_13 = arith.constant 0 : index
    %c0_14 = arith.constant 0 : index
    %15 = vector.load %arg2[%c3, %c0_13, %c0_14] : memref<7x160x256xbf16, #tpu.memory_space<vmem>>, vector<1x160x128xbf16>
    %16 = vector.shape_cast %15 : vector<1x160x128xbf16> to vector<160x128xbf16>
    %cst_15 = arith.constant dense<0.000000e+00> : vector<192x128xf32>
    %17 = tpu.matmul %14, %16, %cst_15 {dimension_numbers = #tpu.dot_dimension_numbers<[1], [0], [0], [1], [0, 0, 1, 1], [], []>} : vector<192x160xbf16>, vector<160x128xbf16>, vector<192x128xf32> -> vector<192x128xf32>
    %18 = arith.addf %13, %17 : vector<192x128xf32>
    %c64 = arith.constant 64 : index
    %c0_16 = arith.constant 0 : index
    %19 = vector.load %arg1[%c64, %c0_16] : memref<288x160xbf16, #tpu.memory_space<vmem>>, vector<192x160xbf16>
    %c4 = arith.constant 4 : index
    %c0_17 = arith.constant 0 : index
    %c0_18 = arith.constant 0 : index
    %20 = vector.load %arg2[%c4, %c0_17, %c0_18] : memref<7x160x256xbf16, #tpu.memory_space<vmem>>, vector<1x160x128xbf16>
    %21 = vector.shape_cast %20 : vector<1x160x128xbf16> to vector<160x128xbf16>
    %cst_19 = arith.constant dense<0.000000e+00> : vector<192x128xf32>
    %22 = tpu.matmul %19, %21, %cst_19 {dimension_numbers = #tpu.dot_dimension_numbers<[1], [0], [0], [1], [0, 0, 1, 1], [], []>} : vector<192x160xbf16>, vector<160x128xbf16>, vector<192x128xf32> -> vector<192x128xf32>
    %23 = arith.addf %18, %22 : vector<192x128xf32>
    %c80 = arith.constant 80 : index
    %c0_20 = arith.constant 0 : index
    %24 = vector.load %arg1[%c80, %c0_20] : memref<288x160xbf16, #tpu.memory_space<vmem>>, vector<192x160xbf16>
    %c5 = arith.constant 5 : index
    %c0_21 = arith.constant 0 : index
    %c0_22 = arith.constant 0 : index
    %25 = vector.load %arg2[%c5, %c0_21, %c0_22] : memref<7x160x256xbf16, #tpu.memory_space<vmem>>, vector<1x160x128xbf16>
    %26 = vector.shape_cast %25 : vector<1x160x128xbf16> to vector<160x128xbf16>
    %cst_23 = arith.constant dense<0.000000e+00> : vector<192x128xf32>
    %27 = tpu.matmul %24, %26, %cst_23 {dimension_numbers = #tpu.dot_dimension_numbers<[1], [0], [0], [1], [0, 0, 1, 1], [], []>} : vector<192x160xbf16>, vector<160x128xbf16>, vector<192x128xf32> -> vector<192x128xf32>
    %28 = arith.addf %23, %27 : vector<192x128xf32>
    %c96 = arith.constant 96 : index
    %c0_24 = arith.constant 0 : index
    %29 = vector.load %arg1[%c96, %c0_24] : memref<288x160xbf16, #tpu.memory_space<vmem>>, vector<192x160xbf16>
    %c6 = arith.constant 6 : index
    %c0_25 = arith.constant 0 : index
    %c0_26 = arith.constant 0 : index
    %30 = vector.load %arg2[%c6, %c0_25, %c0_26] : memref<7x160x256xbf16, #tpu.memory_space<vmem>>, vector<1x160x128xbf16>
    %31 = vector.shape_cast %30 : vector<1x160x128xbf16> to vector<160x128xbf16>
    %cst_27 = arith.constant dense<0.000000e+00> : vector<192x128xf32>
    %32 = tpu.matmul %29, %31, %cst_27 {dimension_numbers = #tpu.dot_dimension_numbers<[1], [0], [0], [1], [0, 0, 1, 1], [], []>} : vector<192x160xbf16>, vector<160x128xbf16>, vector<192x128xf32> -> vector<192x128xf32>
    %33 = arith.addf %28, %32 : vector<192x128xf32>
    %cst_28 = arith.constant dense<0.000000e+00> : vector<128xf32>
    %34 = vector.multi_reduction <add>, %33, %cst_28 [0] : vector<192x128xf32> to vector<128xf32>
    %35 = vector.shape_cast %34 : vector<128xf32> to vector<1x128xf32>
    %36 = arith.mulf %33, %33 : vector<192x128xf32>
    %cst_29 = arith.constant dense<0.000000e+00> : vector<128xf32>
    %37 = vector.multi_reduction <add>, %36, %cst_29 [0] : vector<192x128xf32> to vector<128xf32>
    %38 = vector.shape_cast %37 : vector<128xf32> to vector<1x128xf32>
    %cst_30 = arith.constant 0.0069444445 : f32
    %39 = vector.broadcast %cst_30 : f32 to vector<1x128xf32>
    %40 = arith.mulf %35, %39 : vector<1x128xf32>
    %cst_31 = arith.constant 0.0069444445 : f32
    %41 = vector.broadcast %cst_31 : f32 to vector<1x128xf32>
    %42 = arith.mulf %38, %41 : vector<1x128xf32>
    %43 = arith.mulf %40, %40 : vector<1x128xf32>
    %44 = arith.subf %42, %43 : vector<1x128xf32>
    %cst_32 = arith.constant 1.000000e-03 : f32
    %45 = vector.broadcast %cst_32 : f32 to vector<1x128xf32>
    %46 = arith.addf %44, %45 : vector<1x128xf32>
    %47 = math.rsqrt %46 : vector<1x128xf32>
    %c0_33 = arith.constant 0 : index
    %c0_34 = arith.constant 0 : index
    %48 = vector.load %arg3[%c0_33, %c0_34] : memref<1x256xf32, #tpu.memory_space<vmem>>, vector<1x128xf32>
    %49 = arith.mulf %47, %48 : vector<1x128xf32>
    %c0_35 = arith.constant 0 : index
    %c0_36 = arith.constant 0 : index
    %50 = vector.load %arg4[%c0_35, %c0_36] : memref<1x256xf32, #tpu.memory_space<vmem>>, vector<1x128xf32>
    %51 = arith.mulf %40, %49 : vector<1x128xf32>
    %52 = arith.subf %50, %51 : vector<1x128xf32>
    %53 = vector.broadcast %49 : vector<1x128xf32> to vector<192x128xf32>
    %54 = arith.mulf %33, %53 : vector<192x128xf32>
    %55 = vector.broadcast %52 : vector<1x128xf32> to vector<192x128xf32>
    %56 = arith.addf %54, %55 : vector<192x128xf32>
    %c0_37 = arith.constant 0 : index
    %c0_38 = arith.constant 0 : index
    %57 = vector.load %arg5[%c0_37, %c0_38] : memref<192x256xf32, #tpu.memory_space<vmem>>, vector<192x128xf32>
    tpu.vector_store %arg5[%c0_37, %c0_38], %56 {strides = array<i32>} : memref<192x256xf32, #tpu.memory_space<vmem>>, vector<192x128xf32>,
    %c0_39 = arith.constant 0 : index
    %c0_40 = arith.constant 0 : index
    %58 = vector.load %arg1[%c0_39, %c0_40] : memref<288x160xbf16, #tpu.memory_space<vmem>>, vector<192x160xbf16>
    %c0_41 = arith.constant 0 : index
    %c0_42 = arith.constant 0 : index
    %c128 = arith.constant 128 : index
    %59 = vector.load %arg2[%c0_41, %c0_42, %c128] : memref<7x160x256xbf16, #tpu.memory_space<vmem>>, vector<1x160x128xbf16>
    %60 = vector.shape_cast %59 : vector<1x160x128xbf16> to vector<160x128xbf16>
    %cst_43 = arith.constant dense<0.000000e+00> : vector<192x128xf32>
    %61 = tpu.matmul %58, %60, %cst_43 {dimension_numbers = #tpu.dot_dimension_numbers<[1], [0], [0], [1], [0, 0, 1, 1], [], []>} : vector<192x160xbf16>, vector<160x128xbf16>, vector<192x128xf32> -> vector<192x128xf32>
    %c16_44 = arith.constant 16 : index
    %c0_45 = arith.constant 0 : index
    %62 = vector.load %arg1[%c16_44, %c0_45] : memref<288x160xbf16, #tpu.memory_space<vmem>>, vector<192x160xbf16>
    %c1_46 = arith.constant 1 : index
    %c0_47 = arith.constant 0 : index
    %c128_48 = arith.constant 128 : index
    %63 = vector.load %arg2[%c1_46, %c0_47, %c128_48] : memref<7x160x256xbf16, #tpu.memory_space<vmem>>, vector<1x160x128xbf16>
    %64 = vector.shape_cast %63 : vector<1x160x128xbf16> to vector<160x128xbf16>
    %cst_49 = arith.constant dense<0.000000e+00> : vector<192x128xf32>
    %65 = tpu.matmul %62, %64, %cst_49 {dimension_numbers = #tpu.dot_dimension_numbers<[1], [0], [0], [1], [0, 0, 1, 1], [], []>} : vector<192x160xbf16>, vector<160x128xbf16>, vector<192x128xf32> -> vector<192x128xf32>
    %66 = arith.addf %61, %65 : vector<192x128xf32>
    %c32_50 = arith.constant 32 : index
    %c0_51 = arith.constant 0 : index
    %67 = vector.load %arg1[%c32_50, %c0_51] : memref<288x160xbf16, #tpu.memory_space<vmem>>, vector<192x160xbf16>
    %c2_52 = arith.constant 2 : index
    %c0_53 = arith.constant 0 : index
    %c128_54 = arith.constant 128 : index
    %68 = vector.load %arg2[%c2_52, %c0_53, %c128_54] : memref<7x160x256xbf16, #tpu.memory_space<vmem>>, vector<1x160x128xbf16>
    %69 = vector.shape_cast %68 : vector<1x160x128xbf16> to vector<160x128xbf16>
    %cst_55 = arith.constant dense<0.000000e+00> : vector<192x128xf32>
    %70 = tpu.matmul %67, %69, %cst_55 {dimension_numbers = #tpu.dot_dimension_numbers<[1], [0], [0], [1], [0, 0, 1, 1], [], []>} : vector<192x160xbf16>, vector<160x128xbf16>, vector<192x128xf32> -> vector<192x128xf32>
    %71 = arith.addf %66, %70 : vector<192x128xf32>
    %c48_56 = arith.constant 48 : index
    %c0_57 = arith.constant 0 : index
    %72 = vector.load %arg1[%c48_56, %c0_57] : memref<288x160xbf16, #tpu.memory_space<vmem>>, vector<192x160xbf16>
    %c3_58 = arith.constant 3 : index
    %c0_59 = arith.constant 0 : index
    %c128_60 = arith.constant 128 : index
    %73 = vector.load %arg2[%c3_58, %c0_59, %c128_60] : memref<7x160x256xbf16, #tpu.memory_space<vmem>>, vector<1x160x128xbf16>
    %74 = vector.shape_cast %73 : vector<1x160x128xbf16> to vector<160x128xbf16>
    %cst_61 = arith.constant dense<0.000000e+00> : vector<192x128xf32>
    %75 = tpu.matmul %72, %74, %cst_61 {dimension_numbers = #tpu.dot_dimension_numbers<[1], [0], [0], [1], [0, 0, 1, 1], [], []>} : vector<192x160xbf16>, vector<160x128xbf16>, vector<192x128xf32> -> vector<192x128xf32>
    %76 = arith.addf %71, %75 : vector<192x128xf32>
    %c64_62 = arith.constant 64 : index
    %c0_63 = arith.constant 0 : index
    %77 = vector.load %arg1[%c64_62, %c0_63] : memref<288x160xbf16, #tpu.memory_space<vmem>>, vector<192x160xbf16>
    %c4_64 = arith.constant 4 : index
    %c0_65 = arith.constant 0 : index
    %c128_66 = arith.constant 128 : index
    %78 = vector.load %arg2[%c4_64, %c0_65, %c128_66] : memref<7x160x256xbf16, #tpu.memory_space<vmem>>, vector<1x160x128xbf16>
    %79 = vector.shape_cast %78 : vector<1x160x128xbf16> to vector<160x128xbf16>
    %cst_67 = arith.constant dense<0.000000e+00> : vector<192x128xf32>
    %80 = tpu.matmul %77, %79, %cst_67 {dimension_numbers = #tpu.dot_dimension_numbers<[1], [0], [0], [1], [0, 0, 1, 1], [], []>} : vector<192x160xbf16>, vector<160x128xbf16>, vector<192x128xf32> -> vector<192x128xf32>
    %81 = arith.addf %76, %80 : vector<192x128xf32>
    %c80_68 = arith.constant 80 : index
    %c0_69 = arith.constant 0 : index
    %82 = vector.load %arg1[%c80_68, %c0_69] : memref<288x160xbf16, #tpu.memory_space<vmem>>, vector<192x160xbf16>
    %c5_70 = arith.constant 5 : index
    %c0_71 = arith.constant 0 : index
    %c128_72 = arith.constant 128 : index
    %83 = vector.load %arg2[%c5_70, %c0_71, %c128_72] : memref<7x160x256xbf16, #tpu.memory_space<vmem>>, vector<1x160x128xbf16>
    %84 = vector.shape_cast %83 : vector<1x160x128xbf16> to vector<160x128xbf16>
    %cst_73 = arith.constant dense<0.000000e+00> : vector<192x128xf32>
    %85 = tpu.matmul %82, %84, %cst_73 {dimension_numbers = #tpu.dot_dimension_numbers<[1], [0], [0], [1], [0, 0, 1, 1], [], []>} : vector<192x160xbf16>, vector<160x128xbf16>, vector<192x128xf32> -> vector<192x128xf32>
    %86 = arith.addf %81, %85 : vector<192x128xf32>
    %c96_74 = arith.constant 96 : index
    %c0_75 = arith.constant 0 : index
    %87 = vector.load %arg1[%c96_74, %c0_75] : memref<288x160xbf16, #tpu.memory_space<vmem>>, vector<192x160xbf16>
    %c6_76 = arith.constant 6 : index
    %c0_77 = arith.constant 0 : index
    %c128_78 = arith.constant 128 : index
    %88 = vector.load %arg2[%c6_76, %c0_77, %c128_78] : memref<7x160x256xbf16, #tpu.memory_space<vmem>>, vector<1x160x128xbf16>
    %89 = vector.shape_cast %88 : vector<1x160x128xbf16> to vector<160x128xbf16>
    %cst_79 = arith.constant dense<0.000000e+00> : vector<192x128xf32>
    %90 = tpu.matmul %87, %89, %cst_79 {dimension_numbers = #tpu.dot_dimension_numbers<[1], [0], [0], [1], [0, 0, 1, 1], [], []>} : vector<192x160xbf16>, vector<160x128xbf16>, vector<192x128xf32> -> vector<192x128xf32>
    %91 = arith.addf %86, %90 : vector<192x128xf32>
    %cst_80 = arith.constant dense<0.000000e+00> : vector<128xf32>
    %92 = vector.multi_reduction <add>, %91, %cst_80 [0] : vector<192x128xf32> to vector<128xf32>
    %93 = vector.shape_cast %92 : vector<128xf32> to vector<1x128xf32>
    %94 = arith.mulf %91, %91 : vector<192x128xf32>
    %cst_81 = arith.constant dense<0.000000e+00> : vector<128xf32>
    %95 = vector.multi_reduction <add>, %94, %cst_81 [0] : vector<192x128xf32> to vector<128xf32>
    %96 = vector.shape_cast %95 : vector<128xf32> to vector<1x128xf32>
    %cst_82 = arith.constant 0.0069444445 : f32
    %97 = vector.broadcast %cst_82 : f32 to vector<1x128xf32>
    %98 = arith.mulf %93, %97 : vector<1x128xf32>
    %cst_83 = arith.constant 0.0069444445 : f32
    %99 = vector.broadcast %cst_83 : f32 to vector<1x128xf32>
    %100 = arith.mulf %96, %99 : vector<1x128xf32>
    %101 = arith.mulf %98, %98 : vector<1x128xf32>
    %102 = arith.subf %100, %101 : vector<1x128xf32>
    %cst_84 = arith.constant 1.000000e-03 : f32
    %103 = vector.broadcast %cst_84 : f32 to vector<1x128xf32>
    %104 = arith.addf %102, %103 : vector<1x128xf32>
    %105 = math.rsqrt %104 : vector<1x128xf32>
    %c0_85 = arith.constant 0 : index
    %c128_86 = arith.constant 128 : index
    %106 = vector.load %arg3[%c0_85, %c128_86] : memref<1x256xf32, #tpu.memory_space<vmem>>, vector<1x128xf32>
    %107 = arith.mulf %105, %106 : vector<1x128xf32>
    %c0_87 = arith.constant 0 : index
    %c128_88 = arith.constant 128 : index
    %108 = vector.load %arg4[%c0_87, %c128_88] : memref<1x256xf32, #tpu.memory_space<vmem>>, vector<1x128xf32>
    %109 = arith.mulf %98, %107 : vector<1x128xf32>
    %110 = arith.subf %108, %109 : vector<1x128xf32>
    %111 = vector.broadcast %107 : vector<1x128xf32> to vector<192x128xf32>
    %112 = arith.mulf %91, %111 : vector<192x128xf32>
    %113 = vector.broadcast %110 : vector<1x128xf32> to vector<192x128xf32>
    %114 = arith.addf %112, %113 : vector<192x128xf32>
    %c0_89 = arith.constant 0 : index
    %c128_90 = arith.constant 128 : index
    %115 = vector.load %arg5[%c0_89, %c128_90] : memref<192x256xf32, #tpu.memory_space<vmem>>, vector<192x128xf32>
    tpu.vector_store %arg5[%c0_89, %c128_90], %114 {strides = array<i32>} : memref<192x256xf32, #tpu.memory_space<vmem>>, vector<192x128xf32>,
    return
  }
  func.func @transform_0(%arg0: i32) -> (i32, i32) {
    %c0_i32 = arith.constant 0 : i32
    %c0_i32_0 = arith.constant 0 : i32
    %c0_i32_1 = arith.constant 0 : i32
    return %c0_i32, %c0_i32_0 : i32, i32
  }
  func.func @transform_1(%arg0: i32) -> (i32, i32, i32) {
    %c0_i32 = arith.constant 0 : i32
    %c0_i32_0 = arith.constant 0 : i32
    %c0_i32_1 = arith.constant 0 : i32
    %c0_i32_2 = arith.constant 0 : i32
    return %c0_i32, %c0_i32_0, %c0_i32_1 : i32, i32, i32
  }
  func.func @transform_2(%arg0: i32) -> (i32, i32) {
    %c0_i32 = arith.constant 0 : i32
    %c0_i32_0 = arith.constant 0 : i32
    %c0_i32_1 = arith.constant 0 : i32
    return %c0_i32, %c0_i32_0 : i32, i32
  }
  func.func @transform_3(%arg0: i32) -> (i32, i32) {
    %c0_i32 = arith.constant 0 : i32
    %c0_i32_0 = arith.constant 0 : i32
    %c0_i32_1 = arith.constant 0 : i32
    return %c0_i32, %c0_i32_0 : i32, i32
  }
  func.func @transform_4(%arg0: i32) -> (i32, i32) {
    %c0_i32 = arith.constant 0 : i32
    %c0_i32_0 = arith.constant 0 : i32
    %c0_i32_1 = arith.constant 0 : i32
    return %c0_i32, %c0_i32_0 : i32, i32
  }
}

</mosaic_0001>

<bundles_post_ra>
// kernel: relu_conv_bn.1
= control target key start
LH: loop header
LB: loop body
LE: loop exit
PB: predicated region body
PF: predicated region fallthrough
CT: control target
= control target key end

     0   :  { %vm253_vm0 = vcmask 261120   ;;  %s12309_s1 = inlined_call_operand.vmem [shape: bf16[7,160,256], index: 1, kind: input, shape index: {}]   ;;  %s12310_s0 = inlined_call_operand.vmem [shape: bf16[288,160], index: 0, kind: input, shape index: {}]   ;;  %s12311_s2 = inlined_call_operand.vmem [shape: f32[1,256], index: 2, kind: input, shape index: {}]   ;;  %s12312_s3 = inlined_call_operand.vmem [shape: f32[1,256], index: 3, kind: input, shape index: {}]   ;;  %s12313_s4 = inlined_call_operand.vmem [shape: f32[192,256], index: 4, kind: output, shape index: {}]  }
   0x1   :  { %v5867_v0 = vld [vmem:[%s12309_s1 + $0x110] sm:$0xf]  ;;  %v7900_v1 = vld [vmem:[%s12309_s1 + $0x114] sm:$0xf0]  ;;  %v5863_v11 = vld [vmem:[%s12309_s1 + $0x100] sm:$0xf] }
   0x2   :  { %v5875_v2 = vld [vmem:[%s12309_s1 + $0x130] sm:$0xf]  ;;  %v5868_v3 = vor.u32 %v7900_v1, %v5867_v0  ;;  %v7902_v4 = vld [vmem:[%s12309_s1 + $0x134] sm:$0xf0]  ;;  %v7899_v13 = vld [vmem:[%s12309_s1 + $0x104] sm:$0xf0] }
   0x3   :  { %v5927_v5 = vld [vmem:[%s12309_s1 + $0x70] sm:$0xf]  ;;  %v7888_v6 = vld [vmem:[%s12309_s1 + $0x74] sm:$0xf0]  ;;  %v5876_v7 = vor.u32 %v7902_v4, %v5875_v2  ;;  %v5871_v14 = vld [vmem:[%s12309_s1 + $0x120] sm:$0xf]  ;;  %v5864_v16 = vor.u32 %v7899_v13, %v5863_v11 }
   0x4   :  { %v5928_v8 = vor.u32 %v7888_v6, %v5927_v5  ;;  %v5935_v9 = vld [vmem:[%s12309_s1 + $0x90] sm:$0xf]  ;;  %v7890_v10 = vld [vmem:[%s12309_s1 + $0x94] sm:$0xf0]  ;;  %290 = vmatpush.bf16.msra.mxu0 %v5868_v3  ;;  %v7901_v15 = vld [vmem:[%s12309_s1 + $0x124] sm:$0xf0] }
   0x5   :  { %v5936_v12 = vor.u32 %v7890_v10, %v5935_v9  ;;  %365 = vmatpush.bf16.msra.mxu1 %v5876_v7  ;;  %v5872_v17 = vor.u32 %v7901_v15, %v5871_v14  ;;  %v5923_v18 = vld [vmem:[%s12309_s1 + $0x60] sm:$0xf]  ;;  %v7887_v19 = vld [vmem:[%s12309_s1 + $0x64] sm:$0xf0]  ;;  %v7859_v23 = vld [vmem:[%s12310_s0 + $0x14] sm:$0xf] }
   0x6   :  { %500 = vmatpush.bf16.msra.mxu2 %v5928_v8  ;;  %v5931_v20 = vld [vmem:[%s12309_s1 + $0x80] sm:$0xf]  ;;  %v5924_v21 = vor.u32 %v7887_v19, %v5923_v18  ;;  %v7889_v22 = vld [vmem:[%s12309_s1 + $0x84] sm:$0xf0]  ;;  %v5745_v24 = vld [vmem:[%s12310_s0 + $0x18] sm:$0xf0] }
   0x7   :  { %575 = vmatpush.bf16.msra.mxu3 %v5936_v12  ;;  %v5932_v25 = vor.u32 %v7889_v22, %v5931_v20  ;;  %v7857_v26 = vld [vmem:[%s12310_s0 + $0x4] sm:$0xf]  ;;  %v5893_v27 = vld [vmem:[%s12310_s0 + $0x8] sm:$0xf0]  ;;  %v5859_v28 = vld [vmem:[%s12309_s1 + $0xf0] sm:$0xf]  ;;  %v8381_v29 = vor.u32 %v7859_v23, %v5745_v24 }
   0x8   :  { %291 = vmatpush.bf16.msra.mxu0 %v5864_v16  ;;  %v7898_v30 = vld [vmem:[%s12309_s1 + $0xf4] sm:$0xf0]  ;;  %v5919_v31 = vld [vmem:[%s12309_s1 + $0x50] sm:$0xf]  ;;  %v5896_v33 = vor.u32 %v7857_v26, %v5893_v27  ;;  %v5855_v36 = vld [vmem:[%s12309_s1 + $0xe0] sm:$0xf] }
   0x9   :  { %v7886_v32 = vld [vmem:[%s12309_s1 + $0x54] sm:$0xf0]  ;;  %366 = vmatpush.bf16.msra.mxu1 %v5872_v17  ;;  %v5860_v34 = vor.u32 %v7898_v30, %v5859_v28  ;;  %v7897_v37 = vld [vmem:[%s12309_s1 + $0xe4] sm:$0xf0]  ;;  %v5915_v38 = vld [vmem:[%s12309_s1 + $0x40] sm:$0xf] }
   0xa   :  { %501 = vmatpush.bf16.msra.mxu2 %v5924_v21  ;;  %v5920_v35 = vor.u32 %v7886_v32, %v5919_v31  ;;  %v7885_v39 = vld [vmem:[%s12309_s1 + $0x44] sm:$0xf0]  ;;  %v5856_v40 = vor.u32 %v7897_v37, %v5855_v36  ;;  %v5851_v42 = vld [vmem:[%s12309_s1 + $0xd0] sm:$0xf]  ;;  %v7896_v43 = vld [vmem:[%s12309_s1 + $0xd4] sm:$0xf0] }
   0xb   :  { %576 = vmatpush.bf16.msra.mxu3 %v5932_v25  ;;  %v5916_v41 = vor.u32 %v7885_v39, %v5915_v38  ;;  %v5911_v44 = vld [vmem:[%s12309_s1 + $0x30] sm:$0xf]  ;;  %v7884_v45 = vld [vmem:[%s12309_s1 + $0x34] sm:$0xf0]  ;;  %v5852_v46 = vor.u32 %v7896_v43, %v5851_v42  ;;  %v5847_v50 = vld [vmem:[%s12309_s1 + $0xc0] sm:$0xf] }
   0xc   :  { %5877 = vmatmul.msk.bf16.vlgmr.msra.gmra.mxu1 %vm253_vm0, %v8381_v29  ;;  %292 = vmatpush.bf16.msra.mxu0 %v5860_v34  ;;  %v6103_v47 = vld [vmem:[%s12309_s1 + $0x1d0] sm:$0xf]  ;;  %v7936_v48 = vld [vmem:[%s12309_s1 + $0x1d4] sm:$0xf0]  ;;  %v5912_v49 = vor.u32 %v7884_v45, %v5911_v44  ;;  %v7895_v51 = vld [vmem:[%s12309_s1 + $0xc4] sm:$0xf0] }
   0xd   :  { %v6104_v52 = vor.u32 %v7936_v48, %v6103_v47  ;;  %v5907_v53 = vld [vmem:[%s12309_s1 + $0x20] sm:$0xf]  ;;  %v7883_v54 = vld [vmem:[%s12309_s1 + $0x24] sm:$0xf0]  ;;  %v6095_v55 = vld [vmem:[%s12309_s1 + $0x1b0] sm:$0xf]  ;;  %v5848_v57 = vor.u32 %v7895_v51, %v5847_v50 }
   0xe   :  { %5937 = vmatmul.msk.bf16.vlgmr.msra.gmra.mxu3 %vm253_vm0, %v5896_v33  ;;  %502 = vmatpush.bf16.msra.mxu2 %v5920_v35  ;;  %v7934_v56 = vld [vmem:[%s12309_s1 + $0x1b4] sm:$0xf0]  ;;  %v7861_v58 = vld [vmem:[%s12310_s0 + $0x24] sm:$0xf]  ;;  %v5908_v60 = vor.u32 %v7883_v54, %v5907_v53  ;;  %v5753_v61 = vld [vmem:[%s12310_s0 + $0x28] sm:$0xf0] }
   0xf   :  { %962 = vmatpush.bf16.msrb.mxu3 %v6104_v52  ;;  %v6096_v59 = vor.u32 %v7934_v56, %v6095_v55  ;;  %v5843_v62 = vld [vmem:[%s12309_s1 + $0xb0] sm:$0xf]  ;;  %v7894_v63 = vld [vmem:[%s12309_s1 + $0xb4] sm:$0xf0]  ;;  %v5756_v2 = vor.u32 %v7861_v58, %v5753_v61  ;;  %v5839_v5 = vld [vmem:[%s12309_s1 + $0xa0] sm:$0xf] }
  0x10   :  { %293 = vmatpush.bf16.msra.mxu0 %v5856_v40  ;;  %v5903_v0 = vld [vmem:[%s12309_s1 + $0x10] sm:$0xf]  ;;  %v7882_v1 = vld [vmem:[%s12309_s1 + $0x14] sm:$0xf0]  ;;  %v5844_v3 = vor.u32 %v7894_v63, %v5843_v62  ;;  %v7893_v6 = vld [vmem:[%s12309_s1 + $0xa4] sm:$0xf0] }
  0x11   :  { %887 = vmatpush.bf16.msrb.mxu1 %v6096_v59  ;;  %v5904_v4 = vor.u32 %v7882_v1, %v5903_v0  ;;  %v5899_v7 = vld [vmem:[%s12309_s1] sm:$0xf]  ;;  %v7881_v8 = vld [vmem:[%s12309_s1 + $0x4] sm:$0xf0]  ;;  %v6263_v9 = vld [vmem:[%s12309_s1 + $0x250] sm:$0xf]  ;;  %v5840_v13 = vor.u32 %v7893_v6, %v5839_v5 }
  0x12   :  { %503 = vmatpush.bf16.msra.mxu2 %v5916_v41  ;;  %v7968_v10 = vld [vmem:[%s12309_s1 + $0x254] sm:$0xf0]  ;;  %v6271_v11 = vld [vmem:[%s12309_s1 + $0x270] sm:$0xf]  ;;  %v5891_v16 = vld [vmem:[%s12310_s0] sm:$0xf]  ;;  %v5900_v17 = vor.u32 %v7881_v8, %v5899_v7 }
  0x13   :  { %v7970_v12 = vld [vmem:[%s12309_s1 + $0x274] sm:$0xf0]  ;;  %v5743_v14 = vld [vmem:[%s12310_s0 + $0x10] sm:$0xf]  ;;  %v7858_v18 = vld [vmem:[%s12310_s0 + $0x4] sm:$0xf0]  ;;  %v6264_v19 = vor.u32 %v7968_v10, %v6263_v9 }
  0x14   :  { %294 = vmatpush.bf16.msra.mxu0 %v5852_v46  ;;  %v7860_v15 = vld [vmem:[%s12310_s0 + $0x14] sm:$0xf0]  ;;  %v6091_v20 = vld [vmem:[%s12309_s1 + $0x1a0] sm:$0xf]  ;;  %v7933_v21 = vld [vmem:[%s12309_s1 + $0x1a4] sm:$0xf0]  ;;  %v6272_v22 = vor.u32 %v7970_v12, %v6271_v11  ;;  %v5892_v27 = vor.u32 %v7858_v18, %v5891_v16 }
  0x15   :  { %v6092_v23 = vor.u32 %v7933_v21, %v6091_v20  ;;  %v6259_v24 = vld [vmem:[%s12309_s1 + $0x240] sm:$0xf]  ;;  %v7967_v25 = vld [vmem:[%s12309_s1 + $0x244] sm:$0xf0]  ;;  %v5744_v26 = vor.u32 %v7860_v15, %v5743_v14  ;;  %v5761_v30 = vld [vmem:[%s12310_s0 + $0x38] sm:$0xf0] }
  0x16   :  { %504 = vmatpush.bf16.msra.mxu2 %v5912_v49  ;;  %v6260_v28 = vor.u32 %v7967_v25, %v6259_v24  ;;  %v5751_v32 = vld [vmem:[%s12310_s0 + $0x20] sm:$0xf]  ;;  %v7862_v33 = vld [vmem:[%s12310_s0 + $0x24] sm:$0xf0]  ;;  %v6087_v35 = vld [vmem:[%s12309_s1 + $0x190] sm:$0xf] }
  0x17   :  { %888 = vmatpush.bf16.msrb.mxu1 %v6092_v23  ;;  %v5752_v34 = vor.u32 %v7862_v33, %v5751_v32  ;;  %v7932_v36 = vld [vmem:[%s12309_s1 + $0x194] sm:$0xf0]  ;;  %v6255_v37 = vld [vmem:[%s12309_s1 + $0x230] sm:$0xf]  ;;  %v7865_v38 = vld [vmem:[%s12310_s0 + $0x44] sm:$0xf] }
  0x18   :  { %295 = vmatpush.bf16.msra.mxu0 %v5848_v57  ;;  %v5769_v39 = vld [vmem:[%s12310_s0 + $0x48] sm:$0xf0]  ;;  %v6088_v40 = vor.u32 %v7932_v36, %v6087_v35  ;;  %v7966_v41 = vld [vmem:[%s12309_s1 + $0x234] sm:$0xf0]  ;;  %v5759_v44 = vld [vmem:[%s12310_s0 + $0x30] sm:$0xf] }
  0x19   :  { %v6256_v42 = vor.u32 %v7966_v41, %v6255_v37  ;;  %v5772_v43 = vor.u32 %v7865_v38, %v5769_v39  ;;  %v7864_v45 = vld [vmem:[%s12310_s0 + $0x34] sm:$0xf0]  ;;  %v7867_v47 = vld [vmem:[%s12310_s0 + $0x54] sm:$0xf]  ;;  %v5777_v48 = vld [vmem:[%s12310_s0 + $0x58] sm:$0xf0] }
  0x1a   :  { %505 = vmatpush.bf16.msra.mxu2 %v5908_v60  ;;  %v5760_v46 = vor.u32 %v7864_v45, %v5759_v44  ;;  %v5780_v49 = vor.u32 %v7867_v47, %v5777_v48  ;;  %v5767_v50 = vld [vmem:[%s12310_s0 + $0x40] sm:$0xf]  ;;  %v7866_v51 = vld [vmem:[%s12310_s0 + $0x44] sm:$0xf0]  ;;  %v7869_v59 = vld [vmem:[%s12310_s0 + $0x64] sm:$0xf] }
  0x1b   :  { %889 = vmatpush.bf16.msrb.mxu1 %v6088_v40  ;;  %v6083_v52 = vld [vmem:[%s12309_s1 + $0x180] sm:$0xf]  ;;  %v7931_v53 = vld [vmem:[%s12309_s1 + $0x184] sm:$0xf0]  ;;  %v5768_v57 = vor.u32 %v7866_v51, %v5767_v50  ;;  %v5785_v60 = vld [vmem:[%s12310_s0 + $0x68] sm:$0xf0] }
  0x1c   :  { %5878 = vmatmul.msk.bf16.gmra.mxu1 %vm253_vm0, %v5756_v2  ;;  %296 = vmatpush.bf16.msra.mxu0 %v5844_v3  ;;  %v6251_v54 = vld [vmem:[%s12309_s1 + $0x220] sm:$0xf]  ;;  %v6084_v55 = vor.u32 %v7931_v53, %v6083_v52  ;;  %v7965_v56 = vld [vmem:[%s12309_s1 + $0x224] sm:$0xf0]  ;;  %v5788_v61 = vor.u32 %v7869_v59, %v5785_v60  ;;  %v5775_v62 = vld [vmem:[%s12310_s0 + $0x50] sm:$0xf] }
  0x1d   :  { %v6252_v58 = vor.u32 %v7965_v56, %v6251_v54  ;;  %v7868_v63 = vld [vmem:[%s12310_s0 + $0x54] sm:$0xf0]  ;;  %v6099_v0 = vld [vmem:[%s12309_s1 + $0x1c0] sm:$0xf]  ;;  %v7935_v1 = vld [vmem:[%s12309_s1 + $0x1c4] sm:$0xf0] }
  0x1e   :  { %5938 = vmatmul.msk.bf16.gmra.mxu3 %vm253_vm0, %v8381_v29  ;;  %506 = vmatpush.bf16.msra.mxu2 %v5904_v4  ;;  %v7863_v29 = vld [vmem:[%s12310_s0 + $0x34] sm:$0xf]  ;;  %v5776_v3 = vor.u32 %v7868_v63, %v5775_v62  ;;  %v6267_v4 = vld [vmem:[%s12309_s1 + $0x260] sm:$0xf]  ;;  %v7969_v5 = vld [vmem:[%s12309_s1 + $0x264] sm:$0xf0] }
  0x1f   :  { %v5764_v31 = vor.u32 %v7863_v29, %v5761_v30  ;;  %890 = vmatpush.bf16.msrb.mxu1 %v6084_v55  ;;  %v6079_v6 = vld [vmem:[%s12309_s1 + $0x170] sm:$0xf]  ;;  %v7871_v7 = vld [vmem:[%s12310_s0 + $0x74] sm:$0xf]  ;;  %v5793_v8 = vld [vmem:[%s12310_s0 + $0x78] sm:$0xf0]  ;;  %v6268_v9 = vor.u32 %v7969_v5, %v6267_v4 }
  0x20   :  { %297 = vmatpush.bf16.msra.mxu0 %v5840_v13  ;;  %v7930_v10 = vld [vmem:[%s12309_s1 + $0x174] sm:$0xf0]  ;;  %v5796_v12 = vor.u32 %v7871_v7, %v5793_v8  ;;  %v6247_v13 = vld [vmem:[%s12309_s1 + $0x210] sm:$0xf]  ;;  %v5783_v16 = vld [vmem:[%s12310_s0 + $0x60] sm:$0xf] }
  0x21   :  { %v6080_v11 = vor.u32 %v7930_v10, %v6079_v6  ;;  %v7964_v14 = vld [vmem:[%s12309_s1 + $0x214] sm:$0xf0]  ;;  %v5801_v20 = vld [vmem:[%s12310_s0 + $0x88] sm:$0xf0]  ;;  %v6075_v25 = vld [vmem:[%s12309_s1 + $0x160] sm:$0xf] }
  0x22   :  { %507 = vmatpush.bf16.msra.mxu2 %v5900_v17  ;;  %v6248_v15 = vor.u32 %v7964_v14, %v6247_v13  ;;  %v7870_v17 = vld [vmem:[%s12310_s0 + $0x64] sm:$0xf0]  ;;  %v7872_v23 = vld [vmem:[%s12310_s0 + $0x74] sm:$0xf0]  ;;  %v5809_v32 = vld [vmem:[%s12310_s0 + $0x98] sm:$0xf0] }
  0x23   :  { %298 = vmatmul.bf16.vlgmr.msra.gmra.mxu0 %v5744_v26  ;;  %891 = vmatpush.bf16.msrb.mxu1 %v6080_v11  ;;  %v5784_v18 = vor.u32 %v7870_v17, %v5783_v16  ;;  %v7963_v29 = vld [vmem:[%s12309_s1 + $0x204] sm:$0xf0]  ;;  %v5799_v35 = vld [vmem:[%s12310_s0 + $0x80] sm:$0xf]  ;;  %v7877_v40 = vld [vmem:[%s12310_s0 + $0xa4] sm:$0xf] }
  0x24   :  { %1298 = vmatpush.bf16.msrb.mxu0 %v6264_v19  ;;  %v7873_v19 = vld [vmem:[%s12310_s0 + $0x84] sm:$0xf]  ;;  %v7874_v36 = vld [vmem:[%s12310_s0 + $0x84] sm:$0xf0]  ;;  %v5817_v41 = vld [vmem:[%s12310_s0 + $0xa8] sm:$0xf0] }
  0x25   :  { %508 = vmatmul.bf16.vlgmr.msra.gmra.mxu2 %v5892_v27  ;;  %v5804_v21 = vor.u32 %v7873_v19, %v5801_v20  ;;  %v5800_v37 = vor.u32 %v7874_v36, %v5799_v35  ;;  %v6071_v45 = vld [vmem:[%s12309_s1 + $0x150] sm:$0xf]  ;;  %v7876_v51 = vld [vmem:[%s12310_s0 + $0x94] sm:$0xf0]  ;;  %v5825_v59 = vld [vmem:[%s12310_s0 + $0xb8] sm:$0xf0] }
  0x26   :  { %1373 = vmatpush.bf16.msrb.mxu2 %v6272_v22  ;;  %v5791_v22 = vld [vmem:[%s12310_s0 + $0x70] sm:$0xf]  ;;  %v7927_v62 = vld [vmem:[%s12309_s1 + $0x144] sm:$0xf0]  ;;  %v5815_v7 = vld [vmem:[%s12310_s0 + $0xa0] sm:$0xf] }
  0x27   :  { %v5792_v24 = vor.u32 %v7872_v23, %v5791_v22  ;;  %v6239_v47 = vld [vmem:[%s12309_s1 + $0x1f0] sm:$0xf]  ;;  %v7878_v8 = vld [vmem:[%s12310_s0 + $0xa4] sm:$0xf0]  ;;  %v6235_v17 = vld [vmem:[%s12309_s1 + $0x1e0] sm:$0xf] }
  0x28   :  { %1299 = vmatpush.bf16.msrb.mxu0 %v6260_v28  ;;  %v6243_v28 = vld [vmem:[%s12309_s1 + $0x200] sm:$0xf]  ;;  %v5807_v50 = vld [vmem:[%s12310_s0 + $0x90] sm:$0xf]  ;;  %v5816_v10 = vor.u32 %v7878_v8, %v5815_v7  ;;  %v7891_v20 = vld [vmem:[%s12310_s0 + $0xc4] sm:$0xf] }
  0x29   :  { %v6244_v30 = vor.u32 %v7963_v29, %v6243_v28  ;;  %v5808_v53 = vor.u32 %v7876_v51, %v5807_v50 }
  0x2a   :  { %1374 = vmatpush.bf16.msrb.mxu2 %v6268_v9 }
  0x2c   :  { %5879 = vmatmul.msk.bf16.gmra.mxu1 %vm253_vm0, %v5764_v31  ;;  %1300 = vmatpush.bf16.msrb.mxu0 %v6256_v42 }
  0x2e   :  { %5939 = vmatmul.msk.bf16.gmra.mxu3 %vm253_vm0, %v5756_v2  ;;  %v6100_v2 = vor.u32 %v7935_v1, %v6099_v0 }
  0x30   :  { %1301 = vmatpush.bf16.msrb.mxu0 %v6252_v58  ;;  %963 = vmatpush.bf16.msrb.mxu3 %v6100_v2  ;;  %v7879_v58 = vld [vmem:[%s12310_s0 + $0xb4] sm:$0xf] }
  0x31   :  { %v5828_v2 = vor.u32 %v7879_v58, %v5825_v59  ;;  %v6431_v59 = vld [vmem:[%s12309_s1 + $0x2f0] sm:$0xf] }
  0x33   :  { %303 = vmatmul.bf16.gmra.mxu0 %v5752_v34 }
  0x34   :  { %1302 = vmatpush.bf16.msrb.mxu0 %v6248_v15 }
  0x35   :  { %513 = vmatmul.bf16.gmra.mxu2 %v5744_v26  ;;  %v7929_v26 = vld [vmem:[%s12309_s1 + $0x164] sm:$0xf0] }
  0x36   :  { %v6076_v27 = vor.u32 %v7929_v26, %v6075_v25 }
  0x38   :  { %892 = vmatpush.bf16.msrb.mxu1 %v6076_v27  ;;  %1303 = vmatpush.bf16.msrb.mxu0 %v6244_v30  ;;  %v5823_v30 = vld [vmem:[%s12310_s0 + $0xb0] sm:$0xf] }
  0x3c   :  { %5880 = vmatmul.msk.bf16.gmra.mxu1 %vm253_vm0, %v5772_v43 }
  0x3e   :  { %5940 = vmatmul.msk.bf16.gmra.mxu3 %vm253_vm0, %v5764_v31  ;;  %v7875_v31 = vld [vmem:[%s12310_s0 + $0x94] sm:$0xf] }
  0x3f   :  { %v5812_v33 = vor.u32 %v7875_v31, %v5809_v32  ;;  %v7880_v31 = vld [vmem:[%s12310_s0 + $0xb4] sm:$0xf0] }
  0x43   :  { %308 = vmatmul.bf16.gmra.mxu0 %v5760_v46 }
  0x45   :  { %518 = vmatmul.bf16.gmra.mxu2 %v5752_v34 }
  0x4c   :  { %5881 = vmatmul.msk.bf16.gmra.mxu1 %vm253_vm0, %v5780_v49 }
  0x4e   :  { %5941 = vmatmul.msk.bf16.gmra.mxu3 %vm253_vm0, %v5772_v43  ;;  %v5820_v43 = vor.u32 %v7877_v40, %v5817_v41  ;;  %v6439_v40 = vld [vmem:[%s12309_s1 + $0x310] sm:$0xf]  ;;  %v8004_v41 = vld [vmem:[%s12309_s1 + $0x314] sm:$0xf0] }
  0x53   :  { %313 = vmatmul.bf16.gmra.mxu0 %v5768_v57 }
  0x55   :  { %523 = vmatmul.bf16.gmra.mxu2 %v5760_v46  ;;  %v7928_v46 = vld [vmem:[%s12309_s1 + $0x154] sm:$0xf0] }
  0x56   :  { %v6072_v48 = vor.u32 %v7928_v46, %v6071_v45  ;;  %v5971_v45 = vld [vmem:[%s12310_s0 + $0x20] sm:$0xf]  ;;  %v7904_v46 = vld [vmem:[%s12310_s0 + $0x24] sm:$0xf0] }
  0x58   :  { %893 = vmatpush.bf16.msrb.mxu1 %v6072_v48  ;;  %v7903_v48 = vld [vmem:[%s12310_s0 + $0x24] sm:$0xf] }
  0x5c   :  { %5882 = vmatmul.msk.bf16.gmra.mxu1 %vm253_vm0, %v5788_v61 }
  0x5e   :  { %5942 = vmatmul.msk.bf16.gmra.mxu3 %vm253_vm0, %v5780_v49  ;;  %v7962_v49 = vld [vmem:[%s12309_s1 + $0x1f4] sm:$0xf0] }
  0x5f   :  { %v6240_v52 = vor.u32 %v7962_v49, %v6239_v47  ;;  %v5973_v49 = vld [vmem:[%s12310_s0 + $0x28] sm:$0xf0] }
  0x61   :  { %1304 = vmatpush.bf16.msrb.mxu0 %v6240_v52 }
  0x63   :  { %318 = vmatmul.bf16.gmra.mxu0 %v5776_v3 }
  0x65   :  { %528 = vmatmul.bf16.gmra.mxu2 %v5768_v57 }
  0x6c   :  { %5883 = vmatmul.msk.bf16.gmra.mxu1 %vm253_vm0, %v5796_v12 }
  0x6e   :  { %5943 = vmatmul.msk.bf16.gmra.mxu3 %vm253_vm0, %v5788_v61  ;;  %v6067_v61 = vld [vmem:[%s12309_s1 + $0x140] sm:$0xf] }
  0x73   :  { %323 = vmatmul.bf16.gmra.mxu0 %v5784_v18 }
  0x75   :  { %533 = vmatmul.bf16.gmra.mxu2 %v5776_v3  ;;  %v6068_v3 = vor.u32 %v7927_v62, %v6067_v61  ;;  %v6599_v61 = vld [vmem:[%s12309_s1 + $0x390] sm:$0xf] }
  0x77   :  { %894 = vmatpush.bf16.msrb.mxu1 %v6068_v3 }
  0x7c   :  { %5884 = vmatmul.msk.bf16.gmra.mxu1 %vm253_vm0, %v5804_v21 }
  0x7e   :  { %5944 = vmatmul.msk.bf16.gmra.mxu3 %vm253_vm0, %v5796_v12 }
  0x83   :  { %328 = vmatmul.bf16.gmra.mxu0 %v5792_v24 }
  0x85   :  { %538 = vmatmul.bf16.gmra.mxu2 %v5784_v18  ;;  %v7961_v18 = vld [vmem:[%s12309_s1 + $0x1e4] sm:$0xf0] }
  0x86   :  { %v6236_v19 = vor.u32 %v7961_v18, %v6235_v17 }
  0x88   :  { %1305 = vmatpush.bf16.msrb.mxu0 %v6236_v19 }
  0x89   :  { %v368_v34 = vpop.f32.mrf.mxu1 }
  0x8c   :  { %5885 = vmatmul.msk.bf16.gmra.mxu1 %vm253_vm0, %v5812_v33 }
  0x8e   :  { %5945 = vmatmul.msk.bf16.gmra.mxu3 %vm253_vm0, %v5804_v21  ;;  %v5833_v21 = vld [vmem:[%s12310_s0 + $0xc8] sm:$0xf0] }
  0x8f   :  { %v5836_v26 = vor.u32 %v7891_v20, %v5833_v21 }
  0x91   :  { %v578_v38 = vpop.f32.mrf.mxu3  ;;  %v370_v39 = vpop.f32.mrf.mxu1 }
  0x93   :  { %333 = vmatmul.bf16.gmra.mxu0 %v5800_v37 }
  0x95   :  { %543 = vmatmul.bf16.gmra.mxu2 %v5792_v24 }
  0x99   :  { %v580_v42 = vpop.f32.mrf.mxu3  ;;  %v373_v44 = vpop.f32.mrf.mxu1 }
  0x9c   :  { %5886 = vmatmul.msk.bf16.gmra.mxu1 %vm253_vm0, %v5820_v43 }
  0x9e   :  { %5946 = vmatmul.msk.bf16.gmra.mxu3 %vm253_vm0, %v5812_v33  ;;  %v5824_v33 = vor.u32 %v7880_v31, %v5823_v30  ;;  %v6141_v30 = vld [vmem:[%s12310_s0 + $0x38] sm:$0xf0] }
  0xa0   :  { %v299_v55 = vpop.f32.mrf.mxu0 }
  0xa1   :  { %v583_v54 = vpop.f32.mrf.mxu3  ;;  %v369_v56 = vadd.f32 %v368_v34, %v299_v55  ;;  %v375_v57 = vpop.f32.mrf.mxu1 }
  0xa3   :  { %338 = vmatmul.bf16.gmra.mxu0 %v5808_v53 }
  0xa5   :  { %548 = vmatmul.bf16.gmra.mxu2 %v5800_v37 }
  0xa8   :  { %v509_v60 = vpop.f32.mrf.mxu2  ;;  %v301_v1 = vpop.f32.mrf.mxu0 }
  0xa9   :  { %v510_v63 = vadd.f32 %v509_v60, %v369_v56  ;;  %v585_v0 = vpop.f32.mrf.mxu3  ;;  %v371_v4 = vadd.f32 %v370_v39, %v301_v1  ;;  %v378_v5 = vpop.f32.mrf.mxu1  ;;  %v8002_v60 = vld [vmem:[%s12309_s1 + $0x2f4] sm:$0xf0]  ;;  %v7892_v1 = vld [vmem:[%s12310_s0 + $0xc4] sm:$0xf0] }
  0xaa   :  { %v6432_v62 = vor.u32 %v8002_v60, %v6431_v59 }
  0xab   :  { %v8708_v6 = vadd.f32 %v578_v38, %v510_v63  ;;  %v8036_v63 = vld [vmem:[%s12309_s1 + $0x394] sm:$0xf0] }
  0xac   :  { %5887 = vmatmul.msk.bf16.gmra.mxu1 %vm253_vm0, %v5828_v2 }
  0xad   :  { %1709 = vmatpush.bf16.msra.mxu1 %v6432_v62  ;;  %v7940_v62 = vld [vmem:[%s12310_s0 + $0x44] sm:$0xf0] }
  0xae   :  { %5947 = vmatmul.msk.bf16.gmra.mxu3 %vm253_vm0, %v5820_v43  ;;  %v6607_v43 = vld [vmem:[%s12309_s1 + $0x3b0] sm:$0xf] }
  0xb0   :  { %v511_v9 = vpop.f32.mrf.mxu2  ;;  %v304_v13 = vpop.f32.mrf.mxu0 }
  0xb1   :  { %v512_v11 = vadd.f32 %v511_v9, %v371_v4  ;;  %v588_v12 = vpop.f32.mrf.mxu3  ;;  %v374_v14 = vadd.f32 %v373_v44, %v304_v13  ;;  %v380_v15 = vpop.f32.mrf.mxu1  ;;  %v8038_v44 = vld [vmem:[%s12309_s1 + $0x3b4] sm:$0xf0] }
  0xb2   :  { %v6608_v47 = vor.u32 %v8038_v44, %v6607_v43  ;;  %v7906_v13 = vld [vmem:[%s12310_s0 + $0x34] sm:$0xf0]  ;;  %v6595_v43 = vld [vmem:[%s12309_s1 + $0x380] sm:$0xf] }
  0xb3   :  { %v8718_v16 = vadd.f32 %v580_v42, %v512_v11  ;;  %343 = vmatmul.bf16.gmra.mxu0 %v5816_v10  ;;  %v6440_v42 = vor.u32 %v8004_v41, %v6439_v40  ;;  %v6427_v41 = vld [vmem:[%s12309_s1 + $0x2e0] sm:$0xf] }
  0xb4   :  { %2195 = vmatpush.bf16.msra.mxu2 %v6608_v47  ;;  %v5987_v47 = vld [vmem:[%s12310_s0 + $0x40] sm:$0xf] }
  0xb5   :  { %553 = vmatmul.bf16.gmra.mxu2 %v5808_v53  ;;  %1784 = vmatpush.bf16.msra.mxu3 %v6440_v42  ;;  %v8001_v42 = vld [vmem:[%s12309_s1 + $0x2e4] sm:$0xf0] }
  0xb6   :  { %v6428_v44 = vor.u32 %v8001_v42, %v6427_v41 }
  0xb8   :  { %v514_v22 = vpop.f32.mrf.mxu2  ;;  %v306_v25 = vpop.f32.mrf.mxu0  ;;  %1710 = vmatpush.bf16.msra.mxu1 %v6428_v44 }
  0xb9   :  { %v515_v23 = vadd.f32 %v514_v22, %v374_v14  ;;  %v590_v24 = vpop.f32.mrf.mxu3  ;;  %v376_v27 = vadd.f32 %v375_v57, %v306_v25  ;;  %v383_v28 = vpop.f32.mrf.mxu1  ;;  %v5976_v57 = vor.u32 %v7903_v48, %v5973_v49  ;;  %v7905_v14 = vld [vmem:[%s12310_s0 + $0x34] sm:$0xf]  ;;  %v7908_v48 = vld [vmem:[%s12310_s0 + $0x44] sm:$0xf0]  ;;  %v7907_v49 = vld [vmem:[%s12310_s0 + $0x44] sm:$0xf] }
  0xbb   :  { %v8732_v29 = vadd.f32 %v583_v54, %v515_v23  ;;  %v5972_v54 = vor.u32 %v7904_v46, %v5971_v45  ;;  %v8035_v45 = vld [vmem:[%s12309_s1 + $0x384] sm:$0xf0] }
  0xbc   :  { %5888 = vmatmul.msk.bf16.gmra.mxu1 %vm253_vm0, %v5836_v26  ;;  %v6139_v26 = vld [vmem:[%s12310_s0 + $0x30] sm:$0xf]  ;;  %v6596_v46 = vor.u32 %v8035_v45, %v6595_v43 }
  0xbe   :  { %5948 = vmatmul.msk.bf16.gmra.mxu3 %vm253_vm0, %v5828_v2  ;;  %v6600_v2 = vor.u32 %v8036_v63, %v6599_v61  ;;  %v6147_v61 = vld [vmem:[%s12310_s0 + $0x40] sm:$0xf]  ;;  %v7939_v63 = vld [vmem:[%s12310_s0 + $0x44] sm:$0xf] }
  0xc0   :  { %v516_v32 = vpop.f32.mrf.mxu2  ;;  %v309_v36 = vpop.f32.mrf.mxu0  ;;  %2120 = vmatpush.bf16.msra.mxu0 %v6600_v2  ;;  %v6148_v2 = vor.u32 %v7940_v62, %v6147_v61 }
  0xc1   :  { %v517_v34 = vadd.f32 %v516_v32, %v376_v27  ;;  %v593_v35 = vpop.f32.mrf.mxu3  ;;  %v379_v37 = vadd.f32 %v378_v5, %v309_v36  ;;  %v385_v38 = vpop.f32.mrf.mxu1  ;;  %v7938_v27 = vld [vmem:[%s12310_s0 + $0x34] sm:$0xf0] }
  0xc2   :  { %v6140_v32 = vor.u32 %v7938_v27, %v6139_v26  ;;  %v6423_v27 = vld [vmem:[%s12309_s1 + $0x2d0] sm:$0xf] }
  0xc3   :  { %v8742_v39 = vadd.f32 %v585_v0, %v517_v34  ;;  %348 = vmatmul.bf16.gmra.mxu0 %v5824_v33  ;;  %v5831_v0 = vld [vmem:[%s12310_s0 + $0xc0] sm:$0xf] }
  0xc4   :  { %v5832_v4 = vor.u32 %v7892_v1, %v5831_v0  ;;  %2121 = vmatpush.bf16.msra.mxu0 %v6596_v46  ;;  %v6149_v0 = vld [vmem:[%s12310_s0 + $0x48] sm:$0xf0] }
  0xc5   :  { %558 = vmatmul.bf16.gmra.mxu2 %v5816_v10 }
  0xc8   :  { %v519_v50 = vpop.f32.mrf.mxu2  ;;  %v311_v53 = vpop.f32.mrf.mxu0 }
  0xc9   :  { %v520_v51 = vadd.f32 %v519_v50, %v379_v37  ;;  %v595_v52 = vpop.f32.mrf.mxu3  ;;  %v381_v55 = vadd.f32 %v380_v15, %v311_v53  ;;  %v388_v56 = vpop.f32.mrf.mxu1  ;;  %v5981_v15 = vld [vmem:[%s12310_s0 + $0x38] sm:$0xf0]  ;;  %v5989_v50 = vld [vmem:[%s12310_s0 + $0x48] sm:$0xf0] }
  0xca   :  { %v5992_v59 = vor.u32 %v7907_v49, %v5989_v50  ;;  %v6003_v49 = vld [vmem:[%s12310_s0 + $0x60] sm:$0xf]  ;;  %v7912_v50 = vld [vmem:[%s12310_s0 + $0x64] sm:$0xf0] }
  0xcb   :  { %v8768_v58 = vadd.f32 %v588_v12, %v520_v51  ;;  %v5979_v12 = vld [vmem:[%s12310_s0 + $0x30] sm:$0xf] }
  0xcc   :  { %895 = vmatmul.bf16.vlgmr.msrb.gmra.mxu1 %v5972_v54  ;;  %v5980_v21 = vor.u32 %v7906_v13, %v5979_v12  ;;  %v5995_v12 = vld [vmem:[%s12310_s0 + $0x50] sm:$0xf]  ;;  %v7910_v13 = vld [vmem:[%s12310_s0 + $0x54] sm:$0xf0] }
  0xce   :  { %6105 = vmatmul.msk.bf16.vlgmr.msrb.gmra.mxu3 %vm253_vm0, %v5976_v57 }
  0xd0   :  { %v521_v3 = vpop.f32.mrf.mxu2  ;;  %v314_v8 = vpop.f32.mrf.mxu0 }
  0xd1   :  { %v522_v5 = vadd.f32 %v521_v3, %v381_v55  ;;  %v598_v7 = vpop.f32.mrf.mxu3  ;;  %v384_v9 = vadd.f32 %v383_v28, %v314_v8  ;;  %v390_v10 = vpop.f32.mrf.mxu1  ;;  %v7937_v28 = vld [vmem:[%s12310_s0 + $0x34] sm:$0xf]  ;;  %v5988_v55 = vor.u32 %v7908_v48, %v5987_v47 }
  0xd2   :  { %v6144_v36 = vor.u32 %v7937_v28, %v6141_v30  ;;  %v8000_v28 = vld [vmem:[%s12309_s1 + $0x2d4] sm:$0xf0]  ;;  %v6591_v30 = vld [vmem:[%s12309_s1 + $0x370] sm:$0xf] }
  0xd3   :  { %v8789_v11 = vadd.f32 %v590_v24, %v522_v5  ;;  %353 = vmatmul.bf16.gmra.mxu0 %v5832_v4  ;;  %v5984_v24 = vor.u32 %v7905_v14, %v5981_v15  ;;  %v7909_v14 = vld [vmem:[%s12310_s0 + $0x54] sm:$0xf]  ;;  %v5997_v15 = vld [vmem:[%s12310_s0 + $0x58] sm:$0xf0] }
  0xd5   :  { %563 = vmatmul.bf16.gmra.mxu2 %v5824_v33 }
  0xd8   :  { %v524_v17 = vpop.f32.mrf.mxu2  ;;  %v316_v20 = vpop.f32.mrf.mxu0 }
  0xd9   :  { %v525_v18 = vadd.f32 %v524_v17, %v384_v9  ;;  %v600_v19 = vpop.f32.mrf.mxu3  ;;  %v386_v22 = vadd.f32 %v385_v38, %v316_v20  ;;  %v393_v23 = vpop.f32.mrf.mxu1 }
  0xdb   :  { %v8803_v25 = vadd.f32 %v593_v35, %v525_v18 }
  0xdc   :  { %900 = vmatmul.bf16.gmra.mxu1 %v5980_v21  ;;  %v5996_v21 = vor.u32 %v7910_v13, %v5995_v12 }
  0xde   :  { %6106 = vmatmul.msk.bf16.gmra.mxu3 %vm253_vm0, %v5984_v24  ;;  %v6000_v24 = vor.u32 %v7909_v14, %v5997_v15 }
  0xe0   :  { %v526_v31 = vpop.f32.mrf.mxu2  ;;  %v319_v35 = vpop.f32.mrf.mxu0 }
  0xe1   :  { %v527_v33 = vadd.f32 %v526_v31, %v386_v22  ;;  %v603_v34 = vpop.f32.mrf.mxu3  ;;  %v389_v37 = vadd.f32 %v388_v56, %v319_v35  ;;  %v395_v38 = vpop.f32.mrf.mxu1  ;;  %v6424_v31 = vor.u32 %v8000_v28, %v6423_v27  ;;  %v7913_v27 = vld [vmem:[%s12310_s0 + $0x74] sm:$0xf]  ;;  %v6013_v28 = vld [vmem:[%s12310_s0 + $0x78] sm:$0xf0] }
  0xe3   :  { %v8818_v40 = vadd.f32 %v595_v52, %v527_v33  ;;  %1306 = vmatmul.bf16.vlgmr.msrb.gmra.mxu0 %v6140_v32  ;;  %v8034_v32 = vld [vmem:[%s12309_s1 + $0x374] sm:$0xf0]  ;;  %v6155_v33 = vld [vmem:[%s12310_s0 + $0x50] sm:$0xf]  ;;  %1711 = vmatpush.bf16.msra.mxu1 %v6424_v31 }
  0xe4   :  { %v6592_v35 = vor.u32 %v8034_v32, %v6591_v30 }
  0xe5   :  { %6273 = vmatmul.msk.bf16.vlgmr.msrb.gmra.mxu2 %vm253_vm0, %v6144_v36  ;;  %v7941_v36 = vld [vmem:[%s12310_s0 + $0x54] sm:$0xf] }
  0xe6   :  { %2122 = vmatpush.bf16.msra.mxu0 %v6592_v35 }
  0xe8   :  { %v529_v51 = vpop.f32.mrf.mxu2  ;;  %v321_v54 = vpop.f32.mrf.mxu0 }
  0xe9   :  { %v530_v52 = vadd.f32 %v529_v51, %v389_v37  ;;  %v605_v53 = vpop.f32.mrf.mxu3  ;;  %v391_v56 = vadd.f32 %v390_v10, %v321_v54  ;;  %v398_v57 = vpop.f32.mrf.mxu1  ;;  %v6157_v37 = vld [vmem:[%s12310_s0 + $0x58] sm:$0xf0]  ;;  %v7911_v51 = vld [vmem:[%s12310_s0 + $0x64] sm:$0xf] }
  0xea   :  { %v6160_v45 = vor.u32 %v7941_v36, %v6157_v37  ;;  %v6016_v37 = vor.u32 %v7913_v27, %v6013_v28  ;;  %v7947_v28 = vld [vmem:[%s12310_s0 + $0x84] sm:$0xf] }
  0xeb   :  { %v8845_v60 = vadd.f32 %v598_v7, %v530_v52  ;;  %v6152_v7 = vor.u32 %v7939_v63, %v6149_v0  ;;  %v6005_v52 = vld [vmem:[%s12310_s0 + $0x68] sm:$0xf0]  ;;  %v6163_v0 = vld [vmem:[%s12310_s0 + $0x60] sm:$0xf] }
  0xec   :  { %905 = vmatmul.bf16.gmra.mxu1 %v5988_v55  ;;  %v6008_v62 = vor.u32 %v7911_v51, %v6005_v52 }
  0xee   :  { %6107 = vmatmul.msk.bf16.gmra.mxu3 %vm253_vm0, %v5992_v59 }
  0xf0   :  { %v531_v1 = vpop.f32.mrf.mxu2  ;;  %v324_v5 = vpop.f32.mrf.mxu0 }
  0xf1   :  { %v532_v3 = vadd.f32 %v531_v1, %v391_v56  ;;  %v608_v4 = vpop.f32.mrf.mxu3  ;;  %v394_v8 = vadd.f32 %v393_v23, %v324_v5  ;;  %v400_v9 = vpop.f32.mrf.mxu1  ;;  %v7944_v1 = vld [vmem:[%s12310_s0 + $0x64] sm:$0xf0] }
  0xf2   :  { %v6164_v5 = vor.u32 %v7944_v1, %v6163_v0  ;;  %v7916_v0 = vld [vmem:[%s12310_s0 + $0x84] sm:$0xf0] }
  0xf3   :  { %v8860_v10 = vadd.f32 %v600_v19, %v532_v3  ;;  %1311 = vmatmul.bf16.gmra.mxu0 %v6148_v2  ;;  %v7943_v2 = vld [vmem:[%s12310_s0 + $0x64] sm:$0xf]  ;;  %v6165_v3 = vld [vmem:[%s12310_s0 + $0x68] sm:$0xf0] }
  0xf4   :  { %v6168_v12 = vor.u32 %v7943_v2, %v6165_v3  ;;  %v7915_v2 = vld [vmem:[%s12310_s0 + $0x84] sm:$0xf]  ;;  %v6021_v3 = vld [vmem:[%s12310_s0 + $0x88] sm:$0xf0] }
  0xf5   :  { %6274 = vmatmul.msk.bf16.gmra.mxu2 %vm253_vm0, %v6152_v7 }
  0xf8   :  { %v534_v17 = vpop.f32.mrf.mxu2  ;;  %v326_v20 = vpop.f32.mrf.mxu0 }
  0xf9   :  { %v535_v18 = vadd.f32 %v534_v17, %v394_v8  ;;  %v610_v19 = vpop.f32.mrf.mxu3  ;;  %v396_v22 = vadd.f32 %v395_v38, %v326_v20  ;;  %v403_v23 = vpop.f32.mrf.mxu1  ;;  %v6419_v17 = vld [vmem:[%s12309_s1 + $0x2c0] sm:$0xf] }
  0xfa   :  { %v6587_v20 = vld [vmem:[%s12309_s1 + $0x360] sm:$0xf] }
  0xfb   :  { %v8875_v26 = vadd.f32 %v603_v34, %v535_v18  ;;  %v7942_v34 = vld [vmem:[%s12310_s0 + $0x54] sm:$0xf0]  ;;  %v7999_v18 = vld [vmem:[%s12309_s1 + $0x2c4] sm:$0xf0] }
  0xfc   :  { %910 = vmatmul.bf16.gmra.mxu1 %v5996_v21  ;;  %v6156_v41 = vor.u32 %v7942_v34, %v6155_v33  ;;  %v6420_v21 = vor.u32 %v7999_v18, %v6419_v17  ;;  %v6024_v18 = vor.u32 %v7915_v2, %v6021_v3 }
  0xfe   :  { %6108 = vmatmul.msk.bf16.gmra.mxu3 %vm253_vm0, %v6000_v24  ;;  %v7914_v24 = vld [vmem:[%s12310_s0 + $0x74] sm:$0xf0]  ;;  %1712 = vmatpush.bf16.msra.mxu1 %v6420_v21  ;;  %v6415_v21 = vld [vmem:[%s12309_s1 + $0x2b0] sm:$0xf] }
 0x100   :  { %v536_v38 = vpop.f32.mrf.mxu2  ;;  %v329_v44 = vpop.f32.mrf.mxu0 }
 0x101   :  { %v537_v42 = vadd.f32 %v536_v38, %v396_v22  ;;  %v613_v43 = vpop.f32.mrf.mxu3  ;;  %v399_v46 = vadd.f32 %v398_v57, %v329_v44  ;;  %v405_v47 = vpop.f32.mrf.mxu1  ;;  %v6004_v57 = vor.u32 %v7912_v50, %v6003_v49  ;;  %v8033_v22 = vld [vmem:[%s12309_s1 + $0x364] sm:$0xf0]  ;;  %v7945_v44 = vld [vmem:[%s12310_s0 + $0x74] sm:$0xf] }
 0x103   :  { %v8902_v48 = vadd.f32 %v605_v53, %v537_v42  ;;  %1316 = vmatmul.bf16.gmra.mxu0 %v6156_v41  ;;  %v6171_v41 = vld [vmem:[%s12310_s0 + $0x70] sm:$0xf]  ;;  %v7946_v42 = vld [vmem:[%s12310_s0 + $0x74] sm:$0xf0] }
 0x105   :  { %6275 = vmatmul.msk.bf16.gmra.mxu2 %vm253_vm0, %v6160_v45 }
 0x108   :  { %v539_v53 = vpop.f32.mrf.mxu2  ;;  %v331_v56 = vpop.f32.mrf.mxu0 }
 0x109   :  { %v540_v54 = vadd.f32 %v539_v53, %v399_v46  ;;  %v615_v55 = vpop.f32.mrf.mxu3  ;;  %v401_v59 = vadd.f32 %v400_v9, %v331_v56  ;;  %v408_v61 = vpop.f32.mrf.mxu1  ;;  %v6172_v46 = vor.u32 %v7946_v42, %v6171_v41  ;;  %v6435_v56 = vld [vmem:[%s12309_s1 + $0x300] sm:$0xf] }
 0x10b   :  { %v8917_v63 = vadd.f32 %v608_v4, %v540_v54 }
 0x10c   :  { %915 = vmatmul.bf16.gmra.mxu1 %v6004_v57  ;;  %v8003_v57 = vld [vmem:[%s12309_s1 + $0x304] sm:$0xf0] }
 0x10e   :  { %6109 = vmatmul.msk.bf16.gmra.mxu3 %vm253_vm0, %v6008_v62  ;;  %v6603_v62 = vld [vmem:[%s12309_s1 + $0x3a0] sm:$0xf] }
 0x110   :  { %v541_v4 = vpop.f32.mrf.mxu2  ;;  %v334_v9 = vpop.f32.mrf.mxu0 }
 0x111   :  { %v542_v7 = vadd.f32 %v541_v4, %v401_v59  ;;  %v8932_v8 = vpop.f32.mrf.mxu3  ;;  %v404_v13 = vadd.f32 %v403_v23, %v334_v9  ;;  %v410_v14 = vpop.f32.mrf.mxu1  ;;  %v6011_v23 = vld [vmem:[%s12310_s0 + $0x70] sm:$0xf]  ;;  %v6436_v59 = vor.u32 %v8003_v57, %v6435_v56 }
 0x112   :  { %v6012_v34 = vor.u32 %v7914_v24, %v6011_v23  ;;  %v7948_v24 = vld [vmem:[%s12310_s0 + $0x84] sm:$0xf0] }
 0x113   :  { %v8934_v15 = vadd.f32 %v610_v19, %v542_v7  ;;  %1321 = vmatmul.bf16.gmra.mxu0 %v6164_v5  ;;  %v6588_v19 = vor.u32 %v8033_v22, %v6587_v20  ;;  %1785 = vmatpush.bf16.msra.mxu3 %v6436_v59  ;;  %v7998_v22 = vld [vmem:[%s12309_s1 + $0x2b4] sm:$0xf0] }
 0x114   :  { %v6416_v23 = vor.u32 %v7998_v22, %v6415_v21  ;;  %v6411_v21 = vld [vmem:[%s12309_s1 + $0x2a0] sm:$0xf]  ;;  %v7997_v22 = vld [vmem:[%s12309_s1 + $0x2a4] sm:$0xf0] }
 0x115   :  { %6276 = vmatmul.msk.bf16.gmra.mxu2 %vm253_vm0, %v6168_v12  ;;  %2123 = vmatpush.bf16.msra.mxu0 %v6588_v19  ;;  %v6583_v19 = vld [vmem:[%s12309_s1 + $0x350] sm:$0xf] }
 0x116   :  { %1713 = vmatpush.bf16.msra.mxu1 %v6416_v23  ;;  %v6412_v23 = vor.u32 %v7997_v22, %v6411_v21 }
 0x118   :  { %v544_v30 = vpop.f32.mrf.mxu2  ;;  %v336_v33 = vpop.f32.mrf.mxu0 }
 0x119   :  { %v545_v31 = vadd.f32 %v544_v30, %v404_v13  ;;  %v8961_v32 = vpop.f32.mrf.mxu3  ;;  %v406_v35 = vadd.f32 %v405_v47, %v336_v33  ;;  %v413_v36 = vpop.f32.mrf.mxu1  ;;  %v6181_v30 = vld [vmem:[%s12310_s0 + $0x88] sm:$0xf0] }
 0x11a   :  { %v6184_v41 = vor.u32 %v7947_v28, %v6181_v30  ;;  %1714 = vmatpush.bf16.msra.mxu1 %v6412_v23 }
 0x11b   :  { %v8963_v38 = vadd.f32 %v613_v43, %v545_v31  ;;  %v6173_v43 = vld [vmem:[%s12310_s0 + $0x78] sm:$0xf0] }
 0x11c   :  { %920 = vmatmul.bf16.gmra.mxu1 %v6012_v34  ;;  %v6176_v51 = vor.u32 %v7945_v44, %v6173_v43 }
 0x11e   :  { %6110 = vmatmul.msk.bf16.gmra.mxu3 %vm253_vm0, %v6016_v37 }
 0x120   :  { %v546_v45 = vpop.f32.mrf.mxu2  ;;  %v339_v50 = vpop.f32.mrf.mxu0 }
 0x121   :  { %v547_v47 = vadd.f32 %v546_v45, %v406_v35  ;;  %v8978_v49 = vpop.f32.mrf.mxu3  ;;  %v409_v52 = vadd.f32 %v408_v61, %v339_v50  ;;  %v415_v53 = vpop.f32.mrf.mxu1  ;;  %v6019_v61 = vld [vmem:[%s12310_s0 + $0x80] sm:$0xf]  ;;  %v6027_v45 = vld [vmem:[%s12310_s0 + $0x90] sm:$0xf] }
 0x122   :  { %v6020_v12 = vor.u32 %v7916_v0, %v6019_v61  ;;  %v6187_v61 = vld [vmem:[%s12310_s0 + $0x90] sm:$0xf]  ;;  %v7950_v0 = vld [vmem:[%s12310_s0 + $0x94] sm:$0xf0] }
 0x123   :  { %v8980_v54 = vadd.f32 %v615_v55, %v547_v47  ;;  %1326 = vmatmul.bf16.gmra.mxu0 %v6172_v46  ;;  %v8037_v55 = vld [vmem:[%s12309_s1 + $0x3a4] sm:$0xf0]  ;;  %v7918_v46 = vld [vmem:[%s12310_s0 + $0x94] sm:$0xf0]  ;;  %v7917_v47 = vld [vmem:[%s12310_s0 + $0x94] sm:$0xf]  ;;  %v6188_v2 = vor.u32 %v7950_v0, %v6187_v61 }
 0x124   :  { %v6604_v1 = vor.u32 %v8037_v55, %v6603_v62  ;;  %v6028_v56 = vor.u32 %v7918_v46, %v6027_v45  ;;  %v6195_v46 = vld [vmem:[%s12310_s0 + $0xa0] sm:$0xf] }
 0x125   :  { %6277 = vmatmul.msk.bf16.gmra.mxu2 %vm253_vm0, %v6176_v51 }
 0x126   :  { %2196 = vmatpush.bf16.msra.mxu2 %v6604_v1 }
 0x128   :  { %v549_v4 = vpop.f32.mrf.mxu2  ;;  %v341_v9 = vpop.f32.mrf.mxu0 }
 0x129   :  { %v550_v5 = vadd.f32 %v549_v4, %v409_v52  ;;  %v625_v7 = vpop.f32.mrf.mxu3  ;;  %v411_v13 = vadd.f32 %v410_v14, %v341_v9  ;;  %v418_v17 = vpop.f32.mrf.mxu1  ;;  %v8032_v14 = vld [vmem:[%s12309_s1 + $0x354] sm:$0xf0] }
 0x12a   :  { %v6584_v27 = vor.u32 %v8032_v14, %v6583_v19  ;;  %v6579_v19 = vld [vmem:[%s12309_s1 + $0x340] sm:$0xf]  ;;  %v7920_v14 = vld [vmem:[%s12310_s0 + $0xa4] sm:$0xf0] }
 0x12b   :  { %v9008_v20 = vadd.f32 %v8932_v8, %v550_v5  ;;  %v6179_v8 = vld [vmem:[%s12310_s0 + $0x80] sm:$0xf] }
 0x12c   :  { %925 = vmatmul.bf16.gmra.mxu1 %v6020_v12  ;;  %2124 = vmatpush.bf16.msra.mxu0 %v6584_v27  ;;  %v6180_v33 = vor.u32 %v7948_v24, %v6179_v8  ;;  %v7919_v24 = vld [vmem:[%s12310_s0 + $0xa4] sm:$0xf]  ;;  %v6037_v27 = vld [vmem:[%s12310_s0 + $0xa8] sm:$0xf0] }
 0x12e   :  { %6111 = vmatmul.msk.bf16.gmra.mxu3 %vm253_vm0, %v6024_v18 }
 0x130   :  { %v551_v31 = vpop.f32.mrf.mxu2  ;;  %v344_v37 = vpop.f32.mrf.mxu0 }
 0x131   :  { %v552_v34 = vadd.f32 %v551_v31, %v411_v13  ;;  %v628_v35 = vpop.f32.mrf.mxu3  ;;  %v414_v42 = vadd.f32 %v413_v36, %v344_v37  ;;  %v420_v44 = vpop.f32.mrf.mxu1 }
 0x133   :  { %v9036_v43 = vadd.f32 %v8961_v32, %v552_v34  ;;  %1331 = vmatmul.bf16.gmra.mxu0 %v6180_v33  ;;  %v6029_v32 = vld [vmem:[%s12310_s0 + $0x98] sm:$0xf0] }
 0x134   :  { %v6032_v62 = vor.u32 %v7917_v47, %v6029_v32  ;;  %v7952_v47 = vld [vmem:[%s12310_s0 + $0xa4] sm:$0xf0]  ;;  %v7951_v32 = vld [vmem:[%s12310_s0 + $0xa4] sm:$0xf] }
 0x135   :  { %6278 = vmatmul.msk.bf16.gmra.mxu2 %vm253_vm0, %v6184_v41 }
 0x138   :  { %v554_v36 = vpop.f32.mrf.mxu2  ;;  %v346_v52 = vpop.f32.mrf.mxu0 }
 0x139   :  { %v555_v50 = vadd.f32 %v554_v36, %v414_v42  ;;  %v630_v51 = vpop.f32.mrf.mxu3  ;;  %v416_v57 = vadd.f32 %v415_v53, %v346_v52  ;;  %v423_v59 = vpop.f32.mrf.mxu1  ;;  %v7949_v53 = vld [vmem:[%s12310_s0 + $0x94] sm:$0xf]  ;;  %v6040_v42 = vor.u32 %v7919_v24, %v6037_v27  ;;  %v6196_v36 = vor.u32 %v7952_v47, %v6195_v46  ;;  %v6575_v24 = vld [vmem:[%s12309_s1 + $0x330] sm:$0xf]  ;;  %v8030_v27 = vld [vmem:[%s12309_s1 + $0x334] sm:$0xf0] }
 0x13b   :  { %v9052_v55 = vadd.f32 %v8978_v49, %v555_v50  ;;  %v6189_v49 = vld [vmem:[%s12310_s0 + $0x98] sm:$0xf0] }
 0x13c   :  { %930 = vmatmul.bf16.gmra.mxu1 %v6028_v56  ;;  %v6192_v9 = vor.u32 %v7949_v53, %v6189_v49 }
 0x13e   :  { %6112 = vmatmul.msk.bf16.gmra.mxu3 %vm253_vm0, %v6032_v62 }
 0x140   :  { %v556_v1 = vpop.f32.mrf.mxu2  ;;  %v349_v5 = vpop.f32.mrf.mxu0 }
 0x141   :  { %v557_v3 = vadd.f32 %v556_v1, %v416_v57  ;;  %v633_v4 = vpop.f32.mrf.mxu3  ;;  %v419_v12 = vadd.f32 %v418_v17, %v349_v5  ;;  %v425_v13 = vpop.f32.mrf.mxu1  ;;  %v6035_v17 = vld [vmem:[%s12310_s0 + $0xa0] sm:$0xf]  ;;  %v6043_v1 = vld [vmem:[%s12310_s0 + $0xb0] sm:$0xf] }
 0x142   :  { %v6036_v34 = vor.u32 %v7920_v14, %v6035_v17  ;;  %v6407_v14 = vld [vmem:[%s12309_s1 + $0x290] sm:$0xf] }
 0x143   :  { %v9067_v18 = vadd.f32 %v625_v7, %v557_v3  ;;  %1336 = vmatmul.bf16.gmra.mxu0 %v6188_v2  ;;  %v8031_v7 = vld [vmem:[%s12309_s1 + $0x344] sm:$0xf0]  ;;  %v7922_v2 = vld [vmem:[%s12310_s0 + $0xb4] sm:$0xf0] }
 0x144   :  { %v6580_v8 = vor.u32 %v8031_v7, %v6579_v19 }
 0x145   :  { %6279 = vmatmul.msk.bf16.gmra.mxu2 %vm253_vm0, %v6192_v9 }
 0x146   :  { %2125 = vmatpush.bf16.msra.mxu0 %v6580_v8  ;;  %v7996_v8 = vld [vmem:[%s12309_s1 + $0x294] sm:$0xf0] }
 0x148   :  { %v559_v28 = vpop.f32.mrf.mxu2  ;;  %v351_v33 = vpop.f32.mrf.mxu0 }
 0x149   :  { %v560_v30 = vadd.f32 %v559_v28, %v419_v12  ;;  %v9094_v31 = vpop.f32.mrf.mxu3  ;;  %v421_v37 = vadd.f32 %v420_v44, %v351_v33  ;;  %v896_v41 = vpop.f32.mrf.mxu1  ;;  %v6044_v12 = vor.u32 %v7922_v2, %v6043_v1  ;;  %v7953_v28 = vld [vmem:[%s12310_s0 + $0xb4] sm:$0xf]  ;;  %v6576_v33 = vor.u32 %v8030_v27, %v6575_v24 }
 0x14b   :  { %v9096_v45 = vadd.f32 %v628_v35, %v560_v30  ;;  %v6197_v35 = vld [vmem:[%s12310_s0 + $0xa8] sm:$0xf0]  ;;  %v6205_v30 = vld [vmem:[%s12310_s0 + $0xb8] sm:$0xf0]  ;;  %2126 = vmatpush.bf16.msra.mxu0 %v6576_v33 }
 0x14c   :  { %935 = vmatmul.bf16.gmra.mxu1 %v6036_v34  ;;  %v6200_v57 = vor.u32 %v7951_v32, %v6197_v35  ;;  %v6208_v47 = vor.u32 %v7953_v28, %v6205_v30  ;;  %v6571_v28 = vld [vmem:[%s12309_s1 + $0x320] sm:$0xf]  ;;  %v8029_v30 = vld [vmem:[%s12309_s1 + $0x324] sm:$0xf0] }
 0x14d   :  { %v6572_v33 = vor.u32 %v8029_v30, %v6571_v28 }
 0x14e   :  { %6113 = vmatmul.msk.bf16.gmra.mxu3 %vm253_vm0, %v6040_v42 }
 0x14f   :  { %2127 = vmatpush.bf16.msra.mxu0 %v6572_v33 }
 0x150   :  { %v561_v44 = vpop.f32.mrf.mxu2  ;;  %v354_v56 = vpop.f32.mrf.mxu0 }
 0x151   :  { %v562_v50 = vadd.f32 %v561_v44, %v421_v37  ;;  %v965_v52 = vpop.f32.mrf.mxu3  ;;  %v424_v61 = vadd.f32 %v423_v59, %v354_v56  ;;  %v898_v0 = vpop.f32.mrf.mxu1  ;;  %v7921_v59 = vld [vmem:[%s12310_s0 + $0xb4] sm:$0xf]  ;;  %v7923_v56 = vld [vmem:[%s12310_s0 + $0xc4] sm:$0xf] }
 0x152   :  { %v966_v62 = vadd.f32 %v965_v52, %v896_v41  ;;  %v7924_v52 = vld [vmem:[%s12310_s0 + $0xc4] sm:$0xf0] }
 0x153   :  { %v9111_v53 = vadd.f32 %v630_v51, %v562_v50  ;;  %1341 = vmatmul.bf16.gmra.mxu0 %v6196_v36  ;;  %v6045_v51 = vld [vmem:[%s12310_s0 + $0xb8] sm:$0xf0]  ;;  %v6051_v50 = vld [vmem:[%s12310_s0 + $0xc0] sm:$0xf] }
 0x154   :  { %v1025_v49 = vadd.f32 %v966_v62, %v8708_v6  ;;  %v6048_v23 = vor.u32 %v7921_v59, %v6045_v51  ;;  %v7995_v62 = vld [vmem:[%s12309_s1 + $0x284] sm:$0xf0]  ;;  %v6052_v2 = vor.u32 %v7924_v52, %v6051_v50 }
 0x155   :  { %6280 = vmatmul.msk.bf16.gmra.mxu2 %vm253_vm0, %v6200_v57  ;;  %v6403_v57 = vld [vmem:[%s12309_s1 + $0x280] sm:$0xf] }
 0x156   :  { %v6404_v59 = vor.u32 %v7995_v62, %v6403_v57  ;;  %v7958_v57 = vld [vmem:[%s12310_s0 + $0xd4] sm:$0xf0]  ;;  %v7957_v62 = vld [vmem:[%s12310_s0 + $0xd4] sm:$0xf] }
 0x158   :  { %v564_v6 = vpop.f32.mrf.mxu2  ;;  %v356_v9 = vpop.f32.mrf.mxu0 }
 0x159   :  { %v565_v3 = vadd.f32 %v564_v6, %v424_v61  ;;  %v967_v5 = vpop.f32.mrf.mxu3  ;;  %v426_v22 = vadd.f32 %v425_v13, %v356_v9  ;;  %v901_v19 = vpop.f32.mrf.mxu1  ;;  %v6408_v13 = vor.u32 %v7996_v8, %v6407_v14 }
 0x15a   :  { %v968_v21 = vadd.f32 %v967_v5, %v898_v0 }
 0x15b   :  { %v9127_v7 = vadd.f32 %v633_v4, %v565_v3  ;;  %v6203_v4 = vld [vmem:[%s12310_s0 + $0xb0] sm:$0xf]  ;;  %1715 = vmatpush.bf16.msra.mxu1 %v6408_v13 }
 0x15c   :  { %v1026_v17 = vadd.f32 %v968_v21, %v8718_v16  ;;  %940 = vmatmul.bf16.gmra.mxu1 %v6044_v12  ;;  %v7954_v16 = vld [vmem:[%s12310_s0 + $0xb4] sm:$0xf0]  ;;  %v6211_v12 = vld [vmem:[%s12310_s0 + $0xc0] sm:$0xf]  ;;  %v7956_v21 = vld [vmem:[%s12310_s0 + $0xc4] sm:$0xf0] }
 0x15d   :  { %v6204_v37 = vor.u32 %v7954_v16, %v6203_v4 }
 0x15e   :  { %6114 = vmatmul.msk.bf16.gmra.mxu3 %vm253_vm0, %v6048_v23 }
 0x15f   :  { %1716 = vmatpush.bf16.msra.mxu1 %v6404_v59 }
 0x160   :  { %v566_v34 = vpop.f32.mrf.mxu2  ;;  %v1307_v46 = vpop.f32.mrf.mxu0 }
 0x161   :  { %v567_v41 = vadd.f32 %v566_v34, %v426_v22  ;;  %v970_v42 = vpop.f32.mrf.mxu3  ;;  %v903_v35 = vpop.f32.mrf.mxu1  ;;  %v7955_v22 = vld [vmem:[%s12310_s0 + $0xc4] sm:$0xf]  ;;  %v6059_v34 = vld [vmem:[%s12310_s0 + $0xd0] sm:$0xf] }
 0x162   :  { %v971_v32 = vadd.f32 %v970_v42, %v901_v19  ;;  %v6212_v19 = vor.u32 %v7956_v21, %v6211_v12  ;;  %v6775_v21 = vld [vmem:[%s12309_s1 + $0x450] sm:$0xf] }
 0x163   :  { %v9156_v44 = vadd.f32 %v9094_v31, %v567_v41  ;;  %1346 = vmatmul.bf16.gmra.mxu0 %v6204_v37  ;;  %v6053_v31 = vld [vmem:[%s12310_s0 + $0xc8] sm:$0xf0]  ;;  %v6061_v37 = vld [vmem:[%s12310_s0 + $0xd8] sm:$0xf0] }
 0x164   :  { %v1027_v36 = vadd.f32 %v971_v32, %v8732_v29  ;;  %v6056_v3 = vor.u32 %v7923_v56, %v6053_v31 }
 0x165   :  { %6281 = vmatmul.msk.bf16.gmra.mxu2 %vm253_vm0, %v6208_v47 }
 0x168   :  { %v1376_v29 = vpop.f32.mrf.mxu2  ;;  %v1309_v1 = vpop.f32.mrf.mxu0 }
 0x169   :  { %v972_v61 = vpop.f32.mrf.mxu3  ;;  %v1377_v0 = vadd.f32 %v1376_v29, %v1307_v46  ;;  %v906_v6 = vpop.f32.mrf.mxu1  ;;  %v6219_v29 = vld [vmem:[%s12310_s0 + $0xd0] sm:$0xf] }
 0x16a   :  { %v973_v51 = vadd.f32 %v972_v61, %v903_v35  ;;  %v6220_v61 = vor.u32 %v7958_v57, %v6219_v29 }
 0x16b   :  { %v9178_v5 = vadd.f32 %v1377_v0, %v1025_v49  ;;  %v6213_v49 = vld [vmem:[%s12310_s0 + $0xc8] sm:$0xf0] }
 0x16c   :  { %v1028_v9 = vadd.f32 %v973_v51, %v8742_v39  ;;  %945 = vmatmul.bf16.gmra.mxu1 %v6052_v2  ;;  %v6216_v24 = vor.u32 %v7955_v22, %v6213_v49  ;;  %v8072_v22 = vld [vmem:[%s12309_s1 + $0x454] sm:$0xf0] }
 0x16d   :  { %v6776_v49 = vor.u32 %v8072_v22, %v6775_v21  ;;  %v7973_v21 = vld [vmem:[%s12310_s0 + $0x54] sm:$0xf] }
 0x16e   :  { %6115 = vmatmul.msk.bf16.gmra.mxu3 %vm253_vm0, %v6056_v3 }
 0x16f   :  { %2606 = vmatpush.bf16.msrb.mxu3 %v6776_v49 }
 0x170   :  { %v1378_v39 = vpop.f32.mrf.mxu2  ;;  %v1312_v8 = vpop.f32.mrf.mxu0 }
 0x171   :  { %v975_v23 = vpop.f32.mrf.mxu3  ;;  %v1379_v14 = vadd.f32 %v1378_v39, %v1309_v1  ;;  %v908_v16 = vpop.f32.mrf.mxu1  ;;  %v6307_v39 = vld [vmem:[%s12310_s0 + $0x40] sm:$0xf] }
 0x172   :  { %v976_v4 = vadd.f32 %v975_v23, %v906_v6 }
 0x173   :  { %v9194_v13 = vadd.f32 %v1379_v14, %v1026_v17  ;;  %1351 = vmatmul.bf16.gmra.mxu0 %v6212_v19  ;;  %v7925_v17 = vld [vmem:[%s12310_s0 + $0xd4] sm:$0xf]  ;;  %v7972_v19 = vld [vmem:[%s12310_s0 + $0x44] sm:$0xf0]  ;;  %v7971_v14 = vld [vmem:[%s12310_s0 + $0x44] sm:$0xf] }
 0x174   :  { %v1029_v27 = vadd.f32 %v976_v4, %v8768_v58  ;;  %v7926_v58 = vld [vmem:[%s12310_s0 + $0xd4] sm:$0xf0]  ;;  %v6064_v52 = vor.u32 %v7925_v17, %v6061_v37  ;;  %v6308_v30 = vor.u32 %v7972_v19, %v6307_v39 }
 0x175   :  { %6282 = vmatmul.msk.bf16.gmra.mxu2 %vm253_vm0, %v6216_v24  ;;  %v6060_v32 = vor.u32 %v7926_v58, %v6059_v34 }
 0x178   :  { %v1381_v41 = vpop.f32.mrf.mxu2  ;;  %v1314_v47 = vpop.f32.mrf.mxu0 }
 0x179   :  { %v977_v42 = vpop.f32.mrf.mxu3  ;;  %v1382_v46 = vadd.f32 %v1381_v41, %v1312_v8  ;;  %v911_v50 = vpop.f32.mrf.mxu1  ;;  %v6309_v8 = vld [vmem:[%s12310_s0 + $0x48] sm:$0xf0]  ;;  %v6767_v41 = vld [vmem:[%s12309_s1 + $0x430] sm:$0xf] }
 0x17a   :  { %v978_v35 = vadd.f32 %v977_v42, %v908_v16  ;;  %v6312_v58 = vor.u32 %v7971_v14, %v6309_v8  ;;  %v8070_v42 = vld [vmem:[%s12309_s1 + $0x434] sm:$0xf0] }
 0x17b   :  { %v9216_v56 = vadd.f32 %v1382_v46, %v1027_v36  ;;  %v6935_v46 = vld [vmem:[%s12309_s1 + $0x114] sm:$0xf] }
 0x17c   :  { %v9219_v31 = vadd.f32 %v978_v35, %v8789_v11  ;;  %950 = vmatmul.bf16.gmra.mxu1 %v6060_v32  ;;  %v6221_v11 = vld [vmem:[%s12310_s0 + $0xd8] sm:$0xf0]  ;;  %v7959_v35 = vld [vmem:[%s12310_s0 + $0xe4] sm:$0xf] }
 0x17d   :  { %v6224_v59 = vor.u32 %v7957_v62, %v6221_v11  ;;  %v8116_v32 = vld [vmem:[%s12309_s1 + $0x118] sm:$0xf0] }
 0x17e   :  { %6116 = vmatmul.msk.bf16.gmra.mxu3 %vm253_vm0, %v6064_v52  ;;  %v6936_v52 = vor.u32 %v8116_v32, %v6935_v46  ;;  %v6931_v32 = vld [vmem:[%s12309_s1 + $0x104] sm:$0xf] }
 0x180   :  { %v1383_v36 = vpop.f32.mrf.mxu2  ;;  %v1317_v2 = vpop.f32.mrf.mxu0  ;;  %3141 = vmatpush.bf16.msrb.mxu0 %v6936_v52 }
 0x181   :  { %v980_v0 = vpop.f32.mrf.mxu3  ;;  %v1384_v1 = vadd.f32 %v1383_v36, %v1314_v47  ;;  %v913_v6 = vpop.f32.mrf.mxu1  ;;  %v6768_v47 = vor.u32 %v8070_v42, %v6767_v41 }
 0x182   :  { %v981_v51 = vadd.f32 %v980_v0, %v911_v50  ;;  %v6229_v50 = vld [vmem:[%s12310_s0 + $0xe8] sm:$0xf0] }
 0x183   :  { %v9234_v3 = vadd.f32 %v1384_v1, %v1028_v9  ;;  %1356 = vmatmul.bf16.gmra.mxu0 %v6220_v61  ;;  %v6943_v9 = vld [vmem:[%s12309_s1 + $0x134] sm:$0xf]  ;;  %2531 = vmatpush.bf16.msrb.mxu1 %v6768_v47  ;;  %v6232_v61 = vor.u32 %v7959_v35, %v6229_v50  ;;  %v8069_v47 = vld [vmem:[%s12309_s1 + $0x424] sm:$0xf0] }
 0x184   :  { %v9237_v12 = vadd.f32 %v981_v51, %v8803_v25  ;;  %v8118_v25 = vld [vmem:[%s12309_s1 + $0x138] sm:$0xf0]  ;;  %v6315_v51 = vld [vmem:[%s12310_s0 + $0x50] sm:$0xf]  ;;  %v7976_v50 = vld [vmem:[%s12310_s0 + $0x64] sm:$0xf0] }
 0x185   :  { %6283 = vmatmul.msk.bf16.gmra.mxu2 %vm253_vm0, %v6224_v59  ;;  %v6944_v23 = vor.u32 %v8118_v25, %v6943_v9 }
 0x187   :  { %3216 = vmatpush.bf16.msrb.mxu2 %v6944_v23 }
 0x188   :  { %v1386_v24 = vpop.f32.mrf.mxu2  ;;  %v1319_v28 = vpop.f32.mrf.mxu0 }
 0x189   :  { %v982_v4 = vpop.f32.mrf.mxu3  ;;  %v1387_v16 = vadd.f32 %v1386_v24, %v1317_v2  ;;  %v916_v34 = vpop.f32.mrf.mxu1  ;;  %v6475_v24 = vld [vmem:[%s12310_s0 + $0x50] sm:$0xf] }
 0x18a   :  { %v983_v33 = vadd.f32 %v982_v4, %v913_v6  ;;  %v7974_v6 = vld [vmem:[%s12310_s0 + $0x54] sm:$0xf0] }
 0x18b   :  { %v9264_v17 = vadd.f32 %v1387_v16, %v1029_v27  ;;  %v6227_v27 = vld [vmem:[%s12310_s0 + $0xe0] sm:$0xf]  ;;  %v6316_v25 = vor.u32 %v7974_v6, %v6315_v51  ;;  %v8006_v4 = vld [vmem:[%s12310_s0 + $0x54] sm:$0xf0]  ;;  %v8005_v16 = vld [vmem:[%s12310_s0 + $0x54] sm:$0xf] }
 0x18c   :  { %v1032_v37 = vadd.f32 %v983_v33, %v8818_v40  ;;  %1717 = vmatmul.bf16.vlgmr.msra.gmra.mxu1 %v6308_v30  ;;  %v7960_v40 = vld [vmem:[%s12310_s0 + $0xe4] sm:$0xf0] }
 0x18d   :  { %v6228_v57 = vor.u32 %v7960_v40, %v6227_v27  ;;  %v6763_v40 = vld [vmem:[%s12309_s1 + $0x420] sm:$0xf] }
 0x18e   :  { %6441 = vmatmul.msk.bf16.vlgmr.msra.gmra.mxu3 %vm253_vm0, %v6312_v58  ;;  %v6764_v35 = vor.u32 %v8069_v47, %v6763_v40 }
 0x190   :  { %v1388_v29 = vpop.f32.mrf.mxu2  ;;  %v1322_v36 = vpop.f32.mrf.mxu0  ;;  %2532 = vmatpush.bf16.msrb.mxu1 %v6764_v35 }
 0x191   :  { %v985_v62 = vpop.f32.mrf.mxu3  ;;  %v1389_v11 = vadd.f32 %v1388_v29, %v1319_v28  ;;  %v918_v1 = vpop.f32.mrf.mxu1  ;;  %v6476_v28 = vor.u32 %v8006_v4, %v6475_v24  ;;  %v7975_v29 = vld [vmem:[%s12310_s0 + $0x64] sm:$0xf] }
 0x192   :  { %v986_v0 = vadd.f32 %v985_v62, %v916_v34 }
 0x193   :  { %v9293_v2 = vadd.f32 %v1389_v11, %v9219_v31  ;;  %1361 = vmatmul.bf16.gmra.mxu0 %v6228_v57  ;;  %v6317_v31 = vld [vmem:[%s12310_s0 + $0x58] sm:$0xf0]  ;;  %v6325_v57 = vld [vmem:[%s12310_s0 + $0x68] sm:$0xf0] }
 0x194   :  { %v1033_v59 = vadd.f32 %v986_v0, %v8845_v60  ;;  %v6320_v23 = vor.u32 %v7973_v21, %v6317_v31  ;;  %v6328_v6 = vor.u32 %v7975_v29, %v6325_v57  ;;  %v8114_v29 = vld [vmem:[%s12309_s1 + $0xf8] sm:$0xf0]  ;;  %v8009_v57 = vld [vmem:[%s12310_s0 + $0x74] sm:$0xf] }
 0x195   :  { %6284 = vmatmul.msk.bf16.gmra.mxu2 %vm253_vm0, %v6232_v61 }
 0x198   :  { %v1391_v60 = vpop.f32.mrf.mxu2  ;;  %v1324_v9 = vpop.f32.mrf.mxu0 }
 0x199   :  { %v987_v22 = vpop.f32.mrf.mxu3  ;;  %v1392_v49 = vadd.f32 %v1391_v60, %v1322_v36  ;;  %v921_v19 = vpop.f32.mrf.mxu1  ;;  %v6483_v60 = vld [vmem:[%s12310_s0 + $0x60] sm:$0xf] }
 0x19a   :  { %v988_v39 = vadd.f32 %v987_v22, %v918_v1  ;;  %v8008_v22 = vld [vmem:[%s12310_s0 + $0x64] sm:$0xf0] }
 0x19b   :  { %v9310_v14 = vadd.f32 %v1392_v49, %v9237_v12  ;;  %v6477_v12 = vld [vmem:[%s12310_s0 + $0x58] sm:$0xf0]  ;;  %v8007_v49 = vld [vmem:[%s12310_s0 + $0x64] sm:$0xf] }
 0x19c   :  { %v1034_v8 = vadd.f32 %v988_v39, %v8860_v10  ;;  %1722 = vmatmul.bf16.gmra.mxu1 %v6316_v25  ;;  %v6480_v58 = vor.u32 %v8005_v16, %v6477_v12 }
 0x19e   :  { %6442 = vmatmul.msk.bf16.gmra.mxu3 %vm253_vm0, %v6320_v23 }
 0x1a0   :  { %v1393_v10 = vpop.f32.mrf.mxu2  ;;  %v1327_v34 = vpop.f32.mrf.mxu0 }
 0x1a1   :  { %v990_v30 = vpop.f32.mrf.mxu3  ;;  %v1394_v33 = vadd.f32 %v1393_v10, %v1324_v9  ;;  %v923_v42 = vpop.f32.mrf.mxu1  ;;  %v6484_v9 = vor.u32 %v8008_v22, %v6483_v60  ;;  %v6331_v10 = vld [vmem:[%s12310_s0 + $0x70] sm:$0xf] }
 0x1a2   :  { %v991_v41 = vadd.f32 %v990_v30, %v921_v19  ;;  %v7977_v30 = vld [vmem:[%s12310_s0 + $0x74] sm:$0xf] }
 0x1a3   :  { %v9326_v46 = vadd.f32 %v1394_v33, %v1032_v37  ;;  %2128 = vmatmul.bf16.vlgmr.msra.gmra.mxu0 %v6476_v28  ;;  %v6323_v37 = vld [vmem:[%s12310_s0 + $0x60] sm:$0xf]  ;;  %v7978_v28 = vld [vmem:[%s12310_s0 + $0x74] sm:$0xf0] }
 0x1a4   :  { %v1035_v27 = vadd.f32 %v991_v41, %v8875_v26  ;;  %v8115_v26 = vld [vmem:[%s12309_s1 + $0x108] sm:$0xf0]  ;;  %v6324_v0 = vor.u32 %v7976_v50, %v6323_v37  ;;  %v6332_v41 = vor.u32 %v7978_v28, %v6331_v10  ;;  %v8068_v37 = vld [vmem:[%s12309_s1 + $0x414] sm:$0xf0]  ;;  %v6927_v50 = vld [vmem:[%s12309_s1 + $0xf4] sm:$0xf] }
 0x1a5   :  { %6609 = vmatmul.msk.bf16.vlgmr.msra.gmra.mxu2 %vm253_vm0, %v6480_v58  ;;  %v6932_v52 = vor.u32 %v8115_v26, %v6931_v32  ;;  %v6759_v26 = vld [vmem:[%s12309_s1 + $0x410] sm:$0xf] }
 0x1a7   :  { %3142 = vmatpush.bf16.msrb.mxu0 %v6932_v52  ;;  %v6760_v52 = vor.u32 %v8068_v37, %v6759_v26 }
 0x1a8   :  { %v1396_v62 = vpop.f32.mrf.mxu2  ;;  %v1329_v61 = vpop.f32.mrf.mxu0 }
 0x1a9   :  { %v992_v11 = vpop.f32.mrf.mxu3  ;;  %v1397_v36 = vadd.f32 %v1396_v62, %v1327_v34  ;;  %v926_v51 = vpop.f32.mrf.mxu1  ;;  %v6493_v62 = vld [vmem:[%s12310_s0 + $0x78] sm:$0xf0]  ;;  %2533 = vmatpush.bf16.msrb.mxu1 %v6760_v52  ;;  %v8067_v52 = vld [vmem:[%s12309_s1 + $0x404] sm:$0xf0] }
 0x1aa   :  { %v993_v1 = vadd.f32 %v992_v11, %v923_v42  ;;  %v6928_v11 = vor.u32 %v8114_v29, %v6927_v50  ;;  %v6923_v29 = vld [vmem:[%s12309_s1 + $0xe4] sm:$0xf] }
 0x1ab   :  { %v9354_v21 = vadd.f32 %v1397_v36, %v1033_v59  ;;  %v6485_v59 = vld [vmem:[%s12310_s0 + $0x68] sm:$0xf0] }
 0x1ac   :  { %v1036_v31 = vadd.f32 %v993_v1, %v8902_v48  ;;  %1727 = vmatmul.bf16.gmra.mxu1 %v6324_v0  ;;  %v6488_v23 = vor.u32 %v8007_v49, %v6485_v59  ;;  %3143 = vmatpush.bf16.msrb.mxu0 %v6928_v11 }
 0x1ae   :  { %6443 = vmatmul.msk.bf16.gmra.mxu3 %vm253_vm0, %v6328_v6  ;;  %v6496_v6 = vor.u32 %v8009_v57, %v6493_v62  ;;  %v6347_v57 = vld [vmem:[%s12310_s0 + $0x90] sm:$0xf]  ;;  %v7982_v62 = vld [vmem:[%s12310_s0 + $0x94] sm:$0xf0] }
 0x1b0   :  { %v1398_v48 = vpop.f32.mrf.mxu2  ;;  %v1332_v19 = vpop.f32.mrf.mxu0 }
 0x1b1   :  { %v995_v25 = vpop.f32.mrf.mxu3  ;;  %v1399_v39 = vadd.f32 %v1398_v48, %v1329_v61  ;;  %v928_v4 = vpop.f32.mrf.mxu1  ;;  %v6339_v48 = vld [vmem:[%s12310_s0 + $0x80] sm:$0xf] }
 0x1b2   :  { %v996_v24 = vadd.f32 %v995_v25, %v926_v51  ;;  %v7979_v25 = vld [vmem:[%s12310_s0 + $0x84] sm:$0xf] }
 0x1b3   :  { %v9370_v16 = vadd.f32 %v1399_v39, %v1034_v8  ;;  %2133 = vmatmul.bf16.gmra.mxu0 %v6484_v9  ;;  %v6333_v8 = vld [vmem:[%s12310_s0 + $0x78] sm:$0xf0]  ;;  %v7980_v9 = vld [vmem:[%s12310_s0 + $0x84] sm:$0xf0] }
 0x1b4   :  { %v1037_v12 = vadd.f32 %v996_v24, %v8917_v63  ;;  %v6336_v47 = vor.u32 %v7977_v30, %v6333_v8  ;;  %v6340_v24 = vor.u32 %v7980_v9, %v6339_v48 }
 0x1b5   :  { %6610 = vmatmul.msk.bf16.gmra.mxu2 %vm253_vm0, %v6488_v23 }
 0x1b8   :  { %v1401_v63 = vpop.f32.mrf.mxu2  ;;  %v1334_v58 = vpop.f32.mrf.mxu0 }
 0x1b9   :  { %v997_v33 = vpop.f32.mrf.mxu3  ;;  %v1402_v34 = vadd.f32 %v1401_v63, %v1332_v19  ;;  %v931_v40 = vpop.f32.mrf.mxu1  ;;  %v6499_v63 = vld [vmem:[%s12310_s0 + $0x80] sm:$0xf] }
 0x1ba   :  { %v998_v42 = vadd.f32 %v997_v33, %v928_v4  ;;  %v8012_v33 = vld [vmem:[%s12310_s0 + $0x84] sm:$0xf0] }
 0x1bb   :  { %v9386_v32 = vadd.f32 %v1402_v34, %v1035_v27  ;;  %v6491_v27 = vld [vmem:[%s12310_s0 + $0x70] sm:$0xf]  ;;  %v8011_v34 = vld [vmem:[%s12310_s0 + $0x84] sm:$0xf] }
 0x1bc   :  { %v1038_v35 = vadd.f32 %v998_v42, %v8934_v15  ;;  %1732 = vmatmul.bf16.gmra.mxu1 %v6332_v41  ;;  %v8010_v15 = vld [vmem:[%s12310_s0 + $0x74] sm:$0xf0] }
 0x1bd   :  { %v6492_v61 = vor.u32 %v8010_v15, %v6491_v27  ;;  %v6755_v15 = vld [vmem:[%s12309_s1 + $0x400] sm:$0xf] }
 0x1be   :  { %6444 = vmatmul.msk.bf16.gmra.mxu3 %vm253_vm0, %v6336_v47 }
 0x1c0   :  { %v1403_v36 = vpop.f32.mrf.mxu2  ;;  %v1337_v51 = vpop.f32.mrf.mxu0 }
 0x1c1   :  { %v1000_v0 = vpop.f32.mrf.mxu3  ;;  %v1404_v1 = vadd.f32 %v1403_v36, %v1334_v58  ;;  %v933_v22 = vpop.f32.mrf.mxu1  ;;  %v6500_v58 = vor.u32 %v8012_v33, %v6499_v63  ;;  %v7981_v36 = vld [vmem:[%s12310_s0 + $0x94] sm:$0xf] }
 0x1c2   :  { %v1001_v60 = vadd.f32 %v1000_v0, %v931_v40 }
 0x1c3   :  { %v9414_v49 = vadd.f32 %v1404_v1, %v1036_v31  ;;  %2138 = vmatmul.bf16.gmra.mxu0 %v6492_v61  ;;  %v6341_v31 = vld [vmem:[%s12310_s0 + $0x88] sm:$0xf0]  ;;  %v6349_v61 = vld [vmem:[%s12310_s0 + $0x98] sm:$0xf0] }
 0x1c4   :  { %v1039_v59 = vadd.f32 %v1001_v60, %v8963_v38  ;;  %v6344_v28 = vor.u32 %v7979_v25, %v6341_v31  ;;  %v6348_v60 = vor.u32 %v7982_v62, %v6347_v57  ;;  %v6352_v9 = vor.u32 %v7981_v36, %v6349_v61 }
 0x1c5   :  { %6611 = vmatmul.msk.bf16.gmra.mxu2 %vm253_vm0, %v6496_v6 }
 0x1c8   :  { %v1406_v38 = vpop.f32.mrf.mxu2  ;;  %v1339_v23 = vpop.f32.mrf.mxu0 }
 0x1c9   :  { %v1002_v39 = vpop.f32.mrf.mxu3  ;;  %v1407_v19 = vadd.f32 %v1406_v38, %v1337_v51  ;;  %v936_v10 = vpop.f32.mrf.mxu1  ;;  %v6507_v38 = vld [vmem:[%s12310_s0 + $0x90] sm:$0xf] }
 0x1ca   :  { %v1003_v4 = vadd.f32 %v1002_v39, %v933_v22  ;;  %v8014_v39 = vld [vmem:[%s12310_s0 + $0x94] sm:$0xf0] }
 0x1cb   :  { %v9430_v30 = vadd.f32 %v1407_v19, %v1037_v12  ;;  %v6501_v12 = vld [vmem:[%s12310_s0 + $0x88] sm:$0xf0]  ;;  %v8013_v19 = vld [vmem:[%s12310_s0 + $0x94] sm:$0xf] }
 0x1cc   :  { %v1040_v8 = vadd.f32 %v1003_v4, %v8980_v54  ;;  %1737 = vmatmul.bf16.gmra.mxu1 %v6340_v24  ;;  %v6504_v47 = vor.u32 %v8011_v34, %v6501_v12 }
 0x1ce   :  { %6445 = vmatmul.msk.bf16.gmra.mxu3 %vm253_vm0, %v6344_v28 }
 0x1d0   :  { %v1408_v54 = vpop.f32.mrf.mxu2  ;;  %v1342_v40 = vpop.f32.mrf.mxu0 }
 0x1d1   :  { %v1005_v41 = vpop.f32.mrf.mxu3  ;;  %v1409_v42 = vadd.f32 %v1408_v54, %v1339_v23  ;;  %v938_v37 = vpop.f32.mrf.mxu1  ;;  %v6508_v23 = vor.u32 %v8014_v39, %v6507_v38  ;;  %v6771_v54 = vld [vmem:[%s12309_s1 + $0x440] sm:$0xf] }
 0x1d2   :  { %v1006_v26 = vadd.f32 %v1005_v41, %v936_v10 }
 0x1d3   :  { %v9446_v50 = vadd.f32 %v1409_v42, %v1038_v35  ;;  %2143 = vmatmul.bf16.gmra.mxu0 %v6500_v58  ;;  %v6756_v35 = vor.u32 %v8067_v52, %v6755_v15  ;;  %v8071_v58 = vld [vmem:[%s12309_s1 + $0x444] sm:$0xf0]  ;;  %v6355_v42 = vld [vmem:[%s12310_s0 + $0xa0] sm:$0xf] }
 0x1d4   :  { %v9449_v27 = vadd.f32 %v1006_v26, %v9008_v20  ;;  %v8113_v20 = vld [vmem:[%s12309_s1 + $0xe8] sm:$0xf0]  ;;  %v6772_v41 = vor.u32 %v8071_v58, %v6771_v54  ;;  %v7983_v26 = vld [vmem:[%s12310_s0 + $0xa4] sm:$0xf]  ;;  %v7985_v54 = vld [vmem:[%s12310_s0 + $0xb4] sm:$0xf] }
 0x1d5   :  { %6612 = vmatmul.msk.bf16.gmra.mxu2 %vm253_vm0, %v6504_v47  ;;  %v6924_v11 = vor.u32 %v8113_v20, %v6923_v29  ;;  %2534 = vmatpush.bf16.msrb.mxu1 %v6756_v35 }
 0x1d6   :  { %2607 = vmatpush.bf16.msrb.mxu3 %v6772_v41 }
 0x1d7   :  { %3144 = vmatpush.bf16.msrb.mxu0 %v6924_v11 }
 0x1d8   :  { %v1411_v0 = vpop.f32.mrf.mxu2  ;;  %v1344_v6 = vpop.f32.mrf.mxu0 }
 0x1d9   :  { %v1007_v1 = vpop.f32.mrf.mxu3  ;;  %v1412_v51 = vadd.f32 %v1411_v0, %v1342_v40  ;;  %v941_v48 = vpop.f32.mrf.mxu1  ;;  %v7984_v40 = vld [vmem:[%s12310_s0 + $0xa4] sm:$0xf0]  ;;  %v6751_v0 = vld [vmem:[%s12309_s1 + $0x3f0] sm:$0xf] }
 0x1da   :  { %v1008_v22 = vadd.f32 %v1007_v1, %v938_v37  ;;  %v6357_v37 = vld [vmem:[%s12310_s0 + $0xa8] sm:$0xf0]  ;;  %v6356_v20 = vor.u32 %v7984_v40, %v6355_v42  ;;  %v8066_v1 = vld [vmem:[%s12309_s1 + $0x3f4] sm:$0xf0] }
 0x1db   :  { %v9476_v25 = vadd.f32 %v1412_v51, %v1039_v59  ;;  %v6360_v11 = vor.u32 %v7983_v26, %v6357_v37  ;;  %v6919_v51 = vld [vmem:[%s12309_s1 + $0xd4] sm:$0xf] }
 0x1dc   :  { %v9479_v31 = vadd.f32 %v1008_v22, %v9036_v43  ;;  %1742 = vmatmul.bf16.gmra.mxu1 %v6348_v60  ;;  %v6509_v43 = vld [vmem:[%s12310_s0 + $0x98] sm:$0xf0]  ;;  %v8015_v22 = vld [vmem:[%s12310_s0 + $0xa4] sm:$0xf] }
 0x1dd   :  { %v6512_v28 = vor.u32 %v8013_v19, %v6509_v43  ;;  %v8112_v60 = vld [vmem:[%s12309_s1 + $0xd8] sm:$0xf0] }
 0x1de   :  { %6446 = vmatmul.msk.bf16.gmra.mxu3 %vm253_vm0, %v6352_v9  ;;  %v6920_v9 = vor.u32 %v8112_v60, %v6919_v51  ;;  %v6915_v60 = vld [vmem:[%s12309_s1 + $0xc4] sm:$0xf] }
 0x1e0   :  { %v1413_v59 = vpop.f32.mrf.mxu2  ;;  %v1347_v10 = vpop.f32.mrf.mxu0  ;;  %3145 = vmatpush.bf16.msrb.mxu0 %v6920_v9 }
 0x1e1   :  { %v1010_v24 = vpop.f32.mrf.mxu3  ;;  %v1414_v4 = vadd.f32 %v1413_v59, %v1344_v6  ;;  %v943_v33 = vpop.f32.mrf.mxu1  ;;  %v6752_v6 = vor.u32 %v8066_v1, %v6751_v0 }
 0x1e2   :  { %v1011_v63 = vadd.f32 %v1010_v24, %v941_v48  ;;  %v6517_v48 = vld [vmem:[%s12310_s0 + $0xa8] sm:$0xf0] }
 0x1e3   :  { %v9494_v34 = vadd.f32 %v1414_v4, %v1040_v8  ;;  %2148 = vmatmul.bf16.gmra.mxu0 %v6508_v23  ;;  %v6939_v8 = vld [vmem:[%s12309_s1 + $0x124] sm:$0xf]  ;;  %2535 = vmatpush.bf16.msrb.mxu1 %v6752_v6  ;;  %v6520_v23 = vor.u32 %v8015_v22, %v6517_v48  ;;  %v8065_v6 = vld [vmem:[%s12309_s1 + $0x3e4] sm:$0xf0] }
 0x1e4   :  { %v9497_v12 = vadd.f32 %v1011_v63, %v9052_v55  ;;  %v8117_v55 = vld [vmem:[%s12309_s1 + $0x128] sm:$0xf0]  ;;  %v6363_v63 = vld [vmem:[%s12310_s0 + $0xb0] sm:$0xf]  ;;  %v7988_v48 = vld [vmem:[%s12310_s0 + $0xc4] sm:$0xf0] }
 0x1e5   :  { %6613 = vmatmul.msk.bf16.gmra.mxu2 %vm253_vm0, %v6512_v28  ;;  %v6940_v47 = vor.u32 %v8117_v55, %v6939_v8 }
 0x1e7   :  { %3217 = vmatpush.bf16.msrb.mxu2 %v6940_v47 }
 0x1e8   :  { %v1416_v15 = vpop.f32.mrf.mxu2  ;;  %v1349_v35 = vpop.f32.mrf.mxu0 }
 0x1e9   :  { %v1012_v52 = vpop.f32.mrf.mxu3  ;;  %v1417_v29 = vadd.f32 %v1416_v15, %v1347_v10  ;;  %v946_v62 = vpop.f32.mrf.mxu1  ;;  %v6523_v15 = vld [vmem:[%s12310_s0 + $0xb0] sm:$0xf] }
 0x1ea   :  { %v1013_v57 = vadd.f32 %v1012_v52, %v943_v33  ;;  %v7986_v33 = vld [vmem:[%s12310_s0 + $0xb4] sm:$0xf0] }
 0x1eb   :  { %v9525_v36 = vadd.f32 %v1417_v29, %v9449_v27  ;;  %v6515_v27 = vld [vmem:[%s12310_s0 + $0xa0] sm:$0xf]  ;;  %v6364_v55 = vor.u32 %v7986_v33, %v6363_v63  ;;  %v8018_v52 = vld [vmem:[%s12310_s0 + $0xb4] sm:$0xf0]  ;;  %v8017_v29 = vld [vmem:[%s12310_s0 + $0xb4] sm:$0xf] }
 0x1ec   :  { %v1044_v61 = vadd.f32 %v1013_v57, %v9067_v18  ;;  %1747 = vmatmul.bf16.gmra.mxu1 %v6356_v20  ;;  %v8016_v18 = vld [vmem:[%s12310_s0 + $0xa4] sm:$0xf0] }
 0x1ed   :  { %v6516_v39 = vor.u32 %v8016_v18, %v6515_v27  ;;  %v6747_v18 = vld [vmem:[%s12309_s1 + $0x3e0] sm:$0xf] }
 0x1ee   :  { %6447 = vmatmul.msk.bf16.gmra.mxu3 %vm253_vm0, %v6360_v11  ;;  %v6748_v22 = vor.u32 %v8065_v6, %v6747_v18 }
 0x1f0   :  { %v1418_v38 = vpop.f32.mrf.mxu2  ;;  %v1352_v59 = vpop.f32.mrf.mxu0  ;;  %2536 = vmatpush.bf16.msrb.mxu1 %v6748_v22 }
 0x1f1   :  { %v1015_v19 = vpop.f32.mrf.mxu3  ;;  %v1419_v43 = vadd.f32 %v1418_v38, %v1349_v35  ;;  %v948_v4 = vpop.f32.mrf.mxu1  ;;  %v6524_v35 = vor.u32 %v8018_v52, %v6523_v15  ;;  %v7987_v38 = vld [vmem:[%s12310_s0 + $0xc4] sm:$0xf] }
 0x1f2   :  { %v1016_v24 = vadd.f32 %v1015_v19, %v946_v62 }
 0x1f3   :  { %v9554_v10 = vadd.f32 %v1419_v43, %v9479_v31  ;;  %2153 = vmatmul.bf16.gmra.mxu0 %v6516_v39  ;;  %v6365_v31 = vld [vmem:[%s12310_s0 + $0xb8] sm:$0xf0]  ;;  %v6373_v39 = vld [vmem:[%s12310_s0 + $0xc8] sm:$0xf0] }
 0x1f4   :  { %v1045_v28 = vadd.f32 %v1016_v24, %v9096_v45  ;;  %v6368_v47 = vor.u32 %v7985_v54, %v6365_v31  ;;  %v6376_v33 = vor.u32 %v7987_v38, %v6373_v39  ;;  %v8110_v38 = vld [vmem:[%s12309_s1 + $0xb8] sm:$0xf0]  ;;  %v8021_v39 = vld [vmem:[%s12310_s0 + $0xd4] sm:$0xf] }
 0x1f5   :  { %6614 = vmatmul.msk.bf16.gmra.mxu2 %vm253_vm0, %v6520_v23 }
 0x1f8   :  { %v1421_v45 = vpop.f32.mrf.mxu2  ;;  %v1354_v8 = vpop.f32.mrf.mxu0 }
 0x1f9   :  { %v1017_v58 = vpop.f32.mrf.mxu3  ;;  %v1422_v41 = vadd.f32 %v1421_v45, %v1352_v59  ;;  %v951_v40 = vpop.f32.mrf.mxu1  ;;  %v6531_v45 = vld [vmem:[%s12310_s0 + $0xc0] sm:$0xf] }
 0x1fa   :  { %v1018_v42 = vadd.f32 %v1017_v58, %v948_v4  ;;  %v8020_v58 = vld [vmem:[%s12310_s0 + $0xc4] sm:$0xf0] }
 0x1fb   :  { %v9571_v26 = vadd.f32 %v1422_v41, %v9497_v12  ;;  %v6525_v12 = vld [vmem:[%s12310_s0 + $0xb8] sm:$0xf0]  ;;  %v8019_v41 = vld [vmem:[%s12310_s0 + $0xc4] sm:$0xf] }
 0x1fc   :  { %v1046_v37 = vadd.f32 %v1018_v42, %v9111_v53  ;;  %1752 = vmatmul.bf16.gmra.mxu1 %v6364_v55  ;;  %v6528_v11 = vor.u32 %v8017_v29, %v6525_v12 }
 0x1fe   :  { %6448 = vmatmul.msk.bf16.gmra.mxu3 %vm253_vm0, %v6368_v47 }
 0x200   :  { %v1423_v53 = vpop.f32.mrf.mxu2  ;;  %v1357_v62 = vpop.f32.mrf.mxu0 }
 0x201   :  { %v1020_v20 = vpop.f32.mrf.mxu3  ;;  %v1424_v57 = vadd.f32 %v1423_v53, %v1354_v8  ;;  %v953_v1 = vpop.f32.mrf.mxu1  ;;  %v6532_v8 = vor.u32 %v8020_v58, %v6531_v45  ;;  %v6379_v53 = vld [vmem:[%s12310_s0 + $0xd0] sm:$0xf] }
 0x202   :  { %v1021_v0 = vadd.f32 %v1020_v20, %v951_v40  ;;  %v7989_v20 = vld [vmem:[%s12310_s0 + $0xd4] sm:$0xf] }
 0x203   :  { %v9587_v51 = vadd.f32 %v1424_v57, %v1044_v61  ;;  %2158 = vmatmul.bf16.gmra.mxu0 %v6524_v35  ;;  %v6371_v61 = vld [vmem:[%s12310_s0 + $0xc0] sm:$0xf]  ;;  %v7990_v35 = vld [vmem:[%s12310_s0 + $0xd4] sm:$0xf0] }
 0x204   :  { %v1047_v27 = vadd.f32 %v1021_v0, %v9127_v7  ;;  %v8111_v7 = vld [vmem:[%s12309_s1 + $0xc8] sm:$0xf0]  ;;  %v6372_v24 = vor.u32 %v7988_v48, %v6371_v61  ;;  %v6380_v0 = vor.u32 %v7990_v35, %v6379_v53  ;;  %v8064_v61 = vld [vmem:[%s12309_s1 + $0x3d4] sm:$0xf0]  ;;  %v6911_v48 = vld [vmem:[%s12309_s1 + $0xb4] sm:$0xf] }
 0x205   :  { %6615 = vmatmul.msk.bf16.gmra.mxu2 %vm253_vm0, %v6528_v11  ;;  %v6916_v9 = vor.u32 %v8111_v7, %v6915_v60  ;;  %v6743_v7 = vld [vmem:[%s12309_s1 + $0x3d0] sm:$0xf] }
 0x207   :  { %3146 = vmatpush.bf16.msrb.mxu0 %v6916_v9  ;;  %v6744_v9 = vor.u32 %v8064_v61, %v6743_v7 }
 0x208   :  { %v1426_v19 = vpop.f32.mrf.mxu2  ;;  %v1359_v23 = vpop.f32.mrf.mxu0 }
 0x209   :  { %v1022_v43 = vpop.f32.mrf.mxu3  ;;  %v1427_v59 = vadd.f32 %v1426_v19, %v1357_v62  ;;  %v1718_v63 = vpop.f32.mrf.mxu1  ;;  %v6541_v19 = vld [vmem:[%s12310_s0 + $0xd8] sm:$0xf0]  ;;  %2537 = vmatpush.bf16.msrb.mxu1 %v6744_v9 }
 0x20a   :  { %v1023_v4 = vadd.f32 %v1022_v43, %v953_v1  ;;  %v6912_v43 = vor.u32 %v8110_v38, %v6911_v48 }
 0x20b   :  { %v9615_v54 = vadd.f32 %v1427_v59, %v1045_v28  ;;  %v6533_v28 = vld [vmem:[%s12310_s0 + $0xc8] sm:$0xf0] }
 0x20c   :  { %v1048_v31 = vadd.f32 %v1023_v4, %v9156_v44  ;;  %1757 = vmatmul.bf16.gmra.mxu1 %v6372_v24  ;;  %v6536_v47 = vor.u32 %v8019_v41, %v6533_v28  ;;  %3147 = vmatpush.bf16.msrb.mxu0 %v6912_v43 }
 0x20e   :  { %6449 = vmatmul.msk.bf16.gmra.mxu3 %vm253_vm0, %v6376_v33  ;;  %v6544_v33 = vor.u32 %v8021_v39, %v6541_v19  ;;  %v6907_v39 = vld [vmem:[%s12309_s1 + $0xa4] sm:$0xf]  ;;  %v8109_v19 = vld [vmem:[%s12309_s1 + $0xa8] sm:$0xf0] }
 0x20f   :  { %v6908_v43 = vor.u32 %v8109_v19, %v6907_v39 }
 0x210   :  { %v1428_v44 = vpop.f32.mrf.mxu2  ;;  %v1362_v40 = vpop.f32.mrf.mxu0 }
 0x211   :  { %v1429_v55 = vadd.f32 %v1428_v44, %v1359_v23  ;;  %v1787_v42 = vpop.f32.mrf.mxu3  ;;  %v1720_v52 = vpop.f32.mrf.mxu1  ;;  %v6387_v44 = vld [vmem:[%s12310_s0 + $0xe0] sm:$0xf]  ;;  %3148 = vmatpush.bf16.msrb.mxu0 %v6908_v43 }
 0x212   :  { %v1788_v15 = vadd.f32 %v1787_v42, %v1718_v63  ;;  %v6739_v42 = vld [vmem:[%s12309_s1 + $0x3c0] sm:$0xf] }
 0x213   :  { %v9631_v29 = vadd.f32 %v1429_v55, %v1046_v37  ;;  %2163 = vmatmul.bf16.gmra.mxu0 %v6532_v8  ;;  %v6381_v37 = vld [vmem:[%s12310_s0 + $0xd8] sm:$0xf0]  ;;  %v7992_v8 = vld [vmem:[%s12310_s0 + $0xe4] sm:$0xf0]  ;;  %v7991_v55 = vld [vmem:[%s12310_s0 + $0xe4] sm:$0xf] }
 0x214   :  { %v1847_v12 = vadd.f32 %v1788_v15, %v9178_v5  ;;  %v6384_v6 = vor.u32 %v7989_v20, %v6381_v37  ;;  %v6388_v53 = vor.u32 %v7992_v8, %v6387_v44 }
 0x215   :  { %6616 = vmatmul.msk.bf16.gmra.mxu2 %vm253_vm0, %v6536_v47 }
 0x218   :  { %v1431_v5 = vpop.f32.mrf.mxu2  ;;  %v1364_v11 = vpop.f32.mrf.mxu0 }
 0x219   :  { %v1432_v57 = vadd.f32 %v1431_v5, %v1362_v40  ;;  %v1789_v62 = vpop.f32.mrf.mxu3  ;;  %v1723_v18 = vpop.f32.mrf.mxu1  ;;  %v8063_v40 = vld [vmem:[%s12309_s1 + $0x3c4] sm:$0xf0] }
 0x21a   :  { %v1790_v1 = vadd.f32 %v1789_v62, %v1720_v52  ;;  %v6740_v35 = vor.u32 %v8063_v40, %v6739_v42  ;;  %v8026_v42 = vld [vmem:[%s12310_s0 + $0xf4] sm:$0xf0]  ;;  %v8025_v40 = vld [vmem:[%s12310_s0 + $0xf4] sm:$0xf] }
 0x21b   :  { %v9647_v60 = vadd.f32 %v1432_v57, %v1047_v27  ;;  %v6539_v27 = vld [vmem:[%s12310_s0 + $0xd0] sm:$0xf] }
 0x21c   :  { %v1848_v22 = vadd.f32 %v1790_v1, %v9194_v13  ;;  %1762 = vmatmul.bf16.gmra.mxu1 %v6380_v0  ;;  %v8022_v13 = vld [vmem:[%s12310_s0 + $0xd4] sm:$0xf0]  ;;  %v8024_v0 = vld [vmem:[%s12310_s0 + $0xe4] sm:$0xf0]  ;;  %v8023_v1 = vld [vmem:[%s12310_s0 + $0xe4] sm:$0xf] }
 0x21d   :  { %v6540_v23 = vor.u32 %v8022_v13, %v6539_v27  ;;  %2538 = vmatpush.bf16.msrb.mxu1 %v6740_v35 }
 0x21e   :  { %6450 = vmatmul.msk.bf16.gmra.mxu3 %vm253_vm0, %v6384_v6 }
 0x220   :  { %v1433_v59 = vpop.f32.mrf.mxu2  ;;  %v2129_v63 = vpop.f32.mrf.mxu0 }
 0x221   :  { %v1434_v24 = vadd.f32 %v1433_v59, %v1364_v11  ;;  %v1792_v4 = vpop.f32.mrf.mxu3  ;;  %v1725_v58 = vpop.f32.mrf.mxu1  ;;  %v6547_v11 = vld [vmem:[%s12310_s0 + $0xe0] sm:$0xf]  ;;  %v6395_v59 = vld [vmem:[%s12310_s0 + $0xf0] sm:$0xf] }
 0x222   :  { %v1793_v45 = vadd.f32 %v1792_v4, %v1723_v18  ;;  %v6548_v18 = vor.u32 %v8024_v0, %v6547_v11  ;;  %v7003_v0 = vld [vmem:[%s12309_s1 + $0x94] sm:$0xf] }
 0x223   :  { %v9675_v41 = vadd.f32 %v1434_v24, %v1048_v31  ;;  %2168 = vmatmul.bf16.gmra.mxu0 %v6540_v23  ;;  %v6389_v31 = vld [vmem:[%s12310_s0 + $0xe8] sm:$0xf0]  ;;  %v6397_v23 = vld [vmem:[%s12310_s0 + $0xf8] sm:$0xf0] }
 0x224   :  { %v1849_v28 = vadd.f32 %v1793_v45, %v9216_v56  ;;  %v6392_v5 = vor.u32 %v7991_v55, %v6389_v31 }
 0x225   :  { %6617 = vmatmul.msk.bf16.gmra.mxu2 %vm253_vm0, %v6544_v33 }
 0x228   :  { %v2198_v56 = vpop.f32.mrf.mxu2  ;;  %v2131_v52 = vpop.f32.mrf.mxu0 }
 0x229   :  { %v1794_v47 = vpop.f32.mrf.mxu3  ;;  %v2199_v15 = vadd.f32 %v2198_v56, %v2129_v63  ;;  %v1728_v37 = vpop.f32.mrf.mxu1  ;;  %v6555_v56 = vld [vmem:[%s12310_s0 + $0xf0] sm:$0xf] }
 0x22a   :  { %v1795_v20 = vadd.f32 %v1794_v47, %v1725_v58  ;;  %v6556_v47 = vor.u32 %v8026_v42, %v6555_v56 }
 0x22b   :  { %v9697_v57 = vadd.f32 %v2199_v15, %v1847_v12  ;;  %v6549_v12 = vld [vmem:[%s12310_s0 + $0xe8] sm:$0xf0] }
 0x22c   :  { %v1850_v62 = vadd.f32 %v1795_v20, %v9234_v3  ;;  %1767 = vmatmul.bf16.gmra.mxu1 %v6388_v53  ;;  %v6552_v48 = vor.u32 %v8023_v1, %v6549_v12  ;;  %v8106_v1 = vld [vmem:[%s12309_s1 + $0x98] sm:$0xf0] }
 0x22d   :  { %v7004_v12 = vor.u32 %v8106_v1, %v7003_v0  ;;  %v8041_v0 = vld [vmem:[%s12310_s0 + $0x74] sm:$0xf] }
 0x22e   :  { %6451 = vmatmul.msk.bf16.gmra.mxu3 %vm253_vm0, %v6392_v5 }
 0x22f   :  { %3426 = vmatpush.bf16.msra.mxu3 %v7004_v12 }
 0x230   :  { %v2200_v3 = vpop.f32.mrf.mxu2  ;;  %v2134_v61 = vpop.f32.mrf.mxu0 }
 0x231   :  { %v1797_v6 = vpop.f32.mrf.mxu3  ;;  %v2201_v7 = vadd.f32 %v2200_v3, %v2131_v52  ;;  %v1730_v13 = vpop.f32.mrf.mxu1  ;;  %v6643_v3 = vld [vmem:[%s12310_s0 + $0x60] sm:$0xf] }
 0x232   :  { %v1798_v27 = vadd.f32 %v1797_v6, %v1728_v37 }
 0x233   :  { %v9713_v9 = vadd.f32 %v2201_v7, %v1848_v22  ;;  %2173 = vmatmul.bf16.gmra.mxu0 %v6548_v18  ;;  %v7993_v22 = vld [vmem:[%s12310_s0 + $0xf4] sm:$0xf]  ;;  %v8040_v18 = vld [vmem:[%s12310_s0 + $0x64] sm:$0xf0]  ;;  %v8039_v7 = vld [vmem:[%s12310_s0 + $0x64] sm:$0xf] }
 0x234   :  { %v1851_v38 = vadd.f32 %v1798_v27, %v9264_v17  ;;  %v7994_v17 = vld [vmem:[%s12310_s0 + $0xf4] sm:$0xf0]  ;;  %v6400_v8 = vor.u32 %v7993_v22, %v6397_v23  ;;  %v6644_v19 = vor.u32 %v8040_v18, %v6643_v3 }
 0x235   :  { %6618 = vmatmul.msk.bf16.gmra.mxu2 %vm253_vm0, %v6552_v48  ;;  %v6396_v45 = vor.u32 %v7994_v17, %v6395_v59 }
 0x238   :  { %v2203_v24 = vpop.f32.mrf.mxu2  ;;  %v2136_v33 = vpop.f32.mrf.mxu0 }
 0x239   :  { %v1799_v4 = vpop.f32.mrf.mxu3  ;;  %v2204_v63 = vadd.f32 %v2203_v24, %v2134_v61  ;;  %v1733_v44 = vpop.f32.mrf.mxu1  ;;  %v6645_v61 = vld [vmem:[%s12310_s0 + $0x68] sm:$0xf0]  ;;  %v6995_v24 = vld [vmem:[%s12309_s1 + $0x74] sm:$0xf] }
 0x23a   :  { %v1800_v58 = vadd.f32 %v1799_v4, %v1730_v13  ;;  %v6648_v17 = vor.u32 %v8039_v7, %v6645_v61  ;;  %v8104_v4 = vld [vmem:[%s12309_s1 + $0x78] sm:$0xf0] }
 0x23b   :  { %v9735_v55 = vadd.f32 %v2204_v63, %v1849_v28  ;;  %v7163_v63 = vld [vmem:[%s12309_s1 + $0x1b4] sm:$0xf] }
 0x23c   :  { %v9738_v31 = vadd.f32 %v1800_v58, %v9293_v2  ;;  %1772 = vmatmul.bf16.gmra.mxu1 %v6396_v45  ;;  %v6557_v2 = vld [vmem:[%s12310_s0 + $0xf8] sm:$0xf0]  ;;  %v8027_v58 = vld [vmem:[%s12310_s0 + $0x104] sm:$0xf] }
 0x23d   :  { %v6560_v35 = vor.u32 %v8025_v40, %v6557_v2  ;;  %v8150_v45 = vld [vmem:[%s12309_s1 + $0x1b8] sm:$0xf0] }
 0x23e   :  { %6452 = vmatmul.msk.bf16.gmra.mxu3 %vm253_vm0, %v6400_v8  ;;  %v7164_v8 = vor.u32 %v8150_v45, %v7163_v63  ;;  %v7159_v45 = vld [vmem:[%s12309_s1 + $0x1a4] sm:$0xf] }
 0x240   :  { %v2205_v28 = vpop.f32.mrf.mxu2  ;;  %v2139_v53 = vpop.f32.mrf.mxu0  ;;  %3737 = vmatpush.bf16.msra.mxu0 %v7164_v8 }
 0x241   :  { %v1802_v15 = vpop.f32.mrf.mxu3  ;;  %v2206_v52 = vadd.f32 %v2205_v28, %v2136_v33  ;;  %v1735_v37 = vpop.f32.mrf.mxu1  ;;  %v6996_v33 = vor.u32 %v8104_v4, %v6995_v24 }
 0x242   :  { %v1803_v20 = vadd.f32 %v1802_v15, %v1733_v44  ;;  %v6565_v44 = vld [vmem:[%s12310_s0 + $0x108] sm:$0xf0] }
 0x243   :  { %v9753_v5 = vadd.f32 %v2206_v52, %v1850_v62  ;;  %2178 = vmatmul.bf16.gmra.mxu0 %v6556_v47  ;;  %v7171_v62 = vld [vmem:[%s12309_s1 + $0x1d4] sm:$0xf]  ;;  %3351 = vmatpush.bf16.msra.mxu1 %v6996_v33  ;;  %v6568_v47 = vor.u32 %v8027_v58, %v6565_v44  ;;  %v8103_v33 = vld [vmem:[%s12309_s1 + $0x68] sm:$0xf0]  ;;  %v6659_v58 = vld [vmem:[%s12310_s0 + $0x80] sm:$0xf] }
 0x244   :  { %v9756_v11 = vadd.f32 %v1803_v20, %v9310_v14  ;;  %v8152_v14 = vld [vmem:[%s12309_s1 + $0x1d8] sm:$0xf0]  ;;  %v6651_v20 = vld [vmem:[%s12310_s0 + $0x70] sm:$0xf]  ;;  %v8044_v44 = vld [vmem:[%s12310_s0 + $0x84] sm:$0xf0] }
 0x245   :  { %6619 = vmatmul.msk.bf16.gmra.mxu2 %vm253_vm0, %v6560_v35  ;;  %v7172_v6 = vor.u32 %v8152_v14, %v7171_v62 }
 0x247   :  { %3812 = vmatpush.bf16.msra.mxu2 %v7172_v6 }
 0x248   :  { %v2208_v48 = vpop.f32.mrf.mxu2  ;;  %v2141_v39 = vpop.f32.mrf.mxu0 }
 0x249   :  { %v1804_v27 = vpop.f32.mrf.mxu3  ;;  %v2209_v13 = vadd.f32 %v2208_v48, %v2139_v53  ;;  %v1738_v59 = vpop.f32.mrf.mxu1  ;;  %v6811_v48 = vld [vmem:[%s12310_s0 + $0x10] sm:$0xf] }
 0x24a   :  { %v1805_v43 = vadd.f32 %v1804_v27, %v1735_v37  ;;  %v8042_v37 = vld [vmem:[%s12310_s0 + $0x74] sm:$0xf0] }
 0x24b   :  { %v9783_v22 = vadd.f32 %v2209_v13, %v1851_v38  ;;  %v6563_v38 = vld [vmem:[%s12310_s0 + $0x100] sm:$0xf]  ;;  %v6652_v14 = vor.u32 %v8042_v37, %v6651_v20  ;;  %v8076_v27 = vld [vmem:[%s12310_s0 + $0x14] sm:$0xf0]  ;;  %v8075_v13 = vld [vmem:[%s12310_s0 + $0x14] sm:$0xf] }
 0x24c   :  { %v1854_v23 = vadd.f32 %v1805_v43, %v9326_v46  ;;  %2539 = vmatmul.bf16.vlgmr.msrb.gmra.mxu1 %v6644_v19  ;;  %v8028_v46 = vld [vmem:[%s12310_s0 + $0x104] sm:$0xf0] }
 0x24d   :  { %v6564_v42 = vor.u32 %v8028_v46, %v6563_v38  ;;  %v6991_v46 = vld [vmem:[%s12309_s1 + $0x64] sm:$0xf] }
 0x24e   :  { %6777 = vmatmul.msk.bf16.vlgmr.msrb.gmra.mxu3 %vm253_vm0, %v6648_v17 }
 0x250   :  { %v2210_v56 = vpop.f32.mrf.mxu2  ;;  %v2144_v28 = vpop.f32.mrf.mxu0 }
 0x251   :  { %v1807_v40 = vpop.f32.mrf.mxu3  ;;  %v2211_v2 = vadd.f32 %v2210_v56, %v2141_v39  ;;  %v1740_v52 = vpop.f32.mrf.mxu1  ;;  %v9845_v39 = vor.u32 %v8076_v27, %v6811_v48  ;;  %v8043_v56 = vld [vmem:[%s12310_s0 + $0x84] sm:$0xf] }
 0x252   :  { %v1808_v15 = vadd.f32 %v1807_v40, %v1738_v59 }
 0x253   :  { %v9812_v53 = vadd.f32 %v2211_v2, %v9738_v31  ;;  %2183 = vmatmul.bf16.gmra.mxu0 %v6564_v42  ;;  %v6653_v31 = vld [vmem:[%s12310_s0 + $0x78] sm:$0xf0]  ;;  %v6661_v42 = vld [vmem:[%s12310_s0 + $0x88] sm:$0xf0] }
 0x254   :  { %v1855_v35 = vadd.f32 %v1808_v15, %v9354_v21  ;;  %v6656_v6 = vor.u32 %v8041_v0, %v6653_v31  ;;  %v6660_v15 = vor.u32 %v8044_v44, %v6659_v58  ;;  %v6664_v37 = vor.u32 %v8043_v56, %v6661_v42  ;;  %v6987_v44 = vld [vmem:[%s12309_s1 + $0x54] sm:$0xf] }
 0x255   :  { %6620 = vmatmul.msk.bf16.gmra.mxu2 %vm253_vm0, %v6568_v47  ;;  %v7155_v56 = vld [vmem:[%s12309_s1 + $0x194] sm:$0xf] }
 0x258   :  { %v2213_v21 = vpop.f32.mrf.mxu2  ;;  %v2146_v62 = vpop.f32.mrf.mxu0 }
 0x259   :  { %v1809_v1 = vpop.f32.mrf.mxu3  ;;  %v2214_v12 = vadd.f32 %v2213_v21, %v2144_v28  ;;  %v1743_v18 = vpop.f32.mrf.mxu1  ;;  %v6819_v21 = vld [vmem:[%s12310_s0 + $0x20] sm:$0xf] }
 0x25a   :  { %v1810_v3 = vadd.f32 %v1809_v1, %v1740_v52  ;;  %v8078_v1 = vld [vmem:[%s12310_s0 + $0x24] sm:$0xf0] }
 0x25b   :  { %v9829_v7 = vadd.f32 %v2214_v12, %v9756_v11  ;;  %v6813_v11 = vld [vmem:[%s12310_s0 + $0x18] sm:$0xf0]  ;;  %v8077_v12 = vld [vmem:[%s12310_s0 + $0x24] sm:$0xf] }
 0x25c   :  { %v1856_v61 = vadd.f32 %v1810_v3, %v9370_v16  ;;  %2544 = vmatmul.bf16.gmra.mxu1 %v6652_v14  ;;  %v9847_v17 = vor.u32 %v8075_v13, %v6813_v11 }
 0x25e   :  { %6778 = vmatmul.msk.bf16.gmra.mxu3 %vm253_vm0, %v6656_v6 }
 0x260   :  { %v2215_v16 = vpop.f32.mrf.mxu2  ;;  %v2149_v59 = vpop.f32.mrf.mxu0 }
 0x261   :  { %v1812_v19 = vpop.f32.mrf.mxu3  ;;  %v2216_v43 = vadd.f32 %v2215_v16, %v2146_v62  ;;  %v1745_v4 = vpop.f32.mrf.mxu1  ;;  %v9895_v62 = vor.u32 %v8078_v1, %v6819_v21  ;;  %v6667_v16 = vld [vmem:[%s12310_s0 + $0x90] sm:$0xf] }
 0x262   :  { %v1813_v24 = vadd.f32 %v1812_v19, %v1743_v18  ;;  %v8046_v19 = vld [vmem:[%s12310_s0 + $0x94] sm:$0xf0] }
 0x263   :  { %v9849_v63 = vadd.f32 %v2216_v43, %v1854_v23  ;;  %3149 = vmatmul.bf16.vlgmr.msrb.gmra.mxu0 %v9845_v39  ;;  %v6992_v23 = vor.u32 %v8103_v33, %v6991_v46  ;;  %v6668_v46 = vor.u32 %v8046_v19, %v6667_v16 }
 0x264   :  { %v1857_v38 = vadd.f32 %v1813_v24, %v9386_v32  ;;  %v8149_v32 = vld [vmem:[%s12309_s1 + $0x1a8] sm:$0xf0] }
 0x265   :  { %6945 = vmatmul.msk.bf16.vlgmr.msrb.gmra.mxu2 %vm253_vm0, %v9847_v17  ;;  %v7160_v8 = vor.u32 %v8149_v32, %v7159_v45  ;;  %3352 = vmatpush.bf16.msra.mxu1 %v6992_v23 }
 0x267   :  { %3738 = vmatpush.bf16.msra.mxu0 %v7160_v8  ;;  %v8102_v8 = vld [vmem:[%s12309_s1 + $0x58] sm:$0xf0] }
 0x268   :  { %v2218_v40 = vpop.f32.mrf.mxu2  ;;  %v2151_v47 = vpop.f32.mrf.mxu0  ;;  %v6988_v42 = vor.u32 %v8102_v8, %v6987_v44 }
 0x269   :  { %v1814_v2 = vpop.f32.mrf.mxu3  ;;  %v2219_v28 = vadd.f32 %v2218_v40, %v2149_v59  ;;  %v1748_v20 = vpop.f32.mrf.mxu1  ;;  %v8148_v40 = vld [vmem:[%s12309_s1 + $0x198] sm:$0xf0] }
 0x26a   :  { %v1815_v52 = vadd.f32 %v1814_v2, %v1745_v4  ;;  %v8079_v2 = vld [vmem:[%s12310_s0 + $0x34] sm:$0xf]  ;;  %3353 = vmatpush.bf16.msra.mxu1 %v6988_v42 }
 0x26b   :  { %v9879_v0 = vadd.f32 %v2219_v28, %v1855_v35  ;;  %v6821_v35 = vld [vmem:[%s12310_s0 + $0x28] sm:$0xf0]  ;;  %v6829_v28 = vld [vmem:[%s12310_s0 + $0x38] sm:$0xf0] }
 0x26c   :  { %v1858_v31 = vadd.f32 %v1815_v52, %v9414_v49  ;;  %2549 = vmatmul.bf16.gmra.mxu1 %v6660_v15  ;;  %v9897_v6 = vor.u32 %v8077_v12, %v6821_v35  ;;  %v9947_v1 = vor.u32 %v8079_v2, %v6829_v28  ;;  %v6983_v28 = vld [vmem:[%s12309_s1 + $0x44] sm:$0xf] }
 0x26e   :  { %6779 = vmatmul.msk.bf16.gmra.mxu3 %vm253_vm0, %v6664_v37 }
 0x270   :  { %v2220_v49 = vpop.f32.mrf.mxu2  ;;  %v2154_v18 = vpop.f32.mrf.mxu0 }
 0x271   :  { %v1817_v14 = vpop.f32.mrf.mxu3  ;;  %v2221_v3 = vadd.f32 %v2220_v49, %v2151_v47  ;;  %v1750_v27 = vpop.f32.mrf.mxu1  ;;  %v7156_v47 = vor.u32 %v8148_v40, %v7155_v56 }
 0x272   :  { %v1818_v48 = vadd.f32 %v1817_v14, %v1748_v20 }
 0x273   :  { %v9899_v13 = vadd.f32 %v2221_v3, %v1856_v61  ;;  %3154 = vmatmul.bf16.gmra.mxu0 %v9895_v62  ;;  %v8045_v61 = vld [vmem:[%s12310_s0 + $0x94] sm:$0xf]  ;;  %v6675_v3 = vld [vmem:[%s12310_s0 + $0xa0] sm:$0xf] }
 0x274   :  { %v1859_v11 = vadd.f32 %v1818_v48, %v9430_v30  ;;  %v6669_v30 = vld [vmem:[%s12310_s0 + $0x98] sm:$0xf0]  ;;  %3739 = vmatpush.bf16.msra.mxu0 %v7156_v47  ;;  %v8101_v47 = vld [vmem:[%s12309_s1 + $0x48] sm:$0xf0] }
 0x275   :  { %6946 = vmatmul.msk.bf16.gmra.mxu2 %vm253_vm0, %v9897_v6  ;;  %v6672_v23 = vor.u32 %v8045_v61, %v6669_v30 }
 0x278   :  { %v2223_v43 = vpop.f32.mrf.mxu2  ;;  %v2156_v4 = vpop.f32.mrf.mxu0 }
 0x279   :  { %v1819_v59 = vpop.f32.mrf.mxu3  ;;  %v2224_v24 = vadd.f32 %v2223_v43, %v2154_v18  ;;  %v1753_v45 = vpop.f32.mrf.mxu1  ;;  %v8048_v18 = vld [vmem:[%s12310_s0 + $0xa4] sm:$0xf0] }
 0x27a   :  { %v1820_v33 = vadd.f32 %v1819_v59, %v1750_v27  ;;  %v6676_v61 = vor.u32 %v8048_v18, %v6675_v3 }
 0x27b   :  { %v9917_v32 = vadd.f32 %v2224_v24, %v1857_v38  ;;  %v6827_v38 = vld [vmem:[%s12310_s0 + $0x30] sm:$0xf] }
 0x27c   :  { %v1860_v58 = vadd.f32 %v1820_v33, %v9446_v50  ;;  %2554 = vmatmul.bf16.gmra.mxu1 %v6668_v46  ;;  %v8080_v50 = vld [vmem:[%s12310_s0 + $0x34] sm:$0xf0]  ;;  %v6835_v46 = vld [vmem:[%s12310_s0 + $0x40] sm:$0xf]  ;;  %v8082_v33 = vld [vmem:[%s12310_s0 + $0x44] sm:$0xf0] }
 0x27d   :  { %v9945_v52 = vor.u32 %v8080_v50, %v6827_v38 }
 0x27e   :  { %6780 = vmatmul.msk.bf16.gmra.mxu3 %vm253_vm0, %v6672_v23  ;;  %v9983_v23 = vor.u32 %v8082_v33, %v6835_v46  ;;  %v8083_v46 = vld [vmem:[%s12310_s0 + $0x54] sm:$0xf] }
 0x280   :  { %v2225_v15 = vpop.f32.mrf.mxu2  ;;  %v2159_v21 = vpop.f32.mrf.mxu0 }
 0x281   :  { %v1822_v20 = vpop.f32.mrf.mxu3  ;;  %v2226_v37 = vadd.f32 %v2225_v15, %v2156_v4  ;;  %v1755_v35 = vpop.f32.mrf.mxu1  ;;  %v7151_v15 = vld [vmem:[%s12309_s1 + $0x184] sm:$0xf] }
 0x282   :  { %v1823_v12 = vadd.f32 %v1822_v20, %v1753_v45  ;;  %v8081_v45 = vld [vmem:[%s12310_s0 + $0x44] sm:$0xf]  ;;  %v6683_v20 = vld [vmem:[%s12310_s0 + $0xb0] sm:$0xf] }
 0x283   :  { %v9949_v49 = vadd.f32 %v2226_v37, %v1858_v31  ;;  %3159 = vmatmul.bf16.gmra.mxu0 %v9945_v52  ;;  %v8047_v31 = vld [vmem:[%s12310_s0 + $0xa4] sm:$0xf]  ;;  %v8050_v37 = vld [vmem:[%s12310_s0 + $0xb4] sm:$0xf0] }
 0x284   :  { %v1861_v14 = vadd.f32 %v1823_v12, %v9476_v25  ;;  %v6677_v25 = vld [vmem:[%s12310_s0 + $0xa8] sm:$0xf0]  ;;  %v8049_v12 = vld [vmem:[%s12310_s0 + $0xb4] sm:$0xf] }
 0x285   :  { %6947 = vmatmul.msk.bf16.gmra.mxu2 %vm253_vm0, %v9947_v1  ;;  %v6680_v59 = vor.u32 %v8047_v31, %v6677_v25 }
 0x288   :  { %v2228_v48 = vpop.f32.mrf.mxu2  ;;  %v2161_v19 = vpop.f32.mrf.mxu0 }
 0x289   :  { %v1824_v27 = vpop.f32.mrf.mxu3  ;;  %v2229_v16 = vadd.f32 %v2228_v48, %v2159_v21  ;;  %v1758_v43 = vpop.f32.mrf.mxu1  ;;  %v6684_v48 = vor.u32 %v8050_v37, %v6683_v20  ;;  %v8051_v37 = vld [vmem:[%s12310_s0 + $0xc4] sm:$0xf] }
 0x28a   :  { %v1825_v30 = vadd.f32 %v1824_v27, %v1755_v35  ;;  %v6685_v35 = vld [vmem:[%s12310_s0 + $0xb8] sm:$0xf0] }
 0x28b   :  { %v9967_v24 = vadd.f32 %v2229_v16, %v1859_v11  ;;  %v6837_v11 = vld [vmem:[%s12310_s0 + $0x48] sm:$0xf0] }
 0x28c   :  { %v1862_v4 = vadd.f32 %v1825_v30, %v9494_v34  ;;  %2559 = vmatmul.bf16.gmra.mxu1 %v6676_v61  ;;  %v9985_v38 = vor.u32 %v8081_v45, %v6837_v11 }
 0x28e   :  { %6781 = vmatmul.msk.bf16.gmra.mxu3 %vm253_vm0, %v6680_v59  ;;  %v8084_v59 = vld [vmem:[%s12310_s0 + $0x54] sm:$0xf0] }
 0x290   :  { %v2230_v34 = vpop.f32.mrf.mxu2  ;;  %v2164_v56 = vpop.f32.mrf.mxu0 }
 0x291   :  { %v1827_v44 = vpop.f32.mrf.mxu3  ;;  %v2231_v8 = vadd.f32 %v2230_v34, %v2161_v19  ;;  %v1760_v42 = vpop.f32.mrf.mxu1  ;;  %v6688_v19 = vor.u32 %v8049_v12, %v6685_v35 }
 0x292   :  { %v1828_v50 = vadd.f32 %v1827_v44, %v1758_v43  ;;  %v6843_v43 = vld [vmem:[%s12310_s0 + $0x50] sm:$0xf] }
 0x293   :  { %v9987_v40 = vadd.f32 %v2231_v8, %v1860_v58  ;;  %3164 = vmatmul.bf16.gmra.mxu0 %v9983_v23  ;;  %v6984_v58 = vor.u32 %v8101_v47, %v6983_v28  ;;  %v10037_v33 = vor.u32 %v8084_v59, %v6843_v43  ;;  %v6999_v28 = vld [vmem:[%s12309_s1 + $0x84] sm:$0xf]  ;;  %v8105_v47 = vld [vmem:[%s12309_s1 + $0x88] sm:$0xf0]  ;;  %v6979_v43 = vld [vmem:[%s12309_s1 + $0x34] sm:$0xf] }
 0x294   :  { %v9990_v2 = vadd.f32 %v1828_v50, %v9525_v36  ;;  %v8147_v36 = vld [vmem:[%s12309_s1 + $0x188] sm:$0xf0]  ;;  %v8100_v59 = vld [vmem:[%s12309_s1 + $0x38] sm:$0xf0] }
 0x295   :  { %6948 = vmatmul.msk.bf16.gmra.mxu2 %vm253_vm0, %v9985_v38  ;;  %v7152_v21 = vor.u32 %v8147_v36, %v7151_v15  ;;  %3354 = vmatpush.bf16.msra.mxu1 %v6984_v58  ;;  %v7000_v15 = vor.u32 %v8105_v47, %v6999_v28  ;;  %v6691_v58 = vld [vmem:[%s12310_s0 + $0xc0] sm:$0xf]  ;;  %v8052_v36 = vld [vmem:[%s12310_s0 + $0xc4] sm:$0xf0] }
 0x297   :  { %3740 = vmatpush.bf16.msra.mxu0 %v7152_v21  ;;  %v6693_v21 = vld [vmem:[%s12310_s0 + $0xc8] sm:$0xf0]  ;;  %3427 = vmatpush.bf16.msra.mxu3 %v7000_v15 }
 0x298   :  { %v2233_v3 = vpop.f32.mrf.mxu2  ;;  %v2166_v25 = vpop.f32.mrf.mxu0 }
 0x299   :  { %v1829_v18 = vpop.f32.mrf.mxu3  ;;  %v2234_v31 = vadd.f32 %v2233_v3, %v2164_v56  ;;  %v1763_v16 = vpop.f32.mrf.mxu1 }
 0x29a   :  { %v1830_v27 = vadd.f32 %v1829_v18, %v1760_v42 }
 0x29b   :  { %v10019_v61 = vadd.f32 %v2234_v31, %v1861_v14  ;;  %v6692_v31 = vor.u32 %v8052_v36, %v6691_v58 }
 0x29c   :  { %v10022_v30 = vadd.f32 %v1830_v27, %v9554_v10  ;;  %2564 = vmatmul.bf16.gmra.mxu1 %v6684_v48  ;;  %v6845_v10 = vld [vmem:[%s12310_s0 + $0x58] sm:$0xf0]  ;;  %v6696_v27 = vor.u32 %v8051_v37, %v6693_v21  ;;  %v6699_v37 = vld [vmem:[%s12310_s0 + $0xd0] sm:$0xf]  ;;  %v8054_v21 = vld [vmem:[%s12310_s0 + $0xd4] sm:$0xf0] }
 0x29d   :  { %v10039_v44 = vor.u32 %v8083_v46, %v6845_v10  ;;  %v7147_v46 = vld [vmem:[%s12309_s1 + $0x174] sm:$0xf]  ;;  %v6980_v10 = vor.u32 %v8100_v59, %v6979_v43 }
 0x29e   :  { %6782 = vmatmul.msk.bf16.gmra.mxu3 %vm253_vm0, %v6688_v19 }
 0x29f   :  { %3355 = vmatpush.bf16.msra.mxu1 %v6980_v10 }
 0x2a0   :  { %v2235_v14 = vpop.f32.mrf.mxu2  ;;  %v2169_v34 = vpop.f32.mrf.mxu0 }
 0x2a1   :  { %v1832_v45 = vpop.f32.mrf.mxu3  ;;  %v2236_v11 = vadd.f32 %v2235_v14, %v2166_v25  ;;  %v1765_v56 = vpop.f32.mrf.mxu1  ;;  %v8146_v14 = vld [vmem:[%s12309_s1 + $0x178] sm:$0xf0] }
 0x2a2   :  { %v1833_v8 = vadd.f32 %v1832_v45, %v1763_v16  ;;  %v8085_v45 = vld [vmem:[%s12310_s0 + $0x64] sm:$0xf] }
 0x2a3   :  { %v10041_v50 = vadd.f32 %v2236_v11, %v1862_v4  ;;  %3169 = vmatmul.bf16.gmra.mxu0 %v10037_v33  ;;  %v7167_v4 = vld [vmem:[%s12309_s1 + $0x1c4] sm:$0xf]  ;;  %v6853_v11 = vld [vmem:[%s12310_s0 + $0x68] sm:$0xf0] }
 0x2a4   :  { %v10044_v42 = vadd.f32 %v1833_v8, %v9571_v26  ;;  %v8151_v26 = vld [vmem:[%s12309_s1 + $0x1c8] sm:$0xf0] }
 0x2a5   :  { %6949 = vmatmul.msk.bf16.gmra.mxu2 %vm253_vm0, %v10039_v44  ;;  %v7168_v20 = vor.u32 %v8151_v26, %v7167_v4  ;;  %v10104_v4 = vor.u32 %v8085_v45, %v6853_v11 }
 0x2a7   :  { %3813 = vmatpush.bf16.msra.mxu2 %v7168_v20 }
 0x2a8   :  { %v2238_v12 = vpop.f32.mrf.mxu2  ;;  %v2171_v18 = vpop.f32.mrf.mxu0 }
 0x2a9   :  { %v1834_v35 = vpop.f32.mrf.mxu3  ;;  %v2239_v3 = vadd.f32 %v2238_v12, %v2169_v34  ;;  %v1768_v48 = vpop.f32.mrf.mxu1  ;;  %v7148_v34 = vor.u32 %v8146_v14, %v7147_v46  ;;  %v6859_v46 = vld [vmem:[%s12310_s0 + $0x70] sm:$0xf] }
 0x2aa   :  { %v1835_v25 = vadd.f32 %v1834_v35, %v1765_v56 }
 0x2ab   :  { %v10074_v16 = vadd.f32 %v2239_v3, %v9990_v2  ;;  %v6851_v2 = vld [vmem:[%s12310_s0 + $0x60] sm:$0xf]  ;;  %3741 = vmatpush.bf16.msra.mxu0 %v7148_v34 }
 0x2ac   :  { %v1866_v19 = vadd.f32 %v1835_v25, %v9587_v51  ;;  %2569 = vmatmul.bf16.gmra.mxu1 %v6692_v31  ;;  %v8086_v51 = vld [vmem:[%s12310_s0 + $0x64] sm:$0xf0]  ;;  %v6700_v31 = vor.u32 %v8054_v21, %v6699_v37  ;;  %v6975_v21 = vld [vmem:[%s12309_s1 + $0x24] sm:$0xf] }
 0x2ad   :  { %v10102_v56 = vor.u32 %v8086_v51, %v6851_v2  ;;  %v8088_v2 = vld [vmem:[%s12310_s0 + $0x74] sm:$0xf0]  ;;  %v8087_v51 = vld [vmem:[%s12310_s0 + $0x74] sm:$0xf] }
 0x2ae   :  { %6783 = vmatmul.msk.bf16.gmra.mxu3 %vm253_vm0, %v6696_v27  ;;  %v10142_v10 = vor.u32 %v8088_v2, %v6859_v46 }
 0x2b0   :  { %v2240_v8 = vpop.f32.mrf.mxu2  ;;  %v2174_v15 = vpop.f32.mrf.mxu0 }
 0x2b1   :  { %v1837_v28 = vpop.f32.mrf.mxu3  ;;  %v2241_v47 = vadd.f32 %v2240_v8, %v2171_v18  ;;  %v1770_v58 = vpop.f32.mrf.mxu1 }
 0x2b2   :  { %v1838_v26 = vadd.f32 %v1837_v28, %v1768_v48 }
 0x2b3   :  { %v10107_v36 = vadd.f32 %v2241_v47, %v10022_v30  ;;  %3174 = vmatmul.bf16.gmra.mxu0 %v10102_v56  ;;  %v8053_v30 = vld [vmem:[%s12310_s0 + $0xd4] sm:$0xf] }
 0x2b4   :  { %v1867_v20 = vadd.f32 %v1838_v26, %v9615_v54  ;;  %v6701_v54 = vld [vmem:[%s12310_s0 + $0xd8] sm:$0xf0]  ;;  %v6707_v26 = vld [vmem:[%s12310_s0 + $0xe0] sm:$0xf] }
 0x2b5   :  { %6950 = vmatmul.msk.bf16.gmra.mxu2 %vm253_vm0, %v10104_v4  ;;  %v6704_v27 = vor.u32 %v8053_v30, %v6701_v54  ;;  %v8099_v30 = vld [vmem:[%s12309_s1 + $0x28] sm:$0xf0]  ;;  %v7143_v54 = vld [vmem:[%s12309_s1 + $0x164] sm:$0xf] }
 0x2b8   :  { %v2243_v12 = vpop.f32.mrf.mxu2  ;;  %v2176_v18 = vpop.f32.mrf.mxu0 }
 0x2b9   :  { %v1839_v35 = vpop.f32.mrf.mxu3  ;;  %v2244_v3 = vadd.f32 %v2243_v12, %v2174_v15  ;;  %v1773_v48 = vpop.f32.mrf.mxu1 }
 0x2ba   :  { %v1840_v25 = vadd.f32 %v1839_v35, %v1770_v58  ;;  %v8056_v58 = vld [vmem:[%s12310_s0 + $0xe4] sm:$0xf0] }
 0x2bb   :  { %v10126_v43 = vadd.f32 %v2244_v3, %v10044_v42  ;;  %v6861_v42 = vld [vmem:[%s12310_s0 + $0x78] sm:$0xf0] }
 0x2bc   :  { %v1868_v59 = vadd.f32 %v1840_v25, %v9631_v29  ;;  %2574 = vmatmul.bf16.gmra.mxu1 %v6700_v31  ;;  %v10144_v34 = vor.u32 %v8087_v51, %v6861_v42  ;;  %v6976_v31 = vor.u32 %v8099_v30, %v6975_v21  ;;  %v8145_v25 = vld [vmem:[%s12309_s1 + $0x168] sm:$0xf0]  ;;  %v6715_v30 = vld [vmem:[%s12310_s0 + $0xf0] sm:$0xf] }
 0x2bd   :  { %v7144_v2 = vor.u32 %v8145_v25, %v7143_v54  ;;  %v8058_v54 = vld [vmem:[%s12310_s0 + $0xf4] sm:$0xf0] }
 0x2be   :  { %6784 = vmatmul.msk.bf16.gmra.mxu3 %vm253_vm0, %v6704_v27  ;;  %3356 = vmatpush.bf16.msra.mxu1 %v6976_v31  ;;  %v6716_v31 = vor.u32 %v8058_v54, %v6715_v30 }
 0x2bf   :  { %3742 = vmatpush.bf16.msra.mxu0 %v7144_v2 }
 0x2c0   :  { %v2245_v29 = vpop.f32.mrf.mxu2  ;;  %v2179_v11 = vpop.f32.mrf.mxu0 }
 0x2c1   :  { %v1842_v14 = vpop.f32.mrf.mxu3  ;;  %v2246_v45 = vadd.f32 %v2245_v29, %v2176_v18  ;;  %v1775_v28 = vpop.f32.mrf.mxu1  ;;  %v6708_v18 = vor.u32 %v8056_v58, %v6707_v26  ;;  %v6867_v29 = vld [vmem:[%s12310_s0 + $0x80] sm:$0xf] }
 0x2c2   :  { %v1843_v8 = vadd.f32 %v1842_v14, %v1773_v48  ;;  %v8090_v14 = vld [vmem:[%s12310_s0 + $0x84] sm:$0xf0] }
 0x2c3   :  { %v10146_v47 = vadd.f32 %v2246_v45, %v1866_v19  ;;  %3179 = vmatmul.bf16.gmra.mxu0 %v10142_v10  ;;  %v8055_v19 = vld [vmem:[%s12310_s0 + $0xe4] sm:$0xf] }
 0x2c4   :  { %v1869_v15 = vadd.f32 %v1843_v8, %v9647_v60  ;;  %v6709_v60 = vld [vmem:[%s12310_s0 + $0xe8] sm:$0xf0] }
 0x2c5   :  { %6951 = vmatmul.msk.bf16.gmra.mxu2 %vm253_vm0, %v10144_v34  ;;  %v6712_v46 = vor.u32 %v8055_v19, %v6709_v60 }
 0x2c8   :  { %v2248_v37 = vpop.f32.mrf.mxu2  ;;  %v2181_v3 = vpop.f32.mrf.mxu0 }
 0x2c9   :  { %v1844_v12 = vpop.f32.mrf.mxu3  ;;  %v2249_v35 = vadd.f32 %v2248_v37, %v2179_v11  ;;  %v2540_v27 = vpop.f32.mrf.mxu1  ;;  %v10192_v11 = vor.u32 %v8090_v14, %v6867_v29  ;;  %v6875_v29 = vld [vmem:[%s12310_s0 + $0x90] sm:$0xf]  ;;  %v8092_v14 = vld [vmem:[%s12310_s0 + $0x94] sm:$0xf0] }
 0x2ca   :  { %v1845_v48 = vadd.f32 %v1844_v12, %v1775_v28 }
 0x2cb   :  { %v10176_v51 = vadd.f32 %v2249_v35, %v1867_v20  ;;  %v8089_v20 = vld [vmem:[%s12310_s0 + $0x84] sm:$0xf] }
 0x2cc   :  { %v1870_v42 = vadd.f32 %v1845_v48, %v9675_v41  ;;  %2579 = vmatmul.bf16.gmra.mxu1 %v6708_v18  ;;  %v6869_v41 = vld [vmem:[%s12310_s0 + $0x88] sm:$0xf0] }
 0x2cd   :  { %v10194_v58 = vor.u32 %v8089_v20, %v6869_v41  ;;  %v8091_v20 = vld [vmem:[%s12310_s0 + $0x94] sm:$0xf]  ;;  %v10234_v41 = vor.u32 %v8092_v14, %v6875_v29  ;;  %v8097_v29 = vld [vmem:[%s12309_s1 + $0x8] sm:$0xf0] }
 0x2ce   :  { %6785 = vmatmul.msk.bf16.gmra.mxu3 %vm253_vm0, %v6712_v46 }
 0x2cf   :  { %12331 = vst [vmem:[#allocation2_spill] sm:$0xff] %v10234_v41 }
 0x2d0   :  { %v2250_v45 = vpop.f32.mrf.mxu2  ;;  %v2184_v26 = vpop.f32.mrf.mxu0 }
 0x2d1   :  { %v2251_v8 = vadd.f32 %v2250_v45, %v2181_v3  ;;  %v2609_v28 = vpop.f32.mrf.mxu3  ;;  %v2542_v60 = vpop.f32.mrf.mxu1  ;;  %v6971_v45 = vld [vmem:[%s12309_s1 + $0x14] sm:$0xf] }
 0x2d2   :  { %v2610_v19 = vadd.f32 %v2609_v28, %v2540_v27  ;;  %v7139_v28 = vld [vmem:[%s12309_s1 + $0x154] sm:$0xf] }
 0x2d3   :  { %v10196_v37 = vadd.f32 %v2251_v8, %v1868_v59  ;;  %3184 = vmatmul.bf16.gmra.mxu0 %v10192_v11  ;;  %v8057_v59 = vld [vmem:[%s12310_s0 + $0xf4] sm:$0xf]  ;;  %v8098_v8 = vld [vmem:[%s12309_s1 + $0x18] sm:$0xf0] }
 0x2d4   :  { %v10199_v21 = vadd.f32 %v2610_v19, %v9697_v57  ;;  %v6717_v57 = vld [vmem:[%s12310_s0 + $0xf8] sm:$0xf0]  ;;  %v6972_v54 = vor.u32 %v8098_v8, %v6971_v45 }
 0x2d5   :  { %6952 = vmatmul.msk.bf16.gmra.mxu2 %vm253_vm0, %v10194_v58  ;;  %v6720_v27 = vor.u32 %v8057_v59, %v6717_v57  ;;  %v8144_v59 = vld [vmem:[%s12309_s1 + $0x158] sm:$0xf0] }
 0x2d6   :  { %3357 = vmatpush.bf16.msra.mxu1 %v6972_v54  ;;  %v6883_v54 = vld [vmem:[%s12310_s0 + $0xa0] sm:$0xf] }
 0x2d8   :  { %v2253_v12 = vpop.f32.mrf.mxu2  ;;  %v2186_v18 = vpop.f32.mrf.mxu0 }
 0x2d9   :  { %v2254_v35 = vadd.f32 %v2253_v12, %v2184_v26  ;;  %v2611_v3 = vpop.f32.mrf.mxu3  ;;  %v2545_v48 = vpop.f32.mrf.mxu1 }
 0x2da   :  { %v2612_v25 = vadd.f32 %v2611_v3, %v2542_v60 }
 0x2db   :  { %v10216_v46 = vadd.f32 %v2254_v35, %v1869_v15  ;;  %v7140_v35 = vor.u32 %v8144_v59, %v7139_v28  ;;  %v8093_v59 = vld [vmem:[%s12310_s0 + $0xa4] sm:$0xf] }
 0x2dc   :  { %v10219_v2 = vadd.f32 %v2612_v25, %v9713_v9  ;;  %2584 = vmatmul.bf16.gmra.mxu1 %v6716_v31  ;;  %v6877_v9 = vld [vmem:[%s12310_s0 + $0x98] sm:$0xf0]  ;;  %v8060_v25 = vld [vmem:[%s12310_s0 + $0x104] sm:$0xf0] }
 0x2dd   :  { %v10245_v30 = vor.u32 %v8091_v20, %v6877_v9  ;;  %3743 = vmatpush.bf16.msra.mxu0 %v7140_v35 }
 0x2de   :  { %6786 = vmatmul.msk.bf16.gmra.mxu3 %vm253_vm0, %v6720_v27  ;;  %v6967_v27 = vld [vmem:[%s12309_s1 + $0x4] sm:$0xf] }
 0x2df   :  { %12332 = vst [vmem:[#allocation3_spill] sm:$0xff] %v10245_v30  ;;  %v6968_v45 = vor.u32 %v8097_v29, %v6967_v27  ;;  %v6731_v29 = vld [vmem:[%s12310_s0 + $0x110] sm:$0xf] }
 0x2e0   :  { %v2255_v15 = vpop.f32.mrf.mxu2  ;;  %v3150_v60 = vpop.f32.mrf.mxu0 }
 0x2e1   :  { %v2256_v26 = vadd.f32 %v2255_v15, %v2186_v18  ;;  %v2614_v19 = vpop.f32.mrf.mxu3  ;;  %v2547_v12 = vpop.f32.mrf.mxu1  ;;  %v6723_v18 = vld [vmem:[%s12310_s0 + $0x100] sm:$0xf]  ;;  %3358 = vmatpush.bf16.msra.mxu1 %v6968_v45  ;;  %v7135_v45 = vld [vmem:[%s12309_s1 + $0x144] sm:$0xf] }
 0x2e2   :  { %v2615_v57 = vadd.f32 %v2614_v19, %v2545_v48  ;;  %v6724_v15 = vor.u32 %v8060_v25, %v6723_v18 }
 0x2e3   :  { %v10250_v3 = vadd.f32 %v2256_v26, %v1870_v42  ;;  %3189 = vmatmul.bf16.gmra.mxu0 %v10234_v41  ;;  %v8059_v42 = vld [vmem:[%s12310_s0 + $0x104] sm:$0xf] }
 0x2e4   :  { %v10253_v31 = vadd.f32 %v2615_v57, %v9735_v55  ;;  %v6725_v55 = vld [vmem:[%s12310_s0 + $0x108] sm:$0xf0] }
 0x2e5   :  { %6953 = vmatmul.msk.bf16.gmra.mxu2 %vm253_vm0, %v10245_v30  ;;  %v6728_v26 = vor.u32 %v8059_v42, %v6725_v55 }
 0x2e8   :  { %v3219_v48 = vpop.f32.mrf.mxu2  ;;  %v3152_v9 = vpop.f32.mrf.mxu0 }
 0x2e9   :  { %v2616_v14 = vpop.f32.mrf.mxu3  ;;  %v10276_v20 = vadd.f32 %v3219_v48, %v3150_v60  ;;  %v2550_v28 = vpop.f32.mrf.mxu1  ;;  %v8094_v60 = vld [vmem:[%s12310_s0 + $0xa4] sm:$0xf0] }
 0x2ea   :  { %v2617_v8 = vadd.f32 %v2616_v14, %v2547_v12  ;;  %v10294_v12 = vor.u32 %v8094_v60, %v6883_v54  ;;  %v8062_v14 = vld [vmem:[%s12310_s0 + $0x114] sm:$0xf0] }
 0x2eb   :  { %v6732_v60 = vor.u32 %v8062_v14, %v6731_v29 }
 0x2ec   :  { %v10279_v19 = vadd.f32 %v2617_v8, %v9753_v5  ;;  %2589 = vmatmul.bf16.gmra.mxu1 %v6724_v15  ;;  %v6885_v5 = vld [vmem:[%s12310_s0 + $0xa8] sm:$0xf0]  ;;  %12334 = vst [vmem:[#allocation5_spill] sm:$0xff] %v10294_v12 }
 0x2ed   :  { %v10298_v42 = vor.u32 %v8093_v59, %v6885_v5  ;;  %v8143_v8 = vld [vmem:[%s12309_s1 + $0x148] sm:$0xf0] }
 0x2ee   :  { %12333 = vst [vmem:[#allocation4_spill] sm:$0xff] %v10279_v19  ;;  %6787 = vmatmul.msk.bf16.gmra.mxu3 %vm253_vm0, %v6728_v26  ;;  %v7136_v59 = vor.u32 %v8143_v8, %v7135_v45 }
 0x2ef   :  { %12335 = vst [vmem:[#allocation6_spill] sm:$0xff] %v10298_v42 }
 0x2f0   :  { %v3221_v57 = vpop.f32.mrf.mxu2  ;;  %v3155_v25 = vpop.f32.mrf.mxu0  ;;  %3744 = vmatpush.bf16.msra.mxu0 %v7136_v59  ;;  %v8073_v59 = vld [vmem:[%s12310_s0 + $0x4] sm:$0xf] }
 0x2f1   :  { %v2619_v35 = vpop.f32.mrf.mxu3  ;;  %v10296_v18 = vadd.f32 %v3221_v57, %v3152_v9  ;;  %v2552_v48 = vpop.f32.mrf.mxu1  ;;  %v8061_v9 = vld [vmem:[%s12310_s0 + $0x114] sm:$0xf] }
 0x2f2   :  { %v2620_v55 = vadd.f32 %v2619_v35, %v2550_v28 }
 0x2f3   :  { %3194 = vmatmul.bf16.gmra.mxu0 %v10294_v12 }
 0x2f4   :  { %v10301_v27 = vadd.f32 %v2620_v55, %v9783_v22  ;;  %v6733_v22 = vld [vmem:[%s12310_s0 + $0x118] sm:$0xf0] }
 0x2f5   :  { %6954 = vmatmul.msk.bf16.gmra.mxu2 %vm253_vm0, %v10298_v42  ;;  %v6736_v35 = vor.u32 %v8061_v9, %v6733_v22  ;;  %v6891_v42 = vld [vmem:[%s12310_s0 + $0xb0] sm:$0xf] }
 0x2f6   :  { %12336 = vst [vmem:[#allocation7_spill] sm:$0xff] %v10301_v27 }
 0x2f8   :  { %v3224_v15 = vpop.f32.mrf.mxu2  ;;  %v3157_v54 = vpop.f32.mrf.mxu0 }
 0x2f9   :  { %v2621_v28 = vpop.f32.mrf.mxu3  ;;  %v10324_v26 = vadd.f32 %v3224_v15, %v3155_v25  ;;  %v2555_v57 = vpop.f32.mrf.mxu1  ;;  %v8096_v25 = vld [vmem:[%s12310_s0 + $0xb4] sm:$0xf0] }
 0x2fa   :  { %v2622_v5 = vadd.f32 %v2621_v28, %v2552_v48  ;;  %v8095_v48 = vld [vmem:[%s12310_s0 + $0xb4] sm:$0xf]  ;;  %v10342_v14 = vor.u32 %v8096_v25, %v6891_v42  ;;  %v6959_v42 = vld [vmem:[%s12310_s0] sm:$0xf] }
 0x2fb   :  { %v7507_v25 = vld [vmem:[%s12309_s1 + $0x314] sm:$0xf] }
 0x2fc   :  { %v10327_v55 = vadd.f32 %v2622_v5, %v9812_v53  ;;  %2594 = vmatmul.bf16.gmra.mxu1 %v6732_v60  ;;  %v6893_v53 = vld [vmem:[%s12310_s0 + $0xb8] sm:$0xf0]  ;;  %12337 = vst [vmem:[#allocation8_spill] sm:$0xff] %v10342_v14 }
 0x2fd   :  { %v10346_v45 = vor.u32 %v8095_v48, %v6893_v53 }
 0x2fe   :  { %6788 = vmatmul.msk.bf16.gmra.mxu3 %vm253_vm0, %v6736_v35  ;;  %v8186_v35 = vld [vmem:[%s12309_s1 + $0x278] sm:$0xf0] }
 0x2ff   :  { %12339 = vst [vmem:[#allocation10_spill] sm:$0xff] %v10346_v45 }
 0x300   :  { %v3226_v29 = vpop.f32.mrf.mxu2  ;;  %v3160_v15 = vpop.f32.mrf.mxu0 }
 0x301   :  { %v2624_v9 = vpop.f32.mrf.mxu3  ;;  %v10344_v22 = vadd.f32 %v3226_v29, %v3157_v54  ;;  %v2557_v28 = vpop.f32.mrf.mxu1  ;;  %v8074_v54 = vld [vmem:[%s12310_s0 + $0x4] sm:$0xf0] }
 0x302   :  { %v2625_v8 = vadd.f32 %v2624_v9, %v2555_v57  ;;  %v7339_v57 = vld [vmem:[%s12309_s1 + $0x274] sm:$0xf]  ;;  %v6960_v9 = vor.u32 %v8074_v54, %v6959_v42  ;;  %v8108_v42 = vld [vmem:[%s12310_s0 + $0xc4] sm:$0xf0]  ;;  %v8184_v54 = vld [vmem:[%s12309_s1 + $0x258] sm:$0xf0] }
 0x303   :  { %12338 = vst [vmem:[#allocation9_spill] sm:$0xff] %v10344_v22  ;;  %3199 = vmatmul.bf16.gmra.mxu0 %v10342_v14 }
 0x304   :  { %v10349_v60 = vadd.f32 %v2625_v8, %v9829_v7  ;;  %v6961_v7 = vld [vmem:[%s12310_s0 + $0x8] sm:$0xf0]  ;;  %v7340_v8 = vor.u32 %v8186_v35, %v7339_v57 }
 0x305   :  { %6955 = vmatmul.msk.bf16.gmra.mxu2 %vm253_vm0, %v10346_v45  ;;  %v8220_v45 = vld [vmem:[%s12309_s1 + $0x318] sm:$0xf0]  ;;  %v6964_v22 = vor.u32 %v8073_v59, %v6961_v7 }
 0x306   :  { %v7508_v30 = vor.u32 %v8220_v45, %v7507_v25  ;;  %4222 = vmatpush.bf16.msrb.mxu3 %v7340_v8  ;;  %v8107_v45 = vld [vmem:[%s12310_s0 + $0xc4] sm:$0xf]  ;;  %v8218_v25 = vld [vmem:[%s12309_s1 + $0x2f8] sm:$0xf0] }
 0x308   :  { %v3229_v5 = vpop.f32.mrf.mxu2  ;;  %v3162_v29 = vpop.f32.mrf.mxu0  ;;  %4632 = vmatpush.bf16.msrb.mxu2 %v7508_v30 }
 0x309   :  { %v2626_v48 = vpop.f32.mrf.mxu3  ;;  %v10375_v53 = vadd.f32 %v3229_v5, %v3160_v15  ;;  %v2560_v12 = vpop.f32.mrf.mxu1  ;;  %v6899_v15 = vld [vmem:[%s12310_s0 + $0xc0] sm:$0xf] }
 0x30a   :  { %v2627_v14 = vadd.f32 %v2626_v48, %v2557_v28  ;;  %v7331_v28 = vld [vmem:[%s12309_s1 + $0x254] sm:$0xf] }
 0x30b   :  { %12340 = vst [vmem:[#allocation11_spill] sm:$0xff] %v10375_v53  ;;  %v7332_v35 = vor.u32 %v8184_v54, %v7331_v28 }
 0x30c   :  { %v10381_v41 = vadd.f32 %v2627_v14, %v9849_v63  ;;  %3359 = vmatmul.bf16.vlgmr.msra.gmra.mxu1 %v6960_v9  ;;  %v6901_v63 = vld [vmem:[%s12310_s0 + $0xc8] sm:$0xf0]  ;;  %v6900_v14 = vor.u32 %v8108_v42, %v6899_v15 }
 0x30d   :  { %v6904_v57 = vor.u32 %v8107_v45, %v6901_v63  ;;  %4147 = vmatpush.bf16.msrb.mxu1 %v7332_v35 }
 0x30e   :  { %12341 = vst [vmem:[#allocation12_spill] sm:$0xff] %v10381_v41  ;;  %7005 = vmatmul.msk.bf16.vlgmr.msra.gmra.mxu3 %vm253_vm0, %v6964_v22  ;;  %v7499_v22 = vld [vmem:[%s12309_s1 + $0x2f4] sm:$0xf] }
 0x30f   :  { %v7500_v8 = vor.u32 %v8218_v25, %v7499_v22 }
 0x310   :  { %v3231_v30 = vpop.f32.mrf.mxu2  ;;  %v3165_v5 = vpop.f32.mrf.mxu0 }
 0x311   :  { %v2629_v59 = vpop.f32.mrf.mxu3  ;;  %v10405_v7 = vadd.f32 %v3231_v30, %v3162_v29  ;;  %v2562_v9 = vpop.f32.mrf.mxu1  ;;  %4557 = vmatpush.bf16.msrb.mxu0 %v7500_v8  ;;  %v7327_v8 = vld [vmem:[%s12309_s1 + $0x244] sm:$0xf] }
 0x312   :  { %v2630_v48 = vadd.f32 %v2629_v59, %v2560_v12  ;;  %v8120_v12 = vld [vmem:[%s12310_s0 + $0x24] sm:$0xf0] }
 0x313   :  { %12342 = vst [vmem:[#allocation13_spill] sm:$0xff] %v10405_v7  ;;  %3204 = vmatmul.bf16.gmra.mxu0 %v6900_v14  ;;  %v8119_v14 = vld [vmem:[%s12310_s0 + $0x24] sm:$0xf] }
 0x314   :  { %v10411_v15 = vadd.f32 %v2630_v48, %v9879_v0  ;;  %v7039_v0 = vld [vmem:[%s12310_s0 + $0x20] sm:$0xf] }
 0x315   :  { %6956 = vmatmul.msk.bf16.gmra.mxu2 %vm253_vm0, %v6904_v57  ;;  %v7040_v22 = vor.u32 %v8120_v12, %v7039_v0  ;;  %v8217_v0 = vld [vmem:[%s12309_s1 + $0x2e8] sm:$0xf0] }
 0x318   :  { %v3234_v29 = vpop.f32.mrf.mxu2  ;;  %v3167_v45 = vpop.f32.mrf.mxu0 }
 0x319   :  { %v2631_v42 = vpop.f32.mrf.mxu3  ;;  %v10414_v30 = vadd.f32 %v3234_v29, %v3165_v5  ;;  %v2565_v28 = vpop.f32.mrf.mxu1  ;;  %v8183_v29 = vld [vmem:[%s12309_s1 + $0x248] sm:$0xf0] }
 0x31a   :  { %v2632_v63 = vadd.f32 %v2631_v42, %v2562_v9  ;;  %v7495_v42 = vld [vmem:[%s12309_s1 + $0x2e4] sm:$0xf] }
 0x31b   :  { %12343 = vst [vmem:[#allocation14_spill] sm:$0xff] %v10414_v30 }
 0x31c   :  { %v10417_v54 = vadd.f32 %v2632_v63, %v9899_v13  ;;  %3364 = vmatmul.bf16.gmra.mxu1 %v9845_v39  ;;  %v7041_v13 = vld [vmem:[%s12310_s0 + $0x28] sm:$0xf0] }
 0x31d   :  { %v7044_v35 = vor.u32 %v8119_v14, %v7041_v13  ;;  %v7496_v13 = vor.u32 %v8217_v0, %v7495_v42 }
 0x31e   :  { %7006 = vmatmul.msk.bf16.gmra.mxu3 %vm253_vm0, %v9847_v17 }
 0x31f   :  { %4558 = vmatpush.bf16.msrb.mxu0 %v7496_v13 }
 0x320   :  { %v3236_v39 = vpop.f32.mrf.mxu2  ;;  %v3170_v57 = vpop.f32.mrf.mxu0 }
 0x321   :  { %v2634_v59 = vpop.f32.mrf.mxu3  ;;  %v10434_v5 = vadd.f32 %v3236_v39, %v3167_v45  ;;  %v2567_v48 = vpop.f32.mrf.mxu1 }
 0x322   :  { %v2635_v25 = vadd.f32 %v2634_v59, %v2565_v28  ;;  %v7328_v28 = vor.u32 %v8183_v29, %v7327_v8  ;;  %v8122_v59 = vld [vmem:[%s12310_s0 + $0x34] sm:$0xf0] }
 0x323   :  { %12344 = vst [vmem:[#allocation15_spill] sm:$0xff] %v10434_v5  ;;  %3745 = vmatmul.bf16.vlgmr.msra.gmra.mxu0 %v7040_v22  ;;  %v7047_v22 = vld [vmem:[%s12310_s0 + $0x30] sm:$0xf]  ;;  %v2725_v5 = vmul.f32 %v10279_v19, %v10279_v19 }
 0x324   :  { %v10437_v9 = vadd.f32 %v2635_v25, %v9917_v32  ;;  %4148 = vmatpush.bf16.msrb.mxu1 %v7328_v28 }
 0x325   :  { %7173 = vmatmul.msk.bf16.vlgmr.msra.gmra.mxu2 %vm253_vm0, %v7044_v35  ;;  %v7048_v35 = vor.u32 %v8122_v59, %v7047_v22  ;;  %v7057_v22 = vld [vmem:[%s12310_s0 + $0x48] sm:$0xf0] }
 0x328   :  { %v3239_v17 = vpop.f32.mrf.mxu2  ;;  %v3172_v32 = vpop.f32.mrf.mxu0 }
 0x329   :  { %v2636_v45 = vpop.f32.mrf.mxu3  ;;  %v10449_v63 = vadd.f32 %v3239_v17, %v3170_v57  ;;  %v2570_v14 = vpop.f32.mrf.mxu1  ;;  %v8121_v57 = vld [vmem:[%s12310_s0 + $0x34] sm:$0xf] }
 0x32a   :  { %v2637_v12 = vadd.f32 %v2636_v45, %v2567_v48 }
 0x32b   :  { %12345 = vst [vmem:[#allocation16_spill] sm:$0xff] %v10449_v63 }
 0x32c   :  { %v10455_v39 = vadd.f32 %v2637_v12, %v9949_v49  ;;  %3369 = vmatmul.bf16.gmra.mxu1 %v9895_v62  ;;  %v7049_v49 = vld [vmem:[%s12310_s0 + $0x38] sm:$0xf0] }
 0x32d   :  { %v7052_v8 = vor.u32 %v8121_v57, %v7049_v49  ;;  %v7323_v57 = vld [vmem:[%s12309_s1 + $0x234] sm:$0xf]  ;;  %v8182_v49 = vld [vmem:[%s12309_s1 + $0x238] sm:$0xf0] }
 0x32e   :  { %7007 = vmatmul.msk.bf16.gmra.mxu3 %vm253_vm0, %v9897_v6 }
 0x330   :  { %v3241_v62 = vpop.f32.mrf.mxu2  ;;  %v3175_v17 = vpop.f32.mrf.mxu0 }
 0x331   :  { %v2639_v25 = vpop.f32.mrf.mxu3  ;;  %v10472_v48 = vadd.f32 %v3241_v62, %v3172_v32  ;;  %v10474_v42 = vpop.f32.mrf.mxu1  ;;  %v7055_v32 = vld [vmem:[%s12310_s0 + $0x40] sm:$0xf] }
 0x332   :  { %v2640_v29 = vadd.f32 %v2639_v25, %v2570_v14  ;;  %v8123_v14 = vld [vmem:[%s12310_s0 + $0x44] sm:$0xf] }
 0x333   :  { %12346 = vst [vmem:[#allocation17_spill] sm:$0xff] %v10472_v48  ;;  %3750 = vmatmul.bf16.gmra.mxu0 %v7048_v35 }
 0x334   :  { %v10477_v6 = vadd.f32 %v2640_v29, %v9967_v24  ;;  %v8124_v24 = vld [vmem:[%s12310_s0 + $0x44] sm:$0xf0]  ;;  %v8216_v29 = vld [vmem:[%s12309_s1 + $0x2d8] sm:$0xf0] }
 0x335   :  { %7174 = vmatmul.msk.bf16.gmra.mxu2 %vm253_vm0, %v7052_v8  ;;  %v7056_v59 = vor.u32 %v8124_v24, %v7055_v32  ;;  %v7324_v8 = vor.u32 %v8182_v49, %v7323_v57  ;;  %v8125_v57 = vld [vmem:[%s12310_s0 + $0x54] sm:$0xf]  ;;  %v7065_v49 = vld [vmem:[%s12310_s0 + $0x58] sm:$0xf0] }
 0x337   :  { %4149 = vmatpush.bf16.msrb.mxu1 %v7324_v8 }
 0x338   :  { %v3244_v45 = vpop.f32.mrf.mxu2  ;;  %v3177_v12 = vpop.f32.mrf.mxu0 }
 0x339   :  { %v10480_v28 = vpop.f32.mrf.mxu3  ;;  %v10482_v0 = vadd.f32 %v3244_v45, %v3175_v17  ;;  %v10484_v13 = vpop.f32.mrf.mxu1  ;;  %v7060_v17 = vor.u32 %v8123_v14, %v7057_v22  ;;  %v7063_v22 = vld [vmem:[%s12310_s0 + $0x50] sm:$0xf] }
 0x33b   :  { %12347 = vst [vmem:[#allocation18_spill] sm:$0xff] %v10482_v0 }
 0x33c   :  { %3374 = vmatmul.bf16.gmra.mxu1 %v9945_v52 }
 0x33e   :  { %7008 = vmatmul.msk.bf16.gmra.mxu3 %vm253_vm0, %v9947_v1  ;;  %v7491_v1 = vld [vmem:[%s12309_s1 + $0x2d4] sm:$0xf] }
 0x33f   :  { %v7492_v32 = vor.u32 %v8216_v29, %v7491_v1  ;;  %v7068_v29 = vor.u32 %v8125_v57, %v7065_v49 }
 0x340   :  { %v3246_v52 = vpop.f32.mrf.mxu2  ;;  %v3180_v25 = vpop.f32.mrf.mxu0 }
 0x341   :  { %v10510_v62 = vpop.f32.mrf.mxu3  ;;  %v10512_v35 = vadd.f32 %v3246_v52, %v3177_v12  ;;  %v10517_v45 = vpop.f32.mrf.mxu1  ;;  %4559 = vmatpush.bf16.msrb.mxu0 %v7492_v32 }
 0x343   :  { %12348 = vst [vmem:[#allocation19_spill] sm:$0xff] %v10512_v35  ;;  %3755 = vmatmul.bf16.gmra.mxu0 %v7056_v59  ;;  %v8126_v59 = vld [vmem:[%s12310_s0 + $0x54] sm:$0xf0] }
 0x344   :  { %v7064_v1 = vor.u32 %v8126_v59, %v7063_v22  ;;  %v8181_v22 = vld [vmem:[%s12309_s1 + $0x228] sm:$0xf0] }
 0x345   :  { %7175 = vmatmul.msk.bf16.gmra.mxu2 %vm253_vm0, %v7060_v17 }
 0x348   :  { %v3249_v24 = vpop.f32.mrf.mxu2  ;;  %v3182_v52 = vpop.f32.mrf.mxu0 }
 0x349   :  { %v10520_v0 = vpop.f32.mrf.mxu3  ;;  %v10522_v12 = vadd.f32 %v3249_v24, %v3180_v25  ;;  %v10524_v14 = vpop.f32.mrf.mxu1  ;;  %v7319_v24 = vld [vmem:[%s12309_s1 + $0x224] sm:$0xf] }
 0x34b   :  { %12349 = vst [vmem:[#allocation20_spill] sm:$0xff] %v10522_v12  ;;  %v7071_v12 = vld [vmem:[%s12310_s0 + $0x60] sm:$0xf] }
 0x34c   :  { %3379 = vmatmul.bf16.gmra.mxu1 %v9983_v23 }
 0x34e   :  { %7009 = vmatmul.msk.bf16.gmra.mxu3 %vm253_vm0, %v9985_v38 }
 0x350   :  { %v3251_v23 = vpop.f32.mrf.mxu2  ;;  %v3185_v8 = vpop.f32.mrf.mxu0 }
 0x351   :  { %v10541_v25 = vpop.f32.mrf.mxu3  ;;  %v10543_v17 = vadd.f32 %v3251_v23, %v3182_v52  ;;  %v10545_v32 = vpop.f32.mrf.mxu1  ;;  %v7487_v52 = vld [vmem:[%s12309_s1 + $0x2c4] sm:$0xf]  ;;  %v7320_v23 = vor.u32 %v8181_v22, %v7319_v24  ;;  %v2722_v24 = vmul.f32 %v10199_v21, %v10199_v21  ;;  %v2724_v22 = vmul.f32 %v10253_v31, %v10253_v31 }
 0x353   :  { %12350 = vst [vmem:[#allocation21_spill] sm:$0xff] %v10543_v17  ;;  %3760 = vmatmul.bf16.gmra.mxu0 %v7064_v1  ;;  %v8215_v1 = vld [vmem:[%s12309_s1 + $0x2c8] sm:$0xf0]  ;;  %4150 = vmatpush.bf16.msrb.mxu1 %v7320_v23 }
 0x354   :  { %v7488_v17 = vor.u32 %v8215_v1, %v7487_v52  ;;  %v2693_v1 = vadd.f32 %v10219_v2, %v10199_v21 }
 0x355   :  { %7176 = vmatmul.msk.bf16.gmra.mxu2 %vm253_vm0, %v7068_v29 }
 0x356   :  { %4560 = vmatpush.bf16.msrb.mxu0 %v7488_v17  ;;  %v8127_v17 = vld [vmem:[%s12310_s0 + $0x64] sm:$0xf]  ;;  %v2694_v7 = vadd.f32 %v2693_v1, %v10253_v31 }
 0x358   :  { %v3254_v38 = vpop.f32.mrf.mxu2  ;;  %v3187_v49 = vpop.f32.mrf.mxu0 }
 0x359   :  { %v10557_v59 = vpop.f32.mrf.mxu3  ;;  %v10559_v57 = vadd.f32 %v3254_v38, %v3185_v8  ;;  %v10564_v29 = vpop.f32.mrf.mxu1  ;;  %v8128_v8 = vld [vmem:[%s12310_s0 + $0x64] sm:$0xf0]  ;;  %v2723_v38 = vmul.f32 %v10219_v2, %v10219_v2 }
 0x35a   :  { %v7072_v23 = vor.u32 %v8128_v8, %v7071_v12  ;;  %v2726_v12 = vmul.f32 %v10301_v27, %v10301_v27  ;;  %v2695_v8 = vadd.f32 %v2694_v7, %v10279_v19  ;;  %v8185_v7 = vld [vmem:[%s12309_s1 + $0x268] sm:$0xf0] }
 0x35b   :  { %12351 = vst [vmem:[#allocation22_spill] sm:$0xff] %v10559_v57  ;;  %v2746_v63 = vadd.f32 %v2723_v38, %v2722_v24  ;;  %v2727_v38 = vmul.f32 %v10327_v55, %v10327_v55  ;;  %v2728_v24 = vmul.f32 %v10349_v60, %v10349_v60 }
 0x35c   :  { %3384 = vmatmul.bf16.gmra.mxu1 %v10037_v33  ;;  %v7073_v33 = vld [vmem:[%s12310_s0 + $0x68] sm:$0xf0] }
 0x35d   :  { %v7076_v48 = vor.u32 %v8127_v17, %v7073_v33  ;;  %v2747_v53 = vadd.f32 %v2746_v63, %v2724_v22  ;;  %v2696_v17 = vadd.f32 %v2695_v8, %v10301_v27  ;;  %v7335_v63 = vld [vmem:[%s12309_s1 + $0x264] sm:$0xf] }
 0x35e   :  { %7010 = vmatmul.msk.bf16.gmra.mxu3 %vm253_vm0, %v10039_v44  ;;  %v7336_v1 = vor.u32 %v8185_v7, %v7335_v63  ;;  %v2642_v7 = vadd.f32 %v10480_v28, %v10474_v42  ;;  %v2733_v42 = vmul.f32 %v10455_v39, %v10455_v39 }
 0x360   :  { %v3256_v52 = vpop.f32.mrf.mxu2  ;;  %v3190_v35 = vpop.f32.mrf.mxu0  ;;  %4223 = vmatpush.bf16.msrb.mxu3 %v7336_v1 }
 0x361   :  { %v10589_v44 = vpop.f32.mrf.mxu3  ;;  %v10591_v57 = vadd.f32 %v3256_v52, %v3187_v49  ;;  %v10595_v30 = vpop.f32.mrf.mxu1  ;;  %v2748_v49 = vadd.f32 %v2747_v53, %v2725_v5  ;;  %v7503_v53 = vld [vmem:[%s12309_s1 + $0x304] sm:$0xf]  ;;  %v2697_v5 = vadd.f32 %v2696_v17, %v10327_v55 }
 0x363   :  { %12352 = vst [vmem:[#allocation23_spill] sm:$0xff] %v10591_v57  ;;  %3765 = vmatmul.bf16.gmra.mxu0 %v7072_v23  ;;  %v2749_v33 = vadd.f32 %v2748_v49, %v2726_v12  ;;  %v8219_v12 = vld [vmem:[%s12309_s1 + $0x308] sm:$0xf0]  ;;  %v2729_v49 = vmul.f32 %v10381_v41, %v10381_v41  ;;  %v2698_v19 = vadd.f32 %v2697_v5, %v10349_v60 }
 0x364   :  { %v7504_v27 = vor.u32 %v8219_v12, %v7503_v53  ;;  %v2732_v5 = vmul.f32 %v10437_v9, %v10437_v9 }
 0x365   :  { %7177 = vmatmul.msk.bf16.gmra.mxu2 %vm253_vm0, %v7076_v48  ;;  %v2750_v8 = vadd.f32 %v2749_v33, %v2727_v38  ;;  %v7079_v38 = vld [vmem:[%s12310_s0 + $0x70] sm:$0xf]  ;;  %v8130_v33 = vld [vmem:[%s12310_s0 + $0x74] sm:$0xf0] }
 0x366   :  { %4633 = vmatpush.bf16.msrb.mxu2 %v7504_v27  ;;  %v7080_v12 = vor.u32 %v8130_v33, %v7079_v38  ;;  %v2647_v38 = vadd.f32 %v10520_v0, %v10517_v45 }
 0x367   :  { %v2751_v17 = vadd.f32 %v2750_v8, %v2728_v24  ;;  %v2731_v24 = vmul.f32 %v10417_v54, %v10417_v54  ;;  %v2645_v8 = vadd.f32 %v10510_v62, %v10484_v13  ;;  %v2734_v13 = vmul.f32 %v10477_v6, %v10477_v6 }
 0x368   :  { %v3259_v52 = vpop.f32.mrf.mxu2  ;;  %v3192_v23 = vpop.f32.mrf.mxu0  ;;  %v10680_v45 = vadd.f32 %v2647_v38, %v10041_v50  ;;  %v2655_v50 = vadd.f32 %v10589_v44, %v10564_v29  ;;  %v7087_v29 = vld [vmem:[%s12310_s0 + $0x80] sm:$0xf] }
 0x369   :  { %v10617_v48 = vpop.f32.mrf.mxu3  ;;  %v10619_v22 = vadd.f32 %v3259_v52, %v3190_v35  ;;  %v10626_v57 = vpop.f32.mrf.mxu1  ;;  %v2730_v35 = vmul.f32 %v10411_v15, %v10411_v15  ;;  %v2699_v52 = vadd.f32 %v2698_v19, %v10381_v41  ;;  %v2752_v63 = vadd.f32 %v2751_v17, %v2729_v49  ;;  %v8129_v19 = vld [vmem:[%s12310_s0 + $0x74] sm:$0xf] }
 0x36a   :  { %v10713_v44 = vadd.f32 %v2655_v50, %v10126_v43 }
 0x36b   :  { %12353 = vst [vmem:[#allocation24_spill] sm:$0xff] %v10619_v22  ;;  %v2700_v27 = vadd.f32 %v2699_v52, %v10411_v15  ;;  %v2753_v53 = vadd.f32 %v2752_v63, %v2730_v35  ;;  %v10663_v63 = vadd.f32 %v2642_v7, %v9987_v40 }
 0x36c   :  { %3389 = vmatmul.bf16.gmra.mxu1 %v10102_v56  ;;  %v7081_v56 = vld [vmem:[%s12310_s0 + $0x78] sm:$0xf0] }
 0x36d   :  { %v7084_v41 = vor.u32 %v8129_v19, %v7081_v56  ;;  %v2754_v52 = vadd.f32 %v2753_v53, %v2731_v24  ;;  %v2650_v24 = vadd.f32 %v10541_v25, %v10524_v14  ;;  %v2735_v0 = vmul.f32 %v10663_v63, %v10663_v63 }
 0x36e   :  { %7011 = vmatmul.msk.bf16.gmra.mxu3 %vm253_vm0, %v10104_v4  ;;  %v2701_v4 = vadd.f32 %v2700_v27, %v10417_v54  ;;  %v2652_v27 = vadd.f32 %v10557_v59, %v10545_v32  ;;  %v2737_v59 = vmul.f32 %v10680_v45, %v10680_v45 }
 0x36f   :  { %v2755_v33 = vadd.f32 %v2754_v52, %v2732_v5 }
 0x370   :  { %v3261_v1 = vpop.f32.mrf.mxu2  ;;  %v3195_v22 = vpop.f32.mrf.mxu0  ;;  %v2702_v35 = vadd.f32 %v2701_v4, %v10437_v9  ;;  %v10698_v4 = vadd.f32 %v2652_v27, %v10107_v36  ;;  %v8132_v36 = vld [vmem:[%s12310_s0 + $0x84] sm:$0xf0] }
 0x371   :  { %v2659_v49 = vpop.f32.mrf.mxu3  ;;  %v10657_v17 = vadd.f32 %v3261_v1, %v3192_v23  ;;  %v2592_v28 = vpop.f32.mrf.mxu1  ;;  %v10671_v23 = vadd.f32 %v2645_v8, %v10019_v61  ;;  %v2756_v40 = vadd.f32 %v2755_v33, %v2733_v42 }
 0x372   :  { %v2703_v62 = vadd.f32 %v2702_v35, %v10455_v39  ;;  %v2739_v43 = vmul.f32 %v10698_v4, %v10698_v4 }
 0x373   :  { %3770 = vmatmul.bf16.gmra.mxu0 %v7080_v12  ;;  %v2757_v56 = vadd.f32 %v2756_v40, %v2734_v13  ;;  %v2736_v14 = vmul.f32 %v10671_v23, %v10671_v23 }
 0x374   :  { %v2704_v19 = vadd.f32 %v2703_v62, %v10477_v6 }
 0x375   :  { %7178 = vmatmul.msk.bf16.gmra.mxu2 %vm253_vm0, %v7084_v41  ;;  %v10688_v41 = vadd.f32 %v2650_v24, %v10074_v16  ;;  %v2758_v12 = vadd.f32 %v2757_v56, %v2735_v0  ;;  %v2657_v16 = vadd.f32 %v10617_v48, %v10595_v30  ;;  %v2660_v30 = vadd.f32 %v2659_v49, %v10626_v57  ;;  %v7089_v48 = vld [vmem:[%s12310_s0 + $0x88] sm:$0xf0] }
 0x376   :  { %v2705_v7 = vadd.f32 %v2704_v19, %v10663_v63  ;;  %v2740_v0 = vmul.f32 %v10713_v44, %v10713_v44 }
 0x377   :  { %v2759_v8 = vadd.f32 %v2758_v12, %v2736_v14  ;;  %v2738_v52 = vmul.f32 %v10688_v41, %v10688_v41  ;;  %v10728_v38 = vadd.f32 %v2657_v16, %v10146_v47  ;;  %v10736_v56 = vadd.f32 %v2660_v30, %v10176_v51 }
 0x378   :  { %v3264_v61 = vpop.f32.mrf.mxu2  ;;  %v3197_v5 = vpop.f32.mrf.mxu0  ;;  %v2706_v32 = vadd.f32 %v2705_v7, %v10671_v23 }
 0x379   :  { %v2661_v25 = vpop.f32.mrf.mxu3  ;;  %v10690_v53 = vadd.f32 %v3264_v61, %v3195_v22  ;;  %v2595_v1 = vpop.f32.mrf.mxu1  ;;  %v2760_v42 = vadd.f32 %v2759_v8, %v2737_v59  ;;  %v2741_v7 = vmul.f32 %v10728_v38, %v10728_v38  ;;  %v2742_v51 = vmul.f32 %v10736_v56, %v10736_v56 }
 0x37a   :  { %v2707_v22 = vadd.f32 %v2706_v32, %v10680_v45  ;;  %v2662_v57 = vadd.f32 %v2661_v25, %v2592_v28 }
 0x37b   :  { %v2761_v33 = vadd.f32 %v2760_v42, %v2738_v52 }
 0x37c   :  { %3394 = vmatmul.bf16.gmra.mxu1 %v10142_v10  ;;  %v8131_v10 = vld [vmem:[%s12310_s0 + $0x84] sm:$0xf]  ;;  %v2708_v35 = vadd.f32 %v2707_v22, %v10688_v41  ;;  %v10742_v14 = vadd.f32 %v2662_v57, %v10196_v37 }
 0x37d   :  { %v7092_v40 = vor.u32 %v8131_v10, %v7089_v48  ;;  %v2762_v61 = vadd.f32 %v2761_v33, %v2739_v43 }
 0x37e   :  { %7012 = vmatmul.msk.bf16.gmra.mxu3 %vm253_vm0, %v10144_v34  ;;  %v7088_v34 = vor.u32 %v8132_v36, %v7087_v29  ;;  %v2709_v19 = vadd.f32 %v2708_v35, %v10698_v4  ;;  %v2743_v32 = vmul.f32 %v10742_v14, %v10742_v14 }
 0x37f   :  { %v2763_v25 = vadd.f32 %v2762_v61, %v2740_v0 }
 0x380   :  { %v3266_v49 = vpop.f32.mrf.mxu2  ;;  %v3200_v24 = vpop.f32.mrf.mxu0  ;;  %v2710_v28 = vadd.f32 %v2709_v19, %v10713_v44 }
 0x381   :  { %v2664_v13 = vpop.f32.mrf.mxu3  ;;  %v10730_v62 = vadd.f32 %v3266_v49, %v3197_v5  ;;  %v2597_v47 = vpop.f32.mrf.mxu1  ;;  %v7097_v49 = vld [vmem:[%s12310_s0 + $0x98] sm:$0xf0] }
 0x382   :  { %v2665_v27 = vadd.f32 %v2664_v13, %v2595_v1  ;;  %v2711_v5 = vadd.f32 %v2710_v28, %v10728_v38  ;;  %v2764_v1 = vadd.f32 %v2763_v25, %v2741_v7 }
 0x383   :  { %3775 = vmatmul.bf16.gmra.mxu0 %v7088_v34 }
 0x384   :  { %v10749_v50 = vadd.f32 %v2665_v27, %v10216_v46  ;;  %v2712_v12 = vadd.f32 %v2711_v5, %v10736_v56  ;;  %v2765_v22 = vadd.f32 %v2764_v1, %v2742_v51 }
 0x385   :  { %7179 = vmatmul.msk.bf16.gmra.mxu2 %vm253_vm0, %v7092_v40 }
 0x386   :  { %v2713_v52 = vadd.f32 %v2712_v12, %v10742_v14  ;;  %v2744_v29 = vmul.f32 %v10749_v50, %v10749_v50  ;;  %v2766_v10 = vadd.f32 %v2765_v22, %v2743_v32 }
 0x388   :  { %v3269_v37 = vpop.f32.mrf.mxu2  ;;  %v3202_v8 = vpop.f32.mrf.mxu0  ;;  %v2714_v48 = vadd.f32 %v2713_v52, %v10749_v50  ;;  %v2767_v35 = vadd.f32 %v2766_v10, %v2744_v29 }
 0x389   :  { %v2666_v59 = vpop.f32.mrf.mxu3  ;;  %v10754_v16 = vadd.f32 %v3269_v37, %v3200_v24  ;;  %v3360_v46 = vpop.f32.mrf.mxu1 }
 0x38a   :  { %v2667_v36 = vadd.f32 %v2666_v59, %v2597_v47  ;;  %v3361_v30 = vadd.f32 %v3360_v46, %v10276_v20  ;;  %v7095_v20 = vld [vmem:[%s12310_s0 + $0x90] sm:$0xf] }
 0x38c   :  { %v10762_v42 = vadd.f32 %v2667_v36, %v10250_v3  ;;  %3399 = vmatmul.bf16.gmra.mxu1 %v10192_v11  ;;  %v8134_v3 = vld [vmem:[%s12310_s0 + $0x94] sm:$0xf0]  ;;  %v8133_v11 = vld [vmem:[%s12310_s0 + $0x94] sm:$0xf] }
 0x38d   :  { %v7100_v0 = vor.u32 %v8133_v11, %v7097_v49  ;;  %v7105_v11 = vld [vmem:[%s12310_s0 + $0xa8] sm:$0xf0] }
 0x38e   :  { %v2715_v43 = vadd.f32 %v2714_v48, %v10762_v42  ;;  %v2745_v57 = vmul.f32 %v10762_v42, %v10762_v42  ;;  %7013 = vmatmul.msk.bf16.gmra.mxu3 %vm253_vm0, %v10194_v58  ;;  %v7096_v58 = vor.u32 %v8134_v3, %v7095_v20  ;;  %v12354_v48 = vld [vmem:[#allocation2_spill] sm:$0xff] }
 0x38f   :  { %v7103_v20 = vld [vmem:[%s12310_s0 + $0xa0] sm:$0xf]  ;;  %v8135_v3 = vld [vmem:[%s12310_s0 + $0xa4] sm:$0xf] }
 0x390   :  { %v2716_v34 = vrot.slane %v2715_v43, 4  ;;  %v2768_v33 = vadd.f32 %v2767_v35, %v2745_v57  ;;  %v3271_v13 = vpop.f32.mrf.mxu2  ;;  %v3205_v19 = vpop.f32.mrf.mxu0  ;;  %v12355_v57 = vld [vmem:[#allocation3_spill] sm:$0xff] }
 0x391   :  { %v10782_v24 = vadd.f32 %v3271_v13, %v3202_v8  ;;  %v3429_v40 = vpop.f32.mrf.mxu3  ;;  %v3362_v28 = vpop.f32.mrf.mxu1 }
 0x392   :  { %v2717_v27 = vadd.f32 %v2716_v34, %v2715_v43  ;;  %v2769_v47 = vrot.slane %v2768_v33, 4  ;;  %v3430_v61 = vadd.f32 %v3429_v40, %v3361_v30  ;;  %v3363_v7 = vadd.f32 %v3362_v28, %v10296_v18  ;;  %v12356_v28 = vld [vmem:[#allocation9_spill] sm:$0xff] }
 0x393   :  { %3780 = vmatmul.bf16.gmra.mxu0 %v7096_v58 }
 0x394   :  { %v2718_v25 = vrot.slane %v2717_v27, 2  ;;  %v2770_v5 = vadd.f32 %v2769_v47, %v2768_v33 }
 0x395   :  { %7180 = vmatmul.msk.bf16.gmra.mxu2 %vm253_vm0, %v7100_v0 }
 0x396   :  { %v2719_v51 = vadd.f32 %v2718_v25, %v2717_v27  ;;  %v2771_v1 = vrot.slane %v2770_v5, 2 }
 0x398   :  { %v2720_v12 = vrot.slane %v2719_v51, 1  ;;  %v2772_v32 = vadd.f32 %v2771_v1, %v2770_v5  ;;  %v3274_v37 = vpop.f32.mrf.mxu2  ;;  %v3207_v22 = vpop.f32.mrf.mxu0 }
 0x399   :  { %v10786_v59 = vadd.f32 %v3274_v37, %v3205_v19  ;;  %v3431_v8 = vpop.f32.mrf.mxu3  ;;  %v3365_v46 = vpop.f32.mrf.mxu1  ;;  %v7108_v19 = vor.u32 %v8135_v3, %v7105_v11 }
 0x39a   :  { %v2721_v52 = vadd.f32 %v2720_v12, %v2719_v51  ;;  %v2773_v29 = vrot.slane %v2772_v32, 1  ;;  %v3432_v36 = vadd.f32 %v3431_v8, %v3363_v7  ;;  %v3366_v18 = vadd.f32 %v3365_v46, %v10324_v26  ;;  %v8136_v26 = vld [vmem:[%s12310_s0 + $0xa4] sm:$0xf0] }
 0x39b   :  { %v7104_v33 = vor.u32 %v8136_v26, %v7103_v20 }
 0x39c   :  { %v2774_v30 = vadd.f32 %v2773_v29, %v2772_v32  ;;  %v10789_v10 = vmul.f32 0.0069444445, %v2721_v52  ;;  %3404 = vmatmul.bf16.gmra.mxu1 %v12354_v48  ;;  %v12358_v52 = vld [vmem:[#allocation11_spill] sm:$0xff]  ;;  %v7111_v48 = vld [vmem:[%s12310_s0 + $0xb0] sm:$0xf] }
 0x39e   :  { %v2776_v35 = vmul.f32 0.0069444445, %v2774_v30  ;;  %v2777_v43 = vmul.f32 %v10789_v10, %v10789_v10  ;;  %7014 = vmatmul.msk.bf16.gmra.mxu3 %vm253_vm0, %v12355_v57  ;;  %v12360_v30 = vld [vmem:[#allocation6_spill] sm:$0xff]  ;;  %v7113_v57 = vld [vmem:[%s12310_s0 + $0xb8] sm:$0xf0] }
 0x3a0   :  { %v2778_v49 = vsub.f32 %v2776_v35, %v2777_v43  ;;  %v3276_v34 = vpop.f32.mrf.mxu2  ;;  %v3746_v40 = vpop.f32.mrf.mxu0  ;;  %v8138_v35 = vld [vmem:[%s12310_s0 + $0xb4] sm:$0xf0] }
 0x3a1   :  { %v10808_v13 = vadd.f32 %v3276_v34, %v3207_v22  ;;  %v3434_v58 = vpop.f32.mrf.mxu3  ;;  %v3367_v47 = vpop.f32.mrf.mxu1  ;;  %v7112_v26 = vor.u32 %v8138_v35, %v7111_v48  ;;  %v12363_v35 = vld [vmem:[#allocation4_spill] sm:$0xff] }
 0x3a2   :  { %v2779_v0 = vadd.f32 0.001, %v2778_v49  ;;  %v10810_v27 = vadd.f32 %v3434_v58, %v3366_v18  ;;  %v3368_v7 = vadd.f32 %v3367_v47, %v12356_v28  ;;  %v12359_v18 = vld [vmem:[#allocation5_spill] sm:$0xff]  ;;  %v2790_v47 = vld [vmem:[%s12311_s2] sm:$0x1] }
 0x3a3   :  { %3785 = vmatmul.bf16.gmra.mxu0 %v7104_v33 }
 0x3a4   :  { %8289 = vrsqrt.f32 %v2779_v0  ;;  %vm2786_vm2 = vweird.f32 %v2779_v0 }
 0x3a5   :  { %7181 = vmatmul.msk.bf16.gmra.mxu2 %vm253_vm0, %v7108_v19 }
 0x3a8   :  { %v3815_v25 = vpop.f32.mrf.mxu2  ;;  %v3748_v1 = vpop.f32.mrf.mxu0 }
 0x3a9   :  { %v3436_v5 = vpop.f32.mrf.mxu3  ;;  %v3816_v51 = vadd.f32 %v3815_v25, %v3746_v40  ;;  %v3370_v37 = vpop.f32.mrf.mxu1 }
 0x3aa   :  { %v8290_v12 = vpop.eup %8289  ;;  %v10814_v32 = vadd.f32 %v3436_v5, %v3368_v7  ;;  %v3371_v29 = vadd.f32 %v3370_v37, %v12358_v52  ;;  %v12362_v7 = vld [vmem:[#allocation13_spill] sm:$0xff] }
 0x3ab   :  { %v2781_v8 = vmul.f32 %v8290_v12, %v2779_v0  ;;  %v10816_v22 = vadd.f32 %v3816_v51, %v3430_v61  ;;  %v8137_v61 = vld [vmem:[%s12310_s0 + $0xb4] sm:$0xf]  ;;  %vm2787_vm1 = vweird.f32 %v8290_v12 }
 0x3ac   :  { %3409 = vmatmul.bf16.gmra.mxu1 %v12359_v18  ;;  %v7116_v33 = vor.u32 %v8137_v61, %v7113_v57  ;;  %vm2788_vm3 = vmor %vm2786_vm2, %vm2787_vm1 }
 0x3ad   :  { %12357 = vst [vmem:[#allocation2_spill] sm:$0xff] %v10816_v22  ;;  %v2782_v46 = vmul.f32 %v8290_v12, %v2781_v8 }
 0x3ae   :  { %7015 = vmatmul.msk.bf16.gmra.mxu3 %vm253_vm0, %v12360_v30 }
 0x3af   :  { %v2783_v43 = vmul.f32 0.5, %v2782_v46 }
 0x3b0   :  { %v3817_v20 = vpop.f32.mrf.mxu2  ;;  %v3751_v34 = vpop.f32.mrf.mxu0 }
 0x3b1   :  { %v2784_v3 = vsub.f32 1.5, %v2783_v43  ;;  %v3439_v11 = vpop.f32.mrf.mxu3  ;;  %v3818_v49 = vadd.f32 %v3817_v20, %v3748_v1  ;;  %v3372_v40 = vpop.f32.mrf.mxu1  ;;  %v2792_v1 = vld [vmem:[%s12312_s3] sm:$0x1]  ;;  %v12364_v43 = vld [vmem:[#allocation7_spill] sm:$0xff] }
 0x3b2   :  { %v10834_v58 = vadd.f32 %v3439_v11, %v3371_v29  ;;  %v3373_v25 = vadd.f32 %v3372_v40, %v12362_v7  ;;  %v8213_v7 = vld [vmem:[%s12309_s1 + $0x2a8] sm:$0xf0] }
 0x3b3   :  { %v2785_v19 = vmul.f32 %v8290_v12, %v2784_v3  ;;  %v10839_v28 = vadd.f32 %v3818_v49, %v3432_v36  ;;  %3790 = vmatmul.bf16.gmra.mxu0 %v7112_v26  ;;  %v12365_v26 = vld [vmem:[#allocation12_spill] sm:$0xff]  ;;  %v8180_v49 = vld [vmem:[%s12309_s1 + $0x218] sm:$0xf0] }
 0x3b5   :  { %12361 = vst [vmem:[#allocation3_spill] sm:$0xff] %v10839_v28  ;;  %v2789_v5 = vsel %vm2788_vm3, %v8290_v12, %v2785_v19  ;;  %7182 = vmatmul.msk.bf16.gmra.mxu2 %vm253_vm0, %v7116_v33  ;;  %v10881_v33 = vld [vmem:[%s12309_s1 + $0x204] sm:$0xf]  ;;  %v8179_v19 = vld [vmem:[%s12309_s1 + $0x208] sm:$0xf0] }
 0x3b6   :  { %v2791_v51 = vmul.f32 %v2790_v47, %v2789_v5  ;;  %v7479_v47 = vld [vmem:[%s12309_s1 + $0x2a4] sm:$0xf] }
 0x3b7   :  { %v12367_v5 = vld [vmem:[#allocation10_spill] sm:$0xff] }
 0x3b8   :  { %v2793_v0 = vmul.f32 %v2791_v51, %v10789_v10  ;;  %v2795_v37 = vperm.slane %v2791_v51, 0  ;;  %v3820_v8 = vpop.f32.mrf.mxu2  ;;  %v10847_v36 = vpop.f32.mrf.mxu0 }
 0x3b9   :  { %v3441_v52 = vpop.f32.mrf.mxu3  ;;  %v3821_v29 = vadd.f32 %v3820_v8, %v3751_v34  ;;  %v10852_v48 = vpop.f32.mrf.mxu1 }
 0x3ba   :  { %v2794_v46 = vsub.f32 %v2792_v1, %v2793_v0  ;;  %v2796_v18 = vmul.f32 %v2795_v37, %v10199_v21  ;;  %v2797_v12 = vmul.f32 %v2795_v37, %v10219_v2  ;;  %v2798_v30 = vmul.f32 %v2795_v37, %v10253_v31  ;;  %v7315_v31 = vld [vmem:[%s12309_s1 + $0x214] sm:$0xf] }
 0x3bb   :  { %v2799_v61 = vmul.f32 %v2795_v37, %v12363_v35  ;;  %v2800_v57 = vmul.f32 %v2795_v37, %v12364_v43  ;;  %v2801_v10 = vmul.f32 %v2795_v37, %v10327_v55  ;;  %v2802_v20 = vmul.f32 %v2795_v37, %v10349_v60 }
 0x3bc   :  { %v2803_v3 = vmul.f32 %v2795_v37, %v12365_v26  ;;  %v2804_v11 = vmul.f32 %v2795_v37, %v10411_v15  ;;  %v2805_v21 = vmul.f32 %v2795_v37, %v10417_v54  ;;  %v2806_v2 = vmul.f32 %v2795_v37, %v10437_v9  ;;  %v7483_v54 = vld [vmem:[%s12309_s1 + $0x2b4] sm:$0xf]  ;;  %v8214_v9 = vld [vmem:[%s12309_s1 + $0x2b8] sm:$0xf0] }
 0x3bd   :  { %v2807_v55 = vmul.f32 %v2795_v37, %v10455_v39  ;;  %v2808_v60 = vmul.f32 %v2795_v37, %v10477_v6  ;;  %v2809_v34 = vmul.f32 %v2795_v37, %v10663_v63  ;;  %v2810_v15 = vmul.f32 %v2795_v37, %v10671_v23  ;;  %v12366_v39 = vld [vmem:[#allocation8_spill] sm:$0xff] }
 0x3be   :  { %3414 = vmatmul.bf16.gmra.mxu1 %v12366_v39  ;;  %v2811_v6 = vmul.f32 %v2795_v37, %v10680_v45  ;;  %v2812_v63 = vmul.f32 %v2795_v37, %v10688_v41  ;;  %v2813_v23 = vmul.f32 %v2795_v37, %v10698_v4  ;;  %v2814_v40 = vmul.f32 %v2795_v37, %v10713_v44 }
 0x3bf   :  { %7016 = vmatmul.msk.bf16.gmra.mxu3 %vm253_vm0, %v12367_v5  ;;  %v2815_v45 = vmul.f32 %v2795_v37, %v10728_v38  ;;  %v2816_v41 = vmul.f32 %v2795_v37, %v10736_v56  ;;  %v2817_v4 = vmul.f32 %v2795_v37, %v10742_v14  ;;  %v2818_v44 = vmul.f32 %v2795_v37, %v10749_v50 }
 0x3c0   :  { %v2819_v51 = vmul.f32 %v2795_v37, %v10762_v42  ;;  %v2821_v1 = vperm.slane %v2794_v46, 0  ;;  %v7316_v0 = vor.u32 %v8180_v49, %v7315_v31  ;;  %v7484_v8 = vor.u32 %v8214_v9, %v7483_v54  ;;  %v3822_v35 = vpop.f32.mrf.mxu2  ;;  %v3756_v56 = vpop.f32.mrf.mxu0 }
 0x3c1   :  { %v7312_v43 = vor.u32 %v8179_v19, %v10881_v33  ;;  %v7480_v26 = vor.u32 %v8213_v7, %v7479_v47  ;;  %v10905_v39 = vadd.f32 %v3441_v52, %v3373_v25  ;;  %v10908_v5 = vadd.f32 %v3821_v29, %v10810_v27  ;;  %v3444_v38 = vpop.f32.mrf.mxu3  ;;  %v3377_v42 = vpop.f32.mrf.mxu1  ;;  %v10913_v25 = vld [vmem:[%s12309_s1 + $0x1f4] sm:$0xf] }
 0x3c2   :  { %v2823_v28 = vadd.f32 %v2821_v1, %v2796_v18  ;;  %v2824_v14 = vadd.f32 %v2821_v1, %v2797_v12  ;;  %v2825_v22 = vadd.f32 %v2821_v1, %v2798_v30  ;;  %v2826_v50 = vadd.f32 %v2821_v1, %v2799_v61  ;;  %4151 = vmatpush.bf16.msrb.mxu1 %v7316_v0  ;;  %v8178_v12 = vld [vmem:[%s12309_s1 + $0x1f8] sm:$0xf0]  ;;  %v7475_v30 = vld [vmem:[%s12309_s1 + $0x294] sm:$0xf] }
 0x3c3   :  { %v2827_v37 = vadd.f32 %v2821_v1, %v2800_v57  ;;  %v2828_v46 = vadd.f32 %v2821_v1, %v2801_v10  ;;  %v2829_v31 = vadd.f32 %v2821_v1, %v2802_v20  ;;  %v2830_v49 = vadd.f32 %v2821_v1, %v2803_v3  ;;  %4561 = vmatpush.bf16.msrb.mxu0 %v7484_v8  ;;  %v8212_v61 = vld [vmem:[%s12309_s1 + $0x298] sm:$0xf0] }
 0x3c4   :  { %v2831_v27 = vadd.f32 %v2821_v1, %v2804_v11  ;;  %v10915_v52 = vadd.f32 %v2821_v1, %v2805_v21  ;;  %v10917_v29 = vadd.f32 %v2821_v1, %v2806_v2  ;;  %v10919_v18 = vadd.f32 %v2821_v1, %v2807_v55  ;;  %2847 = vst [vmem:[%s12313_s4] sm:$0xff] %v2823_v28  ;;  %v7119_v28 = vld [vmem:[%s12310_s0 + $0xc0] sm:$0xf]  ;;  %v8140_v11 = vld [vmem:[%s12310_s0 + $0xc4] sm:$0xf0] }
 0x3c5   :  { %v10933_v57 = vadd.f32 %v2821_v1, %v2808_v60  ;;  %v10935_v10 = vadd.f32 %v2821_v1, %v2809_v34  ;;  %v10937_v20 = vadd.f32 %v2821_v1, %v2810_v15  ;;  %v10939_v3 = vadd.f32 %v2821_v1, %v2811_v6  ;;  %2848 = vst [vmem:[%s12313_s4 + $0x10] sm:$0xff] %v2824_v14  ;;  %v8139_v34 = vld [vmem:[%s12310_s0 + $0xc4] sm:$0xf]  ;;  %v7121_v15 = vld [vmem:[%s12310_s0 + $0xc8] sm:$0xf0] }
 0x3c6   :  { %v10950_v21 = vadd.f32 %v2821_v1, %v2812_v63  ;;  %v10952_v2 = vadd.f32 %v2821_v1, %v2813_v23  ;;  %v10954_v55 = vadd.f32 %v2821_v1, %v2814_v40  ;;  %v10956_v60 = vadd.f32 %v2821_v1, %v2815_v45  ;;  %2849 = vst [vmem:[%s12313_s4 + $0x20] sm:$0xff] %v2825_v22  ;;  %v8153_v22 = vld [vmem:[%s12310_s0 + $0x34] sm:$0xf]  ;;  %v7209_v63 = vld [vmem:[%s12310_s0 + $0x38] sm:$0xf0]  ;;  %v12368_v40 = vld [vmem:[#allocation14_spill] sm:$0xff] }
 0x3c7   :  { %v10967_v54 = vadd.f32 %v2821_v1, %v2816_v41  ;;  %v10969_v9 = vadd.f32 %v2821_v1, %v2817_v4  ;;  %v10971_v33 = vadd.f32 %v2821_v1, %v2818_v44  ;;  %v10973_v6 = vadd.f32 %v2821_v1, %v2819_v51  ;;  %2850 = vst [vmem:[%s12313_s4 + $0x30] sm:$0xff] %v2826_v50  ;;  %v7303_v45 = vld [vmem:[%s12309_s1 + $0x1e4] sm:$0xf]  ;;  %v8177_v41 = vld [vmem:[%s12309_s1 + $0x1e8] sm:$0xf0] }
 0x3c8   :  { %2851 = vst [vmem:[%s12313_s4 + $0x40] sm:$0xff] %v2827_v37  ;;  %4152 = vmatpush.bf16.msrb.mxu1 %v7312_v43  ;;  %4562 = vmatpush.bf16.msrb.mxu0 %v7480_v26  ;;  %v7308_v23 = vor.u32 %v8178_v12, %v10913_v25  ;;  %v3376_v19 = vadd.f32 %v10852_v48, %v12368_v40  ;;  %v3825_v7 = vpop.f32.mrf.mxu2  ;;  %v12369_v44 = vld [vmem:[#allocation15_spill] sm:$0xff]  ;;  %v3758_v8 = vpop.f32.mrf.mxu0  ;;  %v7471_v43 = vld [vmem:[%s12309_s1 + $0x284] sm:$0xf]  ;;  %v8154_v37 = vld [vmem:[%s12310_s0 + $0x34] sm:$0xf0] }
 0x3c9   :  { %v7476_v47 = vor.u32 %v8212_v61, %v7475_v30  ;;  %2852 = vst [vmem:[%s12313_s4 + $0x50] sm:$0xff] %v2828_v46  ;;  %v3823_v4 = vadd.f32 %v3822_v35, %v10847_v36  ;;  %v3378_v51 = vadd.f32 %v3377_v42, %v12369_v44  ;;  %v7120_v1 = vor.u32 %v8140_v11, %v7119_v28  ;;  %v3446_v0 = vpop.f32.mrf.mxu3  ;;  %v8211_v26 = vld [vmem:[%s12309_s1 + $0x288] sm:$0xf0]  ;;  %v3380_v35 = vpop.f32.mrf.mxu1  ;;  %v7207_v42 = vld [vmem:[%s12310_s0 + $0x30] sm:$0xf] }
 0x3ca   :  { %v7124_v48 = vor.u32 %v8139_v34, %v7121_v15  ;;  %2853 = vst [vmem:[%s12313_s4 + $0x60] sm:$0xff] %v2829_v31  ;;  %v11010_v14 = vadd.f32 %v3444_v38, %v3376_v19  ;;  %v3826_v36 = vadd.f32 %v3825_v7, %v3756_v56  ;;  %v7212_v50 = vor.u32 %v8153_v22, %v7209_v63  ;;  %v12370_v56 = vld [vmem:[#allocation16_spill] sm:$0xff]  ;;  %v8254_v12 = vld [vmem:[%s12309_s1 + $0x3b8] sm:$0xf0]  ;;  %v8155_v44 = vld [vmem:[%s12310_s0 + $0x44] sm:$0xf] }
 0x3cb   :  { %2854 = vst [vmem:[%s12313_s4 + $0x70] sm:$0xff] %v2830_v49  ;;  %v11022_v46 = vadd.f32 %v3823_v4, %v10814_v32  ;;  %3795 = vmatmul.bf16.gmra.mxu0 %v7120_v1  ;;  %v11025_v38 = vadd.f32 %v3446_v0, %v3378_v51  ;;  %v3381_v31 = vadd.f32 %v3380_v35, %v12370_v56  ;;  %v7675_v25 = vld [vmem:[%s12309_s1 + $0x3b4] sm:$0xf]  ;;  %v8288_v28 = vld [vmem:[%s12309_s1 + $0x458] sm:$0xf0] }
 0x3cc   :  { %7183 = vmatmul.msk.bf16.gmra.mxu2 %vm253_vm0, %v7124_v48  ;;  %2855 = vst [vmem:[%s12313_s4 + $0x80] sm:$0xff] %v2831_v27  ;;  %4153 = vmatpush.bf16.msrb.mxu1 %v7308_v23  ;;  %v11038_v32 = vadd.f32 %v3826_v36, %v10834_v58  ;;  %v7304_v49 = vor.u32 %v8177_v41, %v7303_v45  ;;  %v7843_v61 = vld [vmem:[%s12309_s1 + $0x454] sm:$0xf]  ;;  %v8252_v27 = vld [vmem:[%s12309_s1 + $0x398] sm:$0xf0] }
 0x3cd   :  { %4563 = vmatpush.bf16.msrb.mxu0 %v7476_v47  ;;  %v7472_v30 = vor.u32 %v8211_v26, %v7471_v43  ;;  %2856 = vst [vmem:[%s12313_s4 + $0x90] sm:$0xff] %v10915_v52  ;;  %v7667_v58 = vld [vmem:[%s12309_s1 + $0x394] sm:$0xf]  ;;  %v7676_v11 = vor.u32 %v8254_v12, %v7675_v25  ;;  %v8286_v34 = vld [vmem:[%s12309_s1 + $0x438] sm:$0xf0]  ;;  %v7208_v15 = vor.u32 %v8154_v37, %v7207_v42  ;;  %v12373_v12 = vld [vmem:[#allocation19_spill] sm:$0xff] }
 0x3ce   :  { %2857 = vst [vmem:[%s12313_s4 + $0xa0] sm:$0xff] %v10917_v29  ;;  %v7835_v52 = vld [vmem:[%s12309_s1 + $0x434] sm:$0xf]  ;;  %v7844_v22 = vor.u32 %v8288_v28, %v7843_v61  ;;  %v7668_v63 = vor.u32 %v8252_v27, %v7667_v58  ;;  %v12371_v7 = vld [vmem:[#allocation17_spill] sm:$0xff]  ;;  %v8156_v26 = vld [vmem:[%s12310_s0 + $0x44] sm:$0xf0] }
 0x3cf   :  { %7341 = vmatmul.msk.bf16.vlgmr.msrb.gmra.mxu3 %vm253_vm0, %v7212_v50  ;;  %2858 = vst [vmem:[%s12313_s4 + $0xb0] sm:$0xff] %v10919_v18  ;;  %v7836_v29 = vor.u32 %v8286_v34, %v7835_v52  ;;  %v8142_v41 = vld [vmem:[%s12310_s0 + $0xd4] sm:$0xf0]  ;;  %v7375_v56 = vld [vmem:[%s12310_s0 + $0x40] sm:$0xf] }
 0x3d0   :  { %2859 = vst [vmem:[%s12313_s4 + $0xc0] sm:$0xff] %v10933_v57  ;;  %v3827_v23 = vpop.f32.mrf.mxu2  ;;  %4154 = vmatpush.bf16.msrb.mxu1 %v7304_v49  ;;  %v3761_v18 = vpop.f32.mrf.mxu0  ;;  %5042 = vmatpush.bf16.msra.mxu3 %v7676_v11  ;;  %v7663_v61 = vld [vmem:[%s12309_s1 + $0x384] sm:$0xf]  ;;  %v8251_v28 = vld [vmem:[%s12309_s1 + $0x388] sm:$0xf0] }
 0x3d1   :  { %4564 = vmatpush.bf16.msrb.mxu0 %v7472_v30  ;;  %2860 = vst [vmem:[%s12313_s4 + $0xd0] sm:$0xff] %v10935_v10  ;;  %v3449_v40 = vpop.f32.mrf.mxu3  ;;  %v3828_v19 = vadd.f32 %v3827_v23, %v3758_v8  ;;  %5452 = vmatpush.bf16.msra.mxu2 %v7844_v22  ;;  %v3382_v57 = vpop.f32.mrf.mxu1  ;;  %v8187_v30 = vld [vmem:[%s12310_s0 + $0x44] sm:$0xf]  ;;  %v7664_v58 = vor.u32 %v8251_v28, %v7663_v61  ;;  %v8285_v11 = vld [vmem:[%s12309_s1 + $0x428] sm:$0xf0] }
 0x3d2   :  { %2861 = vst [vmem:[%s12313_s4 + $0xe0] sm:$0xff] %v10937_v20  ;;  %v11083_v47 = vadd.f32 %v3449_v40, %v3381_v31  ;;  %v3383_v45 = vadd.f32 %v3382_v57, %v12371_v7  ;;  %v7127_v20 = vld [vmem:[%s12310_s0 + $0xd0] sm:$0xf]  ;;  %v8188_v31 = vld [vmem:[%s12310_s0 + $0x44] sm:$0xf0] }
 0x3d3   :  { %2862 = vst [vmem:[%s12313_s4 + $0xf0] sm:$0xff] %v10939_v3  ;;  %v11090_v10 = vadd.f32 %v3828_v19, %v10905_v39  ;;  %4155 = vmatmul.bf16.vlgmr.msrb.gmra.mxu1 %v7208_v15  ;;  %v8141_v39 = vld [vmem:[%s12310_s0 + $0xd4] sm:$0xf]  ;;  %v7129_v3 = vld [vmem:[%s12310_s0 + $0xd8] sm:$0xf0]  ;;  %v7376_v34 = vor.u32 %v8188_v31, %v7375_v56 }
 0x3d4   :  { %4967 = vmatpush.bf16.msra.mxu1 %v7668_v63  ;;  %2863 = vst [vmem:[%s12313_s4 + $0x100] sm:$0xff] %v10950_v21  ;;  %v7128_v21 = vor.u32 %v8142_v41, %v7127_v20  ;;  %v7132_v4 = vor.u32 %v8141_v39, %v7129_v3  ;;  %v7831_v27 = vld [vmem:[%s12309_s1 + $0x424] sm:$0xf]  ;;  %v8157_v22 = vld [vmem:[%s12310_s0 + $0x54] sm:$0xf] }
 0x3d5   :  { %5377 = vmatpush.bf16.msra.mxu0 %v7836_v29  ;;  %2864 = vst [vmem:[%s12313_s4 + $0x110] sm:$0xff] %v10952_v2  ;;  %v7217_v2 = vld [vmem:[%s12310_s0 + $0x48] sm:$0xf0]  ;;  %v7832_v52 = vor.u32 %v8285_v11, %v7831_v27  ;;  %v7225_v63 = vld [vmem:[%s12310_s0 + $0x58] sm:$0xf0]  ;;  %v12374_v20 = vld [vmem:[#allocation20_spill] sm:$0xff] }
 0x3d6   :  { %2865 = vst [vmem:[%s12313_s4 + $0x120] sm:$0xff] %v10954_v55  ;;  %v7220_v8 = vor.u32 %v8155_v44, %v7217_v2  ;;  %v7228_v7 = vor.u32 %v8157_v22, %v7225_v63  ;;  %v7223_v39 = vld [vmem:[%s12310_s0 + $0x50] sm:$0xf]  ;;  %v8158_v3 = vld [vmem:[%s12310_s0 + $0x54] sm:$0xf0] }
 0x3d7   :  { %2866 = vst [vmem:[%s12313_s4 + $0x130] sm:$0xff] %v10956_v60  ;;  %v7231_v28 = vld [vmem:[%s12310_s0 + $0x60] sm:$0xf]  ;;  %v8250_v27 = vld [vmem:[%s12309_s1 + $0x378] sm:$0xf0] }
 0x3d8   :  { %2867 = vst [vmem:[%s12313_s4 + $0x140] sm:$0xff] %v10967_v54  ;;  %v3830_v55 = vpop.f32.mrf.mxu2  ;;  %v3763_v1 = vpop.f32.mrf.mxu0  ;;  %4968 = vmatpush.bf16.msra.mxu1 %v7664_v58  ;;  %v7659_v58 = vld [vmem:[%s12309_s1 + $0x374] sm:$0xf]  ;;  %v8284_v11 = vld [vmem:[%s12309_s1 + $0x418] sm:$0xf0] }
 0x3d9   :  { %2868 = vst [vmem:[%s12313_s4 + $0x150] sm:$0xff] %v10969_v9  ;;  %v3451_v60 = vpop.f32.mrf.mxu3  ;;  %v3831_v51 = vadd.f32 %v3830_v55, %v3761_v18  ;;  %v3385_v0 = vpop.f32.mrf.mxu1  ;;  %v12372_v9 = vld [vmem:[#allocation18_spill] sm:$0xff]  ;;  %5378 = vmatpush.bf16.msra.mxu0 %v7832_v52  ;;  %v7660_v52 = vor.u32 %v8250_v27, %v7659_v58  ;;  %v8193_v58 = vld [vmem:[%s12310_s0 + $0x74] sm:$0xf] }
 0x3da   :  { %2869 = vst [vmem:[%s12313_s4 + $0x160] sm:$0xff] %v10971_v33  ;;  %v3452_v48 = vadd.f32 %v3451_v60, %v3383_v45  ;;  %v3386_v43 = vadd.f32 %v3385_v0, %v12372_v9  ;;  %v7215_v33 = vld [vmem:[%s12310_s0 + $0x40] sm:$0xf]  ;;  %v8190_v9 = vld [vmem:[%s12310_s0 + $0x54] sm:$0xf0] }
 0x3db   :  { %2870 = vst [vmem:[%s12313_s4 + $0x170] sm:$0xff] %v10973_v6  ;;  %3800 = vmatmul.bf16.gmra.mxu0 %v7128_v21  ;;  %v11145_v54 = vadd.f32 %v3831_v51, %v11010_v14  ;;  %v7216_v36 = vor.u32 %v8156_v26, %v7215_v33  ;;  %v7224_v21 = vor.u32 %v8158_v3, %v7223_v39  ;;  %v8192_v39 = vld [vmem:[%s12310_s0 + $0x64] sm:$0xf0]  ;;  %v8191_v3 = vld [vmem:[%s12310_s0 + $0x64] sm:$0xf] }
 0x3dc   :  { %7184 = vmatmul.msk.bf16.gmra.mxu2 %vm253_vm0, %v7132_v4  ;;  %4969 = vmatpush.bf16.msra.mxu1 %v7660_v52  ;;  %v7655_v27 = vld [vmem:[%s12309_s1 + $0x364] sm:$0xf]  ;;  %v8283_v52 = vld [vmem:[%s12309_s1 + $0x408] sm:$0xf0] }
 0x3df   :  { %7342 = vmatmul.msk.bf16.gmra.mxu3 %vm253_vm0, %v7220_v8  ;;  %v7383_v8 = vld [vmem:[%s12310_s0 + $0x50] sm:$0xf] }
 0x3e0   :  { %v3832_v6 = vpop.f32.mrf.mxu2  ;;  %v3766_v42 = vpop.f32.mrf.mxu0  ;;  %v7384_v33 = vor.u32 %v8190_v9, %v7383_v8 }
 0x3e1   :  { %v3454_v35 = vpop.f32.mrf.mxu3  ;;  %v3833_v50 = vadd.f32 %v3832_v6, %v3763_v1  ;;  %v3387_v14 = vpop.f32.mrf.mxu1  ;;  %v12375_v1 = vld [vmem:[#allocation21_spill] sm:$0xff]  ;;  %v7233_v6 = vld [vmem:[%s12310_s0 + $0x68] sm:$0xf0] }
 0x3e2   :  { %v3455_v37 = vadd.f32 %v3454_v35, %v3386_v43  ;;  %v3388_v49 = vadd.f32 %v3387_v14, %v12373_v12  ;;  %v8189_v43 = vld [vmem:[%s12310_s0 + $0x54] sm:$0xf] }
 0x3e3   :  { %v11162_v25 = vadd.f32 %v3833_v50, %v11025_v38  ;;  %4160 = vmatmul.bf16.gmra.mxu1 %v7216_v36  ;;  %v7377_v38 = vld [vmem:[%s12310_s0 + $0x48] sm:$0xf0]  ;;  %v8159_v36 = vld [vmem:[%s12310_s0 + $0x64] sm:$0xf] }
 0x3e4   :  { %v7380_v15 = vor.u32 %v8187_v30, %v7377_v38  ;;  %v7236_v12 = vor.u32 %v8159_v36, %v7233_v6  ;;  %v12376_v30 = vld [vmem:[#allocation22_spill] sm:$0xff]  ;;  %v8160_v38 = vld [vmem:[%s12310_s0 + $0x64] sm:$0xf0]  ;;  %v7239_v36 = vld [vmem:[%s12310_s0 + $0x70] sm:$0xf] }
 0x3e5   :  { %v8162_v6 = vld [vmem:[%s12310_s0 + $0x74] sm:$0xf0] }
 0x3e8   :  { %v3835_v29 = vpop.f32.mrf.mxu2  ;;  %v3768_v19 = vpop.f32.mrf.mxu0 }
 0x3e9   :  { %v3456_v23 = vpop.f32.mrf.mxu3  ;;  %v3836_v40 = vadd.f32 %v3835_v29, %v3766_v42  ;;  %v3390_v57 = vpop.f32.mrf.mxu1 }
 0x3ea   :  { %v3457_v18 = vadd.f32 %v3456_v23, %v3388_v49  ;;  %v3391_v41 = vadd.f32 %v3390_v57, %v12374_v20 }
 0x3eb   :  { %4565 = vmatmul.bf16.vlgmr.msrb.gmra.mxu0 %v7376_v34  ;;  %v11191_v45 = vadd.f32 %v3836_v40, %v11083_v47 }
 0x3ec   :  { %7509 = vmatmul.msk.bf16.vlgmr.msrb.gmra.mxu2 %vm253_vm0, %v7380_v15  ;;  %v7232_v15 = vor.u32 %v8160_v38, %v7231_v28 }
 0x3ef   :  { %7343 = vmatmul.msk.bf16.gmra.mxu3 %vm253_vm0, %v7228_v7  ;;  %v12377_v7 = vld [vmem:[#allocation23_spill] sm:$0xff] }
 0x3f0   :  { %v3837_v4 = vpop.f32.mrf.mxu2  ;;  %v3771_v55 = vpop.f32.mrf.mxu0 }
 0x3f1   :  { %v3459_v44 = vpop.f32.mrf.mxu3  ;;  %v3838_v2 = vadd.f32 %v3837_v4, %v3768_v19  ;;  %v3392_v47 = vpop.f32.mrf.mxu1 }
 0x3f2   :  { %v3460_v60 = vadd.f32 %v3459_v44, %v3391_v41  ;;  %v3393_v0 = vadd.f32 %v3392_v47, %v12375_v1  ;;  %v7391_v41 = vld [vmem:[%s12310_s0 + $0x60] sm:$0xf]  ;;  %v8161_v44 = vld [vmem:[%s12310_s0 + $0x74] sm:$0xf] }
 0x3f3   :  { %v11201_v51 = vadd.f32 %v3838_v2, %v3452_v48  ;;  %4165 = vmatmul.bf16.gmra.mxu1 %v7224_v21  ;;  %v7385_v48 = vld [vmem:[%s12310_s0 + $0x58] sm:$0xf0]  ;;  %v7392_v21 = vor.u32 %v8192_v39, %v7391_v41 }
 0x3f4   :  { %v7388_v26 = vor.u32 %v8189_v43, %v7385_v48  ;;  %v7241_v2 = vld [vmem:[%s12310_s0 + $0x78] sm:$0xf0] }
 0x3f5   :  { %v7244_v43 = vor.u32 %v8161_v44, %v7241_v2  ;;  %v8164_v44 = vld [vmem:[%s12310_s0 + $0x84] sm:$0xf0] }
 0x3f8   :  { %v3840_v35 = vpop.f32.mrf.mxu2  ;;  %v3773_v14 = vpop.f32.mrf.mxu0 }
 0x3f9   :  { %v3461_v50 = vpop.f32.mrf.mxu3  ;;  %v3841_v42 = vadd.f32 %v3840_v35, %v3771_v55  ;;  %v3395_v31 = vpop.f32.mrf.mxu1  ;;  %v7240_v35 = vor.u32 %v8162_v6, %v7239_v36  ;;  %v8195_v36 = vld [vmem:[%s12310_s0 + $0x84] sm:$0xf] }
 0x3fa   :  { %v3462_v56 = vadd.f32 %v3461_v50, %v3393_v0  ;;  %v3396_v61 = vadd.f32 %v3395_v31, %v12376_v30  ;;  %v7399_v30 = vld [vmem:[%s12310_s0 + $0x70] sm:$0xf] }
 0x3fb   :  { %4570 = vmatmul.bf16.gmra.mxu0 %v7384_v33  ;;  %v11223_v49 = vadd.f32 %v3841_v42, %v3455_v37  ;;  %v7827_v37 = vld [vmem:[%s12309_s1 + $0x414] sm:$0xf] }
 0x3fc   :  { %7510 = vmatmul.msk.bf16.gmra.mxu2 %vm253_vm0, %v7388_v26  ;;  %v7828_v34 = vor.u32 %v8284_v11, %v7827_v37  ;;  %v12378_v33 = vld [vmem:[#allocation24_spill] sm:$0xff]  ;;  %v8249_v37 = vld [vmem:[%s12309_s1 + $0x368] sm:$0xf0] }
 0x3fd   :  { %v7656_v11 = vor.u32 %v8249_v37, %v7655_v27 }
 0x3fe   :  { %5379 = vmatpush.bf16.msra.mxu0 %v7828_v34 }
 0x3ff   :  { %7344 = vmatmul.msk.bf16.gmra.mxu3 %vm253_vm0, %v7236_v12  ;;  %4970 = vmatpush.bf16.msra.mxu1 %v7656_v11 }
 0x400   :  { %v3842_v22 = vpop.f32.mrf.mxu2  ;;  %v3776_v23 = vpop.f32.mrf.mxu0 }
 0x401   :  { %v3464_v63 = vpop.f32.mrf.mxu3  ;;  %v3843_v29 = vadd.f32 %v3842_v22, %v3773_v14  ;;  %v3397_v19 = vpop.f32.mrf.mxu1 }
 0x402   :  { %v3465_v40 = vadd.f32 %v3464_v63, %v3396_v61  ;;  %v3398_v20 = vadd.f32 %v3397_v19, %v12377_v7  ;;  %v8194_v61 = vld [vmem:[%s12310_s0 + $0x74] sm:$0xf0]  ;;  %v8163_v63 = vld [vmem:[%s12310_s0 + $0x84] sm:$0xf] }
 0x403   :  { %v11245_v57 = vadd.f32 %v3843_v29, %v3457_v18  ;;  %4170 = vmatmul.bf16.gmra.mxu1 %v7232_v15  ;;  %v7393_v18 = vld [vmem:[%s12310_s0 + $0x68] sm:$0xf0]  ;;  %v7400_v15 = vor.u32 %v8194_v61, %v7399_v30 }
 0x404   :  { %v7396_v4 = vor.u32 %v8191_v3, %v7393_v18  ;;  %v7249_v29 = vld [vmem:[%s12310_s0 + $0x88] sm:$0xf0] }
 0x405   :  { %v7252_v3 = vor.u32 %v8163_v63, %v7249_v29  ;;  %v8253_v30 = vld [vmem:[%s12309_s1 + $0x3a8] sm:$0xf0] }
 0x408   :  { %v3845_v55 = vpop.f32.mrf.mxu2  ;;  %v3778_v0 = vpop.f32.mrf.mxu0 }
 0x409   :  { %v3466_v47 = vpop.f32.mrf.mxu3  ;;  %v3846_v1 = vadd.f32 %v3845_v55, %v3776_v23  ;;  %v3400_v9 = vpop.f32.mrf.mxu1 }
 0x40a   :  { %v3467_v8 = vadd.f32 %v3466_v47, %v3398_v20  ;;  %v3401_v26 = vadd.f32 %v3400_v9, %v12378_v33  ;;  %v7407_v33 = vld [vmem:[%s12310_s0 + $0x80] sm:$0xf] }
 0x40b   :  { %4575 = vmatmul.bf16.gmra.mxu0 %v7392_v21  ;;  %v11267_v48 = vadd.f32 %v3846_v1, %v3460_v60 }
 0x40c   :  { %7511 = vmatmul.msk.bf16.gmra.mxu2 %vm253_vm0, %v7396_v4  ;;  %v7247_v4 = vld [vmem:[%s12310_s0 + $0x80] sm:$0xf] }
 0x40d   :  { %v7248_v2 = vor.u32 %v8164_v44, %v7247_v4 }
 0x40f   :  { %7345 = vmatmul.msk.bf16.gmra.mxu3 %vm253_vm0, %v7244_v43 }
 0x410   :  { %v3847_v50 = vpop.f32.mrf.mxu2  ;;  %v3781_v31 = vpop.f32.mrf.mxu0 }
 0x411   :  { %v3469_v42 = vpop.f32.mrf.mxu3  ;;  %v3848_v14 = vadd.f32 %v3847_v50, %v3778_v0  ;;  %v3402_v60 = vpop.f32.mrf.mxu1  ;;  %v7257_v50 = vld [vmem:[%s12310_s0 + $0x98] sm:$0xf0] }
 0x412   :  { %v11277_v12 = vadd.f32 %v3469_v42, %v3401_v26  ;;  %v3403_v38 = vadd.f32 %v3402_v60, %v10657_v17  ;;  %v7823_v17 = vld [vmem:[%s12309_s1 + $0x404] sm:$0xf]  ;;  %v8196_v26 = vld [vmem:[%s12310_s0 + $0x84] sm:$0xf0] }
 0x413   :  { %v11285_v28 = vadd.f32 %v3848_v14, %v3462_v56  ;;  %4175 = vmatmul.bf16.gmra.mxu1 %v7240_v35  ;;  %v7401_v56 = vld [vmem:[%s12310_s0 + $0x78] sm:$0xf0]  ;;  %v7824_v34 = vor.u32 %v8283_v52, %v7823_v17  ;;  %v7408_v6 = vor.u32 %v8196_v26, %v7407_v33  ;;  %v7671_v14 = vld [vmem:[%s12309_s1 + $0x3a4] sm:$0xf]  ;;  %v7255_v52 = vld [vmem:[%s12310_s0 + $0x90] sm:$0xf] }
 0x414   :  { %v7404_v22 = vor.u32 %v8193_v58, %v7401_v56  ;;  %v7672_v37 = vor.u32 %v8253_v30, %v7671_v14  ;;  %v7839_v17 = vld [vmem:[%s12309_s1 + $0x444] sm:$0xf]  ;;  %v7265_v33 = vld [vmem:[%s12310_s0 + $0xa8] sm:$0xf0]  ;;  %v7263_v14 = vld [vmem:[%s12310_s0 + $0xa0] sm:$0xf] }
 0x415   :  { %5380 = vmatpush.bf16.msra.mxu0 %v7824_v34  ;;  %v8166_v34 = vld [vmem:[%s12310_s0 + $0x94] sm:$0xf0] }
 0x416   :  { %5043 = vmatpush.bf16.msra.mxu3 %v7672_v37 }
 0x418   :  { %v3850_v23 = vpop.f32.mrf.mxu2  ;;  %v3783_v20 = vpop.f32.mrf.mxu0 }
 0x419   :  { %v3471_v19 = vpop.f32.mrf.mxu3  ;;  %v3851_v7 = vadd.f32 %v3850_v23, %v3781_v31  ;;  %v3405_v39 = vpop.f32.mrf.mxu1  ;;  %v7651_v23 = vld [vmem:[%s12309_s1 + $0x354] sm:$0xf] }
 0x41a   :  { %v3472_v41 = vadd.f32 %v3471_v19, %v3403_v38  ;;  %v3406_v21 = vadd.f32 %v3405_v39, %v10690_v53  ;;  %v8248_v19 = vld [vmem:[%s12309_s1 + $0x358] sm:$0xf0] }
 0x41b   :  { %4580 = vmatmul.bf16.gmra.mxu0 %v7400_v15  ;;  %v11313_v18 = vadd.f32 %v3851_v7, %v3465_v40  ;;  %v7819_v7 = vld [vmem:[%s12309_s1 + $0x3f4] sm:$0xf] }
 0x41c   :  { %7512 = vmatmul.msk.bf16.gmra.mxu2 %vm253_vm0, %v7404_v22 }
 0x41f   :  { %7346 = vmatmul.msk.bf16.gmra.mxu3 %vm253_vm0, %v7252_v3  ;;  %v7652_v3 = vor.u32 %v8248_v19, %v7651_v23  ;;  %v8247_v23 = vld [vmem:[%s12309_s1 + $0x348] sm:$0xf0] }
 0x420   :  { %v3852_v55 = vpop.f32.mrf.mxu2  ;;  %v3786_v0 = vpop.f32.mrf.mxu0 }
 0x421   :  { %v3474_v47 = vpop.f32.mrf.mxu3  ;;  %v3853_v1 = vadd.f32 %v3852_v55, %v3783_v20  ;;  %v3407_v40 = vpop.f32.mrf.mxu1  ;;  %4971 = vmatpush.bf16.msra.mxu1 %v7652_v3  ;;  %v7815_v3 = vld [vmem:[%s12309_s1 + $0x3e4] sm:$0xf] }
 0x422   :  { %v11323_v9 = vadd.f32 %v3474_v47, %v3406_v21  ;;  %v3408_v53 = vadd.f32 %v3407_v40, %v10730_v62  ;;  %v8165_v62 = vld [vmem:[%s12310_s0 + $0x94] sm:$0xf]  ;;  %v8282_v21 = vld [vmem:[%s12309_s1 + $0x3f8] sm:$0xf0] }
 0x423   :  { %v11325_v43 = vadd.f32 %v3853_v1, %v3467_v8  ;;  %4180 = vmatmul.bf16.gmra.mxu1 %v7248_v2  ;;  %v7409_v8 = vld [vmem:[%s12310_s0 + $0x88] sm:$0xf0]  ;;  %v7260_v27 = vor.u32 %v8165_v62, %v7257_v50  ;;  %v7415_v2 = vld [vmem:[%s12310_s0 + $0x90] sm:$0xf]  ;;  %v7820_v55 = vor.u32 %v8282_v21, %v7819_v7  ;;  %v8198_v1 = vld [vmem:[%s12310_s0 + $0x94] sm:$0xf0] }
 0x424   :  { %v7412_v35 = vor.u32 %v8195_v36, %v7409_v8  ;;  %v8281_v21 = vld [vmem:[%s12309_s1 + $0x3e8] sm:$0xf0] }
 0x425   :  { %5381 = vmatpush.bf16.msra.mxu0 %v7820_v55  ;;  %v8170_v55 = vld [vmem:[%s12310_s0 + $0xb4] sm:$0xf0] }
 0x428   :  { %v3855_v42 = vpop.f32.mrf.mxu2  ;;  %v3788_v58 = vpop.f32.mrf.mxu0 }
 0x429   :  { %v3476_v31 = vpop.f32.mrf.mxu3  ;;  %v3856_v60 = vadd.f32 %v3855_v42, %v3786_v0  ;;  %v3410_v38 = vpop.f32.mrf.mxu1  ;;  %v8197_v0 = vld [vmem:[%s12310_s0 + $0x94] sm:$0xf] }
 0x42a   :  { %v11352_v61 = vadd.f32 %v3476_v31, %v3408_v53  ;;  %v3411_v11 = vadd.f32 %v3410_v38, %v10754_v16  ;;  %v7256_v16 = vor.u32 %v8166_v34, %v7255_v52  ;;  %v8167_v53 = vld [vmem:[%s12310_s0 + $0xa4] sm:$0xf]  ;;  %v8168_v31 = vld [vmem:[%s12310_s0 + $0xa4] sm:$0xf0] }
 0x42b   :  { %4585 = vmatmul.bf16.gmra.mxu0 %v7408_v6  ;;  %v11356_v56 = vadd.f32 %v3856_v60, %v11277_v12  ;;  %v8287_v12 = vld [vmem:[%s12309_s1 + $0x448] sm:$0xf0]  ;;  %v7268_v62 = vor.u32 %v8167_v53, %v7265_v33  ;;  %v7264_v30 = vor.u32 %v8168_v31, %v7263_v14  ;;  %v8200_v52 = vld [vmem:[%s12310_s0 + $0xa4] sm:$0xf0]  ;;  %v8199_v34 = vld [vmem:[%s12310_s0 + $0xa4] sm:$0xf] }
 0x42c   :  { %7513 = vmatmul.msk.bf16.gmra.mxu2 %vm253_vm0, %v7412_v35  ;;  %v7840_v15 = vor.u32 %v8287_v12, %v7839_v17  ;;  %v7423_v17 = vld [vmem:[%s12310_s0 + $0xa0] sm:$0xf] }
 0x42d   :  { %v7424_v12 = vor.u32 %v8200_v52, %v7423_v17 }
 0x42e   :  { %5453 = vmatpush.bf16.msra.mxu2 %v7840_v15 }
 0x42f   :  { %7347 = vmatmul.msk.bf16.gmra.mxu3 %vm253_vm0, %v7260_v27 }
 0x430   :  { %v3857_v22 = vpop.f32.mrf.mxu2  ;;  %v3791_v47 = vpop.f32.mrf.mxu0 }
 0x431   :  { %v3479_v63 = vpop.f32.mrf.mxu3  ;;  %v3858_v29 = vadd.f32 %v3857_v22, %v3788_v58  ;;  %v3412_v39 = vpop.f32.mrf.mxu1 }
 0x432   :  { %v11381_v20 = vadd.f32 %v3479_v63, %v3411_v11  ;;  %v3413_v44 = vadd.f32 %v3412_v39, %v10782_v24  ;;  %v7416_v24 = vor.u32 %v8198_v1, %v7415_v2  ;;  %v7271_v2 = vld [vmem:[%s12310_s0 + $0xb0] sm:$0xf] }
 0x433   :  { %v11386_v4 = vadd.f32 %v3858_v29, %v3472_v41  ;;  %4185 = vmatmul.bf16.gmra.mxu1 %v7256_v16  ;;  %v7417_v41 = vld [vmem:[%s12310_s0 + $0x98] sm:$0xf0]  ;;  %v7647_v29 = vld [vmem:[%s12309_s1 + $0x344] sm:$0xf] }
 0x434   :  { %v7420_v40 = vor.u32 %v8197_v0, %v7417_v41  ;;  %v7273_v16 = vld [vmem:[%s12310_s0 + $0xb8] sm:$0xf0]  ;;  %v7648_v39 = vor.u32 %v8247_v23, %v7647_v29  ;;  %v7272_v0 = vor.u32 %v8170_v55, %v7271_v2  ;;  %v7439_v2 = vld [vmem:[%s12310_s0 + $0xc0] sm:$0xf] }
 0x436   :  { %4972 = vmatpush.bf16.msra.mxu1 %v7648_v39  ;;  %v8246_v39 = vld [vmem:[%s12309_s1 + $0x338] sm:$0xf0] }
 0x438   :  { %v3860_v26 = vpop.f32.mrf.mxu2  ;;  %v3793_v60 = vpop.f32.mrf.mxu0 }
 0x439   :  { %v3481_v36 = vpop.f32.mrf.mxu3  ;;  %v3861_v8 = vadd.f32 %v3860_v26, %v3791_v47  ;;  %v7431_v26 = vld [vmem:[%s12310_s0 + $0xb0] sm:$0xf] }
 0x43a   :  { %v11407_v6 = vadd.f32 %v3481_v36, %v3413_v44  ;;  %v7816_v44 = vor.u32 %v8281_v21, %v7815_v3  ;;  %v12379_v36 = vld [vmem:[#allocation2_spill] sm:$0xff]  ;;  %v7811_v3 = vld [vmem:[%s12309_s1 + $0x3d4] sm:$0xf] }
 0x43b   :  { %v3415_v35 = vpop.f32.mrf.mxu1  ;;  %4590 = vmatmul.bf16.gmra.mxu0 %v7416_v24  ;;  %v11411_v50 = vadd.f32 %v3861_v8, %v11323_v9 }
 0x43c   :  { %7514 = vmatmul.msk.bf16.gmra.mxu2 %vm253_vm0, %v7420_v40  ;;  %v3416_v42 = vadd.f32 %v3415_v35, %v10786_v59  ;;  %5382 = vmatpush.bf16.msra.mxu0 %v7816_v44  ;;  %v8202_v35 = vld [vmem:[%s12310_s0 + $0xb4] sm:$0xf0] }
 0x43d   :  { %v7432_v31 = vor.u32 %v8202_v35, %v7431_v26 }
 0x43f   :  { %7348 = vmatmul.msk.bf16.gmra.mxu3 %vm253_vm0, %v7268_v62  ;;  %v8201_v62 = vld [vmem:[%s12310_s0 + $0xb4] sm:$0xf] }
 0x440   :  { %v3862_v38 = vpop.f32.mrf.mxu2 }
 0x441   :  { %v3863_v27 = vadd.f32 %v3862_v38, %v3793_v60  ;;  %v7281_v38 = vld [vmem:[%s12310_s0 + $0xc8] sm:$0xf0] }
 0x442   :  { %v3484_v58 = vpop.f32.mrf.mxu3 }
 0x443   :  { %v11421_v37 = vadd.f32 %v3484_v58, %v3416_v42  ;;  %v3417_v9 = vpop.f32.mrf.mxu1  ;;  %v11424_v59 = vadd.f32 %v3863_v27, %v11352_v61  ;;  %4190 = vmatmul.bf16.gmra.mxu1 %v7264_v30  ;;  %v7425_v61 = vld [vmem:[%s12310_s0 + $0xa8] sm:$0xf0]  ;;  %v8171_v30 = vld [vmem:[%s12310_s0 + $0xc4] sm:$0xf] }
 0x444   :  { %v3418_v11 = vadd.f32 %v3417_v9, %v10808_v13  ;;  %v7428_v15 = vor.u32 %v8199_v34, %v7425_v61  ;;  %v8169_v13 = vld [vmem:[%s12310_s0 + $0xb4] sm:$0xf]  ;;  %v7284_v52 = vor.u32 %v8171_v30, %v7281_v38  ;;  %v12380_v34 = vld [vmem:[#allocation3_spill] sm:$0xff]  ;;  %v7287_v30 = vld [vmem:[%s12310_s0 + $0xd0] sm:$0xf] }
 0x445   :  { %v7276_v7 = vor.u32 %v8169_v13, %v7273_v16  ;;  %v8174_v38 = vld [vmem:[%s12310_s0 + $0xd4] sm:$0xf0] }
 0x448   :  { %v3796_v22 = vpop.f32.mrf.mxu0 }
 0x44a   :  { %v3486_v63 = vpop.f32.mrf.mxu3 }
 0x44b   :  { %v11451_v19 = vadd.f32 %v3486_v63, %v3418_v11  ;;  %4595 = vmatmul.bf16.gmra.mxu0 %v7424_v12  ;;  %v7279_v12 = vld [vmem:[%s12310_s0 + $0xc0] sm:$0xf] }
 0x44c   :  { %7515 = vmatmul.msk.bf16.gmra.mxu2 %vm253_vm0, %v7428_v15  ;;  %v8172_v15 = vld [vmem:[%s12310_s0 + $0xc4] sm:$0xf0] }
 0x44d   :  { %v7280_v16 = vor.u32 %v8172_v15, %v7279_v12  ;;  %v7447_v12 = vld [vmem:[%s12310_s0 + $0xd0] sm:$0xf] }
 0x44f   :  { %v3865_v47 = vpop.f32.mrf.mxu2  ;;  %7349 = vmatmul.msk.bf16.gmra.mxu3 %vm253_vm0, %v7276_v7  ;;  %v7643_v7 = vld [vmem:[%s12309_s1 + $0x334] sm:$0xf] }
 0x450   :  { %v3866_v1 = vadd.f32 %v3865_v47, %v3796_v22  ;;  %v3798_v41 = vpop.f32.mrf.mxu0  ;;  %v4156_v24 = vpop.f32.mrf.mxu1  ;;  %v7644_v44 = vor.u32 %v8246_v39, %v7643_v7  ;;  %v7297_v7 = vld [vmem:[%s12310_s0 + $0xe8] sm:$0xf0] }
 0x452   :  { %v11468_v40 = vadd.f32 %v3866_v1, %v11381_v20  ;;  %v4225_v53 = vpop.f32.mrf.mxu3  ;;  %v7433_v20 = vld [vmem:[%s12310_s0 + $0xb8] sm:$0xf0]  ;;  %v8204_v1 = vld [vmem:[%s12310_s0 + $0xc4] sm:$0xf0]  ;;  %4973 = vmatpush.bf16.msra.mxu1 %v7644_v44 }
 0x453   :  { %v4226_v33 = vadd.f32 %v4225_v53, %v4156_v24  ;;  %4195 = vmatmul.bf16.gmra.mxu1 %v7272_v0  ;;  %v7436_v60 = vor.u32 %v8201_v62, %v7433_v20  ;;  %v8203_v0 = vld [vmem:[%s12310_s0 + $0xc4] sm:$0xf] }
 0x455   :  { %v11474_v8 = vadd.f32 %v4226_v33, %v12379_v36  ;;  %v7440_v33 = vor.u32 %v8204_v1, %v7439_v2  ;;  %v7289_v36 = vld [vmem:[%s12310_s0 + $0xd8] sm:$0xf0]  ;;  %v8245_v2 = vld [vmem:[%s12309_s1 + $0x328] sm:$0xf0] }
 0x457   :  { %v3867_v42 = vpop.f32.mrf.mxu2 }
 0x458   :  { %v3868_v14 = vadd.f32 %v3867_v42, %v3798_v41  ;;  %v3801_v58 = vpop.f32.mrf.mxu0  ;;  %v4158_v27 = vpop.f32.mrf.mxu1  ;;  %v7441_v41 = vld [vmem:[%s12310_s0 + $0xc8] sm:$0xf0] }
 0x459   :  { %v7444_v26 = vor.u32 %v8203_v0, %v7441_v41  ;;  %v7807_v41 = vld [vmem:[%s12309_s1 + $0x3c4] sm:$0xf] }
 0x45a   :  { %v11492_v9 = vadd.f32 %v3868_v14, %v11407_v6  ;;  %v4227_v11 = vpop.f32.mrf.mxu3 }
 0x45b   :  { %v4228_v17 = vadd.f32 %v4227_v11, %v4158_v27  ;;  %4600 = vmatmul.bf16.gmra.mxu0 %v7432_v31  ;;  %v7288_v27 = vor.u32 %v8174_v38, %v7287_v30  ;;  %v7455_v30 = vld [vmem:[%s12310_s0 + $0xe0] sm:$0xf] }
 0x45c   :  { %7516 = vmatmul.msk.bf16.gmra.mxu2 %vm253_vm0, %v7436_v60 }
 0x45d   :  { %v11496_v61 = vadd.f32 %v4228_v17, %v12380_v34 }
 0x45f   :  { %v3870_v13 = vpop.f32.mrf.mxu2  ;;  %7350 = vmatmul.msk.bf16.gmra.mxu3 %vm253_vm0, %v7284_v52 }
 0x460   :  { %v3871_v6 = vadd.f32 %v3870_v13, %v3801_v58  ;;  %v3803_v22 = vpop.f32.mrf.mxu0  ;;  %v4161_v63 = vpop.f32.mrf.mxu1  ;;  %v8206_v13 = vld [vmem:[%s12310_s0 + $0xd4] sm:$0xf0] }
 0x462   :  { %v11506_v29 = vadd.f32 %v3871_v6, %v11421_v37  ;;  %v4230_v23 = vpop.f32.mrf.mxu3  ;;  %v8280_v37 = vld [vmem:[%s12309_s1 + $0x3d8] sm:$0xf0]  ;;  %v8205_v6 = vld [vmem:[%s12310_s0 + $0xd4] sm:$0xf] }
 0x463   :  { %v4231_v21 = vadd.f32 %v4230_v23, %v4161_v63  ;;  %4200 = vmatmul.bf16.gmra.mxu1 %v7280_v16  ;;  %v7812_v55 = vor.u32 %v8280_v37, %v7811_v3  ;;  %v7448_v63 = vor.u32 %v8206_v13, %v7447_v12  ;;  %v7639_v37 = vld [vmem:[%s12309_s1 + $0x324] sm:$0xf] }
 0x464   :  { %v7640_v0 = vor.u32 %v8245_v2, %v7639_v37 }
 0x465   :  { %v11524_v47 = vadd.f32 %v4231_v21, %v10908_v5  ;;  %5383 = vmatpush.bf16.msra.mxu0 %v7812_v55  ;;  %v8173_v5 = vld [vmem:[%s12310_s0 + $0xd4] sm:$0xf] }
 0x466   :  { %v7292_v31 = vor.u32 %v8173_v5, %v7289_v36  ;;  %4974 = vmatpush.bf16.msra.mxu1 %v7640_v0  ;;  %v8210_v0 = vld [vmem:[%s12310_s0 + $0xf4] sm:$0xf0] }
 0x467   :  { %v3872_v24 = vpop.f32.mrf.mxu2 }
 0x468   :  { %v3873_v53 = vadd.f32 %v3872_v24, %v3803_v22  ;;  %v4566_v35 = vpop.f32.mrf.mxu0  ;;  %v4163_v62 = vpop.f32.mrf.mxu1 }
 0x46a   :  { %v11542_v20 = vadd.f32 %v3873_v53, %v11451_v19  ;;  %v4232_v42 = vpop.f32.mrf.mxu3 }
 0x46b   :  { %v4233_v14 = vadd.f32 %v4232_v42, %v4163_v62  ;;  %4605 = vmatmul.bf16.gmra.mxu0 %v7440_v33  ;;  %v7295_v33 = vld [vmem:[%s12310_s0 + $0xe0] sm:$0xf] }
 0x46c   :  { %7517 = vmatmul.msk.bf16.gmra.mxu2 %vm253_vm0, %v7444_v26  ;;  %v8176_v26 = vld [vmem:[%s12310_s0 + $0xe4] sm:$0xf0] }
 0x46d   :  { %v11546_v60 = vadd.f32 %v4233_v14, %v11022_v46 }
 0x46f   :  { %v4635_v58 = vpop.f32.mrf.mxu2  ;;  %7351 = vmatmul.msk.bf16.gmra.mxu3 %vm253_vm0, %v7292_v31 }
 0x470   :  { %v4636_v19 = vadd.f32 %v4635_v58, %v4566_v35  ;;  %v4568_v11 = vpop.f32.mrf.mxu0  ;;  %v4166_v17 = vpop.f32.mrf.mxu1  ;;  %v7296_v35 = vor.u32 %v8176_v26, %v7295_v33  ;;  %v8208_v58 = vld [vmem:[%s12310_s0 + $0xe4] sm:$0xf0] }
 0x472   :  { %v11556_v52 = vadd.f32 %v4636_v19, %v11474_v8  ;;  %v4235_v46 = vpop.f32.mrf.mxu3  ;;  %v7449_v8 = vld [vmem:[%s12310_s0 + $0xd8] sm:$0xf0]  ;;  %v8207_v19 = vld [vmem:[%s12310_s0 + $0xe4] sm:$0xf] }
 0x473   :  { %v4236_v34 = vadd.f32 %v4235_v46, %v4166_v17  ;;  %4205 = vmatmul.bf16.gmra.mxu1 %v7288_v27  ;;  %v7452_v23 = vor.u32 %v8205_v6, %v7449_v8  ;;  %v7456_v17 = vor.u32 %v8208_v58, %v7455_v30  ;;  %v7551_v58 = vld [vmem:[%s12310_s0 + $0x60] sm:$0xf] }
 0x475   :  { %v11562_v15 = vadd.f32 %v4236_v34, %v11038_v32  ;;  %v8175_v32 = vld [vmem:[%s12310_s0 + $0xe4] sm:$0xf]  ;;  %v7545_v34 = vld [vmem:[%s12310_s0 + $0x58] sm:$0xf0] }
 0x476   :  { %v7300_v1 = vor.u32 %v8175_v32, %v7297_v7  ;;  %v8222_v32 = vld [vmem:[%s12310_s0 + $0x54] sm:$0xf0] }
 0x477   :  { %v4637_v16 = vpop.f32.mrf.mxu2 }
 0x478   :  { %v4638_v22 = vadd.f32 %v4637_v16, %v4568_v11  ;;  %v4571_v39 = vpop.f32.mrf.mxu0  ;;  %v4168_v3 = vpop.f32.mrf.mxu1 }
 0x47a   :  { %v11580_v21 = vadd.f32 %v4638_v22, %v11496_v61  ;;  %v4237_v44 = vpop.f32.mrf.mxu3  ;;  %v8279_v61 = vld [vmem:[%s12309_s1 + $0x3c8] sm:$0xf0] }
 0x47b   :  { %v4238_v55 = vadd.f32 %v4237_v44, %v4168_v3  ;;  %4610 = vmatmul.bf16.gmra.mxu0 %v7448_v63  ;;  %v7808_v24 = vor.u32 %v8279_v61, %v7807_v41  ;;  %v8209_v41 = vld [vmem:[%s12310_s0 + $0xf4] sm:$0xf] }
 0x47c   :  { %7518 = vmatmul.msk.bf16.gmra.mxu2 %vm253_vm0, %v7452_v23  ;;  %v7543_v23 = vld [vmem:[%s12310_s0 + $0x50] sm:$0xf] }
 0x47d   :  { %v4290_v53 = vadd.f32 %v4238_v55, %v11090_v10  ;;  %5384 = vmatpush.bf16.msra.mxu0 %v7808_v24  ;;  %v7463_v55 = vld [vmem:[%s12310_s0 + $0xf0] sm:$0xf] }
 0x47e   :  { %v7464_v33 = vor.u32 %v8210_v0, %v7463_v55  ;;  %v7559_v0 = vld [vmem:[%s12310_s0 + $0x70] sm:$0xf] }
 0x47f   :  { %v4640_v5 = vpop.f32.mrf.mxu2  ;;  %7352 = vmatmul.msk.bf16.gmra.mxu3 %vm253_vm0, %v7300_v1 }
 0x480   :  { %v4641_v36 = vadd.f32 %v4640_v5, %v4571_v39  ;;  %v4573_v62 = vpop.f32.mrf.mxu0  ;;  %v4171_v42 = vpop.f32.mrf.mxu1  ;;  %v7544_v39 = vor.u32 %v8222_v32, %v7543_v23  ;;  %v7553_v5 = vld [vmem:[%s12310_s0 + $0x68] sm:$0xf0] }
 0x482   :  { %v11604_v14 = vadd.f32 %v4641_v36, %v11524_v47  ;;  %v4240_v10 = vpop.f32.mrf.mxu3  ;;  %v7457_v47 = vld [vmem:[%s12310_s0 + $0xe8] sm:$0xf0] }
 0x483   :  { %v4241_v31 = vadd.f32 %v4240_v10, %v4171_v42  ;;  %4210 = vmatmul.bf16.gmra.mxu1 %v7296_v35  ;;  %v7460_v46 = vor.u32 %v8207_v19, %v7457_v47  ;;  %v8224_v19 = vld [vmem:[%s12310_s0 + $0x64] sm:$0xf0] }
 0x485   :  { %v4291_v38 = vadd.f32 %v4241_v31, %v11145_v54  ;;  %v8221_v54 = vld [vmem:[%s12310_s0 + $0x54] sm:$0xf] }
 0x486   :  { %v7548_v22 = vor.u32 %v8221_v54, %v7545_v34 }
 0x487   :  { %v4642_v27 = vpop.f32.mrf.mxu2 }
 0x488   :  { %v4643_v11 = vadd.f32 %v4642_v27, %v4573_v62  ;;  %v4576_v12 = vpop.f32.mrf.mxu0  ;;  %v4173_v13 = vpop.f32.mrf.mxu1  ;;  %v7552_v27 = vor.u32 %v8224_v19, %v7551_v58 }
 0x48a   :  { %v11626_v6 = vadd.f32 %v4643_v11, %v11546_v60  ;;  %v4242_v8 = vpop.f32.mrf.mxu3 }
 0x48b   :  { %v4243_v16 = vadd.f32 %v4242_v8, %v4173_v13  ;;  %4615 = vmatmul.bf16.gmra.mxu0 %v7456_v17  ;;  %v8256_v13 = vld [vmem:[%s12310_s0 + $0x64] sm:$0xf0]  ;;  %v8255_v8 = vld [vmem:[%s12310_s0 + $0x64] sm:$0xf] }
 0x48c   :  { %7519 = vmatmul.msk.bf16.gmra.mxu2 %vm253_vm0, %v7460_v46 }
 0x48d   :  { %v4292_v63 = vadd.f32 %v4243_v16, %v11162_v25 }
 0x48f   :  { %v4645_v7 = vpop.f32.mrf.mxu2  ;;  %7677 = vmatmul.msk.bf16.vlgmr.msra.gmra.mxu3 %vm253_vm0, %v7548_v22 }
 0x490   :  { %v4646_v60 = vadd.f32 %v4645_v7, %v4576_v12  ;;  %v4578_v3 = vpop.f32.mrf.mxu0  ;;  %v4176_v44 = vpop.f32.mrf.mxu1  ;;  %v7561_v7 = vld [vmem:[%s12310_s0 + $0x78] sm:$0xf0] }
 0x492   :  { %v11638_v37 = vadd.f32 %v4646_v60, %v11562_v15  ;;  %v4245_v2 = vpop.f32.mrf.mxu3  ;;  %v7465_v15 = vld [vmem:[%s12310_s0 + $0xf8] sm:$0xf0] }
 0x493   :  { %v4246_v25 = vadd.f32 %v4245_v2, %v4176_v44  ;;  %4975 = vmatmul.bf16.vlgmr.msra.gmra.mxu1 %v7544_v39  ;;  %v7468_v26 = vor.u32 %v8209_v41, %v7465_v15  ;;  %v8226_v41 = vld [vmem:[%s12310_s0 + $0x74] sm:$0xf0] }
 0x495   :  { %v4293_v1 = vadd.f32 %v4246_v25, %v11191_v45  ;;  %v8223_v45 = vld [vmem:[%s12310_s0 + $0x64] sm:$0xf] }
 0x496   :  { %v7556_v31 = vor.u32 %v8223_v45, %v7553_v5 }
 0x497   :  { %v4647_v61 = vpop.f32.mrf.mxu2 }
 0x498   :  { %v4648_v24 = vadd.f32 %v4647_v61, %v4578_v3  ;;  %v4581_v36 = vpop.f32.mrf.mxu0  ;;  %v4178_v35 = vpop.f32.mrf.mxu1  ;;  %v7560_v61 = vor.u32 %v8226_v41, %v7559_v0 }
 0x49a   :  { %v11659_v62 = vadd.f32 %v4648_v24, %v4290_v53  ;;  %v4247_v42 = vpop.f32.mrf.mxu3 }
 0x49b   :  { %v4248_v10 = vadd.f32 %v4247_v42, %v4178_v35  ;;  %4620 = vmatmul.bf16.gmra.mxu0 %v7464_v33  ;;  %v8258_v35 = vld [vmem:[%s12310_s0 + $0x74] sm:$0xf0]  ;;  %v8257_v42 = vld [vmem:[%s12310_s0 + $0x74] sm:$0xf] }
 0x49c   :  { %7520 = vmatmul.msk.bf16.gmra.mxu2 %vm253_vm0, %v7468_v26 }
 0x49d   :  { %v4294_v30 = vadd.f32 %v4248_v10, %v11201_v51  ;;  %v7711_v51 = vld [vmem:[%s12310_s0 + $0x60] sm:$0xf] }
 0x49e   :  { %v7712_v23 = vor.u32 %v8256_v13, %v7711_v51  ;;  %v7567_v13 = vld [vmem:[%s12310_s0 + $0x80] sm:$0xf] }
 0x49f   :  { %v4650_v47 = vpop.f32.mrf.mxu2  ;;  %7678 = vmatmul.msk.bf16.gmra.mxu3 %vm253_vm0, %v7556_v31 }
 0x4a0   :  { %v4651_v53 = vadd.f32 %v4650_v47, %v4581_v36  ;;  %v4583_v11 = vpop.f32.mrf.mxu0  ;;  %v4181_v17 = vpop.f32.mrf.mxu1  ;;  %v7569_v47 = vld [vmem:[%s12310_s0 + $0x88] sm:$0xf0] }
 0x4a2   :  { %v11670_v46 = vadd.f32 %v4651_v53, %v4291_v38  ;;  %v4250_v54 = vpop.f32.mrf.mxu3  ;;  %v7713_v38 = vld [vmem:[%s12310_s0 + $0x68] sm:$0xf0] }
 0x4a3   :  { %v4251_v34 = vadd.f32 %v4250_v54, %v4181_v17  ;;  %4980 = vmatmul.bf16.gmra.mxu1 %v7552_v27  ;;  %v7716_v32 = vor.u32 %v8255_v8, %v7713_v38  ;;  %v8228_v8 = vld [vmem:[%s12310_s0 + $0x84] sm:$0xf0] }
 0x4a5   :  { %v4295_v12 = vadd.f32 %v4251_v34, %v11223_v49  ;;  %v8225_v49 = vld [vmem:[%s12310_s0 + $0x74] sm:$0xf] }
 0x4a6   :  { %v7564_v25 = vor.u32 %v8225_v49, %v7561_v7 }
 0x4a7   :  { %v4652_v16 = vpop.f32.mrf.mxu2 }
 0x4a8   :  { %v4653_v22 = vadd.f32 %v4652_v16, %v4583_v11  ;;  %v4586_v60 = vpop.f32.mrf.mxu0  ;;  %v4183_v39 = vpop.f32.mrf.mxu1  ;;  %v7568_v16 = vor.u32 %v8228_v8, %v7567_v13 }
 0x4aa   :  { %v11691_v3 = vadd.f32 %v4653_v22, %v4292_v63  ;;  %v4252_v44 = vpop.f32.mrf.mxu3 }
 0x4ab   :  { %v4253_v2 = vadd.f32 %v4252_v44, %v4183_v39  ;;  %5385 = vmatmul.bf16.vlgmr.msra.gmra.mxu0 %v7712_v23  ;;  %v8260_v39 = vld [vmem:[%s12310_s0 + $0x84] sm:$0xf0]  ;;  %v8259_v44 = vld [vmem:[%s12310_s0 + $0x84] sm:$0xf] }
 0x4ac   :  { %7845 = vmatmul.msk.bf16.vlgmr.msra.gmra.mxu2 %vm253_vm0, %v7716_v32 }
 0x4ad   :  { %v4296_v55 = vadd.f32 %v4253_v2, %v11245_v57  ;;  %v7719_v57 = vld [vmem:[%s12310_s0 + $0x70] sm:$0xf] }
 0x4ae   :  { %v7720_v58 = vor.u32 %v8258_v35, %v7719_v57  ;;  %v7575_v35 = vld [vmem:[%s12310_s0 + $0x90] sm:$0xf] }
 0x4af   :  { %v4655_v15 = vpop.f32.mrf.mxu2  ;;  %7679 = vmatmul.msk.bf16.gmra.mxu3 %vm253_vm0, %v7564_v25 }
 0x4b0   :  { %v4656_v63 = vadd.f32 %v4655_v15, %v4586_v60  ;;  %v4588_v24 = vpop.f32.mrf.mxu0  ;;  %v4186_v33 = vpop.f32.mrf.mxu1  ;;  %v7577_v15 = vld [vmem:[%s12310_s0 + $0x98] sm:$0xf0] }
 0x4b2   :  { %v11702_v26 = vadd.f32 %v4656_v63, %v4293_v1  ;;  %v4255_v45 = vpop.f32.mrf.mxu3  ;;  %v7721_v1 = vld [vmem:[%s12310_s0 + $0x78] sm:$0xf0] }
 0x4b3   :  { %v4256_v5 = vadd.f32 %v4255_v45, %v4186_v33  ;;  %4985 = vmatmul.bf16.gmra.mxu1 %v7560_v61  ;;  %v7724_v19 = vor.u32 %v8257_v42, %v7721_v1  ;;  %v8230_v42 = vld [vmem:[%s12310_s0 + $0x94] sm:$0xf0] }
 0x4b5   :  { %v4297_v36 = vadd.f32 %v4256_v5, %v11267_v48  ;;  %v8227_v48 = vld [vmem:[%s12310_s0 + $0x84] sm:$0xf] }
 0x4b6   :  { %v7572_v34 = vor.u32 %v8227_v48, %v7569_v47 }
 0x4b7   :  { %v4657_v10 = vpop.f32.mrf.mxu2 }
 0x4b8   :  { %v4658_v31 = vadd.f32 %v4657_v10, %v4588_v24  ;;  %v4591_v53 = vpop.f32.mrf.mxu0  ;;  %v4188_v27 = vpop.f32.mrf.mxu1  ;;  %v7576_v10 = vor.u32 %v8230_v42, %v7575_v35 }
 0x4ba   :  { %v11723_v11 = vadd.f32 %v4658_v31, %v4294_v30  ;;  %v4257_v17 = vpop.f32.mrf.mxu3 }
 0x4bb   :  { %v4258_v54 = vadd.f32 %v4257_v17, %v4188_v27  ;;  %5390 = vmatmul.bf16.gmra.mxu0 %v7720_v58  ;;  %v8262_v27 = vld [vmem:[%s12310_s0 + $0x94] sm:$0xf0]  ;;  %v8261_v17 = vld [vmem:[%s12310_s0 + $0x94] sm:$0xf] }
 0x4bc   :  { %7846 = vmatmul.msk.bf16.gmra.mxu2 %vm253_vm0, %v7724_v19 }
 0x4bd   :  { %v4298_v51 = vadd.f32 %v4258_v54, %v11285_v28  ;;  %v7727_v28 = vld [vmem:[%s12310_s0 + $0x80] sm:$0xf] }
 0x4be   :  { %v7728_v0 = vor.u32 %v8260_v39, %v7727_v28  ;;  %v7583_v39 = vld [vmem:[%s12310_s0 + $0xa0] sm:$0xf] }
 0x4bf   :  { %v4660_v38 = vpop.f32.mrf.mxu2  ;;  %7680 = vmatmul.msk.bf16.gmra.mxu3 %vm253_vm0, %v7572_v34 }
 0x4c0   :  { %v4661_v30 = vadd.f32 %v4660_v38, %v4591_v53  ;;  %v4593_v22 = vpop.f32.mrf.mxu0  ;;  %v4191_v23 = vpop.f32.mrf.mxu1  ;;  %v7585_v38 = vld [vmem:[%s12310_s0 + $0xa8] sm:$0xf0] }
 0x4c2   :  { %v11734_v32 = vadd.f32 %v4661_v30, %v4295_v12  ;;  %v4260_v49 = vpop.f32.mrf.mxu3  ;;  %v7729_v12 = vld [vmem:[%s12310_s0 + $0x88] sm:$0xf0] }
 0x4c3   :  { %v4261_v7 = vadd.f32 %v4260_v49, %v4191_v23  ;;  %4990 = vmatmul.bf16.gmra.mxu1 %v7568_v16  ;;  %v7732_v41 = vor.u32 %v8259_v44, %v7729_v12  ;;  %v8232_v44 = vld [vmem:[%s12310_s0 + $0xa4] sm:$0xf0] }
 0x4c5   :  { %v4299_v60 = vadd.f32 %v4261_v7, %v11313_v18  ;;  %v8229_v18 = vld [vmem:[%s12310_s0 + $0x94] sm:$0xf] }
 0x4c6   :  { %v7580_v5 = vor.u32 %v8229_v18, %v7577_v15 }
 0x4c7   :  { %v4662_v2 = vpop.f32.mrf.mxu2 }
 0x4c8   :  { %v4663_v25 = vadd.f32 %v4662_v2, %v4593_v22  ;;  %v4596_v63 = vpop.f32.mrf.mxu0  ;;  %v4193_v61 = vpop.f32.mrf.mxu1  ;;  %v7584_v2 = vor.u32 %v8232_v44, %v7583_v39 }
 0x4ca   :  { %v11755_v24 = vadd.f32 %v4663_v25, %v4296_v55  ;;  %v4262_v33 = vpop.f32.mrf.mxu3 }
 0x4cb   :  { %v4263_v45 = vadd.f32 %v4262_v33, %v4193_v61  ;;  %5395 = vmatmul.bf16.gmra.mxu0 %v7728_v0  ;;  %v8264_v61 = vld [vmem:[%s12310_s0 + $0xa4] sm:$0xf0]  ;;  %v8263_v33 = vld [vmem:[%s12310_s0 + $0xa4] sm:$0xf] }
 0x4cc   :  { %7847 = vmatmul.msk.bf16.gmra.mxu2 %vm253_vm0, %v7732_v41 }
 0x4cd   :  { %v4300_v57 = vadd.f32 %v4263_v45, %v11325_v43  ;;  %v7735_v43 = vld [vmem:[%s12310_s0 + $0x90] sm:$0xf] }
 0x4ce   :  { %v7736_v13 = vor.u32 %v8262_v27, %v7735_v43  ;;  %v7591_v27 = vld [vmem:[%s12310_s0 + $0xb0] sm:$0xf] }
 0x4cf   :  { %v4665_v1 = vpop.f32.mrf.mxu2  ;;  %7681 = vmatmul.msk.bf16.gmra.mxu3 %vm253_vm0, %v7580_v5 }
 0x4d0   :  { %v4666_v55 = vadd.f32 %v4665_v1, %v4596_v63  ;;  %v4598_v31 = vpop.f32.mrf.mxu0  ;;  %v4196_v58 = vpop.f32.mrf.mxu1  ;;  %v7593_v1 = vld [vmem:[%s12310_s0 + $0xb8] sm:$0xf0] }
 0x4d2   :  { %v11766_v19 = vadd.f32 %v4666_v55, %v4297_v36  ;;  %v4265_v48 = vpop.f32.mrf.mxu3  ;;  %v7737_v36 = vld [vmem:[%s12310_s0 + $0x98] sm:$0xf0] }
 0x4d3   :  { %v4266_v47 = vadd.f32 %v4265_v48, %v4196_v58  ;;  %4995 = vmatmul.bf16.gmra.mxu1 %v7576_v10  ;;  %v7740_v8 = vor.u32 %v8261_v17, %v7737_v36  ;;  %v8234_v17 = vld [vmem:[%s12310_s0 + $0xb4] sm:$0xf0] }
 0x4d5   :  { %v4301_v53 = vadd.f32 %v4266_v47, %v11356_v56  ;;  %v8231_v56 = vld [vmem:[%s12310_s0 + $0xa4] sm:$0xf] }
 0x4d6   :  { %v7588_v7 = vor.u32 %v8231_v56, %v7585_v38 }
 0x4d7   :  { %v4667_v54 = vpop.f32.mrf.mxu2 }
 0x4d8   :  { %v4668_v34 = vadd.f32 %v4667_v54, %v4598_v31  ;;  %v4601_v30 = vpop.f32.mrf.mxu0  ;;  %v4198_v16 = vpop.f32.mrf.mxu1  ;;  %v7592_v54 = vor.u32 %v8234_v17, %v7591_v27 }
 0x4da   :  { %v11787_v22 = vadd.f32 %v4668_v34, %v4298_v51  ;;  %v4267_v23 = vpop.f32.mrf.mxu3 }
 0x4db   :  { %v4268_v49 = vadd.f32 %v4267_v23, %v4198_v16  ;;  %5400 = vmatmul.bf16.gmra.mxu0 %v7736_v13  ;;  %v8266_v16 = vld [vmem:[%s12310_s0 + $0xb4] sm:$0xf0]  ;;  %v8265_v23 = vld [vmem:[%s12310_s0 + $0xb4] sm:$0xf] }
 0x4dc   :  { %7848 = vmatmul.msk.bf16.gmra.mxu2 %vm253_vm0, %v7740_v8 }
 0x4dd   :  { %v4302_v28 = vadd.f32 %v4268_v49, %v11386_v4  ;;  %v7743_v4 = vld [vmem:[%s12310_s0 + $0xa0] sm:$0xf] }
 0x4de   :  { %v7744_v35 = vor.u32 %v8264_v61, %v7743_v4  ;;  %v7599_v61 = vld [vmem:[%s12310_s0 + $0xc0] sm:$0xf] }
 0x4df   :  { %v4670_v12 = vpop.f32.mrf.mxu2  ;;  %7682 = vmatmul.msk.bf16.gmra.mxu3 %vm253_vm0, %v7588_v7 }
 0x4e0   :  { %v4671_v51 = vadd.f32 %v4670_v12, %v4601_v30  ;;  %v4603_v25 = vpop.f32.mrf.mxu0  ;;  %v4201_v0 = vpop.f32.mrf.mxu1  ;;  %v7601_v12 = vld [vmem:[%s12310_s0 + $0xc8] sm:$0xf0] }
 0x4e2   :  { %v11798_v41 = vadd.f32 %v4671_v51, %v4299_v60  ;;  %v4270_v18 = vpop.f32.mrf.mxu3  ;;  %v7745_v60 = vld [vmem:[%s12310_s0 + $0xa8] sm:$0xf0] }
 0x4e3   :  { %v4271_v15 = vadd.f32 %v4270_v18, %v4201_v0  ;;  %5000 = vmatmul.bf16.gmra.mxu1 %v7584_v2  ;;  %v7748_v42 = vor.u32 %v8263_v33, %v7745_v60  ;;  %v8236_v33 = vld [vmem:[%s12310_s0 + $0xc4] sm:$0xf0] }
 0x4e5   :  { %v4303_v63 = vadd.f32 %v4271_v15, %v11411_v50  ;;  %v8233_v50 = vld [vmem:[%s12310_s0 + $0xb4] sm:$0xf] }
 0x4e6   :  { %v7596_v47 = vor.u32 %v8233_v50, %v7593_v1 }
 0x4e7   :  { %v4672_v45 = vpop.f32.mrf.mxu2 }
 0x4e8   :  { %v4673_v5 = vadd.f32 %v4672_v45, %v4603_v25  ;;  %v4606_v55 = vpop.f32.mrf.mxu0  ;;  %v4203_v10 = vpop.f32.mrf.mxu1  ;;  %v7600_v45 = vor.u32 %v8236_v33, %v7599_v61 }
 0x4ea   :  { %v11819_v31 = vadd.f32 %v4673_v5, %v4300_v57  ;;  %v4272_v58 = vpop.f32.mrf.mxu3 }
 0x4eb   :  { %v4273_v48 = vadd.f32 %v4272_v58, %v4203_v10  ;;  %5405 = vmatmul.bf16.gmra.mxu0 %v7744_v35  ;;  %v8268_v10 = vld [vmem:[%s12310_s0 + $0xc4] sm:$0xf0]  ;;  %v8267_v58 = vld [vmem:[%s12310_s0 + $0xc4] sm:$0xf] }
 0x4ec   :  { %7849 = vmatmul.msk.bf16.gmra.mxu2 %vm253_vm0, %v7748_v42 }
 0x4ed   :  { %v4304_v43 = vadd.f32 %v4273_v48, %v11424_v59  ;;  %v7751_v59 = vld [vmem:[%s12310_s0 + $0xb0] sm:$0xf] }
 0x4ee   :  { %v7752_v39 = vor.u32 %v8266_v16, %v7751_v59  ;;  %v7607_v16 = vld [vmem:[%s12310_s0 + $0xd0] sm:$0xf] }
 0x4ef   :  { %v4675_v36 = vpop.f32.mrf.mxu2  ;;  %7683 = vmatmul.msk.bf16.gmra.mxu3 %vm253_vm0, %v7596_v47 }
 0x4f0   :  { %v4676_v57 = vadd.f32 %v4675_v36, %v4606_v55  ;;  %v4608_v34 = vpop.f32.mrf.mxu0  ;;  %v4206_v13 = vpop.f32.mrf.mxu1  ;;  %v7609_v36 = vld [vmem:[%s12310_s0 + $0xd8] sm:$0xf0] }
 0x4f2   :  { %v11830_v8 = vadd.f32 %v4676_v57, %v4301_v53  ;;  %v4275_v56 = vpop.f32.mrf.mxu3  ;;  %v7753_v53 = vld [vmem:[%s12310_s0 + $0xb8] sm:$0xf0] }
 0x4f3   :  { %v4276_v38 = vadd.f32 %v4275_v56, %v4206_v13  ;;  %5005 = vmatmul.bf16.gmra.mxu1 %v7592_v54  ;;  %v7756_v44 = vor.u32 %v8265_v23, %v7753_v53  ;;  %v8238_v23 = vld [vmem:[%s12310_s0 + $0xd4] sm:$0xf0] }
 0x4f5   :  { %v4305_v30 = vadd.f32 %v4276_v38, %v11468_v40  ;;  %v8235_v40 = vld [vmem:[%s12310_s0 + $0xc4] sm:$0xf] }
 0x4f6   :  { %v7604_v15 = vor.u32 %v8235_v40, %v7601_v12 }
 0x4f7   :  { %v4677_v49 = vpop.f32.mrf.mxu2 }
 0x4f8   :  { %v4678_v7 = vadd.f32 %v4677_v49, %v4608_v34  ;;  %v4611_v51 = vpop.f32.mrf.mxu0  ;;  %v4208_v2 = vpop.f32.mrf.mxu1  ;;  %v7608_v49 = vor.u32 %v8238_v23, %v7607_v16 }
 0x4fa   :  { %v11851_v25 = vadd.f32 %v4678_v7, %v4302_v28  ;;  %v4277_v0 = vpop.f32.mrf.mxu3 }
 0x4fb   :  { %v4278_v18 = vadd.f32 %v4277_v0, %v4208_v2  ;;  %5410 = vmatmul.bf16.gmra.mxu0 %v7752_v39  ;;  %v8270_v2 = vld [vmem:[%s12310_s0 + $0xd4] sm:$0xf0]  ;;  %v8269_v0 = vld [vmem:[%s12310_s0 + $0xd4] sm:$0xf] }
 0x4fc   :  { %7850 = vmatmul.msk.bf16.gmra.mxu2 %vm253_vm0, %v7756_v44 }
 0x4fd   :  { %v4306_v4 = vadd.f32 %v4278_v18, %v11492_v9  ;;  %v7759_v9 = vld [vmem:[%s12310_s0 + $0xc0] sm:$0xf] }
 0x4fe   :  { %v7760_v27 = vor.u32 %v8268_v10, %v7759_v9  ;;  %v7615_v10 = vld [vmem:[%s12310_s0 + $0xe0] sm:$0xf] }
 0x4ff   :  { %v4680_v60 = vpop.f32.mrf.mxu2  ;;  %7684 = vmatmul.msk.bf16.gmra.mxu3 %vm253_vm0, %v7604_v15 }
 0x500   :  { %v4681_v28 = vadd.f32 %v4680_v60, %v4611_v51  ;;  %v4613_v5 = vpop.f32.mrf.mxu0  ;;  %v4211_v35 = vpop.f32.mrf.mxu1  ;;  %v7617_v60 = vld [vmem:[%s12310_s0 + $0xe8] sm:$0xf0] }
 0x502   :  { %v11862_v42 = vadd.f32 %v4681_v28, %v4303_v63  ;;  %v4280_v50 = vpop.f32.mrf.mxu3  ;;  %v7761_v63 = vld [vmem:[%s12310_s0 + $0xc8] sm:$0xf0] }
 0x503   :  { %v4281_v1 = vadd.f32 %v4280_v50, %v4211_v35  ;;  %5010 = vmatmul.bf16.gmra.mxu1 %v7600_v45  ;;  %v7764_v17 = vor.u32 %v8267_v58, %v7761_v63  ;;  %v8240_v58 = vld [vmem:[%s12310_s0 + $0xe4] sm:$0xf0] }
 0x505   :  { %v4307_v55 = vadd.f32 %v4281_v1, %v11506_v29  ;;  %v8237_v29 = vld [vmem:[%s12310_s0 + $0xd4] sm:$0xf] }
 0x506   :  { %v7612_v38 = vor.u32 %v8237_v29, %v7609_v36 }
 0x507   :  { %v4682_v48 = vpop.f32.mrf.mxu2 }
 0x508   :  { %v4683_v47 = vadd.f32 %v4682_v48, %v4613_v5  ;;  %v4616_v57 = vpop.f32.mrf.mxu0  ;;  %v4213_v54 = vpop.f32.mrf.mxu1  ;;  %v7616_v48 = vor.u32 %v8240_v58, %v7615_v10 }
 0x50a   :  { %v11883_v34 = vadd.f32 %v4683_v47, %v4304_v43  ;;  %v4282_v13 = vpop.f32.mrf.mxu3 }
 0x50b   :  { %v4283_v56 = vadd.f32 %v4282_v13, %v4213_v54  ;;  %5415 = vmatmul.bf16.gmra.mxu0 %v7760_v27  ;;  %v8272_v54 = vld [vmem:[%s12310_s0 + $0xe4] sm:$0xf0]  ;;  %v8271_v13 = vld [vmem:[%s12310_s0 + $0xe4] sm:$0xf] }
 0x50c   :  { %7851 = vmatmul.msk.bf16.gmra.mxu2 %vm253_vm0, %v7764_v17 }
 0x50d   :  { %v4308_v59 = vadd.f32 %v4283_v56, %v11542_v20  ;;  %v7767_v20 = vld [vmem:[%s12310_s0 + $0xd0] sm:$0xf] }
 0x50e   :  { %v7768_v61 = vor.u32 %v8270_v2, %v7767_v20  ;;  %v7623_v2 = vld [vmem:[%s12310_s0 + $0xf0] sm:$0xf] }
 0x50f   :  { %v4685_v53 = vpop.f32.mrf.mxu2  ;;  %7685 = vmatmul.msk.bf16.gmra.mxu3 %vm253_vm0, %v7612_v38 }
 0x510   :  { %v4686_v43 = vadd.f32 %v4685_v53, %v4616_v57  ;;  %v4618_v7 = vpop.f32.mrf.mxu0  ;;  %v4976_v39 = vpop.f32.mrf.mxu1  ;;  %v7625_v53 = vld [vmem:[%s12310_s0 + $0xf8] sm:$0xf0] }
 0x512   :  { %v11894_v44 = vadd.f32 %v4686_v43, %v4305_v30  ;;  %v5045_v40 = vpop.f32.mrf.mxu3  ;;  %v7769_v30 = vld [vmem:[%s12310_s0 + $0xd8] sm:$0xf0] }
 0x513   :  { %v5046_v12 = vadd.f32 %v5045_v40, %v4976_v39  ;;  %5015 = vmatmul.bf16.gmra.mxu1 %v7608_v49  ;;  %v7772_v33 = vor.u32 %v8269_v0, %v7769_v30  ;;  %v8242_v0 = vld [vmem:[%s12310_s0 + $0xf4] sm:$0xf0] }
 0x515   :  { %v5105_v51 = vadd.f32 %v5046_v12, %v11556_v52  ;;  %v8239_v52 = vld [vmem:[%s12310_s0 + $0xe4] sm:$0xf] }
 0x516   :  { %v7620_v1 = vor.u32 %v8239_v52, %v7617_v60 }
 0x517   :  { %v4687_v18 = vpop.f32.mrf.mxu2 }
 0x518   :  { %v4688_v15 = vadd.f32 %v4687_v18, %v4618_v7  ;;  %v4621_v28 = vpop.f32.mrf.mxu0  ;;  %v4978_v45 = vpop.f32.mrf.mxu1  ;;  %v7624_v18 = vor.u32 %v8242_v0, %v7623_v2 }
 0x51a   :  { %v11915_v5 = vadd.f32 %v4688_v15, %v4306_v4  ;;  %v5047_v35 = vpop.f32.mrf.mxu3 }
 0x51b   :  { %v5048_v50 = vadd.f32 %v5047_v35, %v4978_v45  ;;  %5420 = vmatmul.bf16.gmra.mxu0 %v7768_v61  ;;  %v8274_v45 = vld [vmem:[%s12310_s0 + $0xf4] sm:$0xf0]  ;;  %v8273_v35 = vld [vmem:[%s12310_s0 + $0xf4] sm:$0xf] }
 0x51c   :  { %7852 = vmatmul.msk.bf16.gmra.mxu2 %vm253_vm0, %v7772_v33 }
 0x51d   :  { %v5106_v9 = vadd.f32 %v5048_v50, %v11580_v21  ;;  %v7775_v21 = vld [vmem:[%s12310_s0 + $0xe0] sm:$0xf] }
 0x51e   :  { %v7776_v16 = vor.u32 %v8272_v54, %v7775_v21  ;;  %v7631_v54 = vld [vmem:[%s12310_s0 + $0x100] sm:$0xf] }
 0x51f   :  { %v4690_v63 = vpop.f32.mrf.mxu2  ;;  %7686 = vmatmul.msk.bf16.gmra.mxu3 %vm253_vm0, %v7620_v1 }
 0x520   :  { %v4691_v4 = vadd.f32 %v4690_v63, %v4621_v28  ;;  %v4623_v47 = vpop.f32.mrf.mxu0  ;;  %v4981_v27 = vpop.f32.mrf.mxu1  ;;  %v7633_v63 = vld [vmem:[%s12310_s0 + $0x108] sm:$0xf0] }
 0x522   :  { %v11926_v17 = vadd.f32 %v4691_v4, %v4307_v55  ;;  %v5050_v29 = vpop.f32.mrf.mxu3  ;;  %v7777_v55 = vld [vmem:[%s12310_s0 + $0xe8] sm:$0xf0] }
 0x523   :  { %v5051_v36 = vadd.f32 %v5050_v29, %v4981_v27  ;;  %5020 = vmatmul.bf16.gmra.mxu1 %v7616_v48  ;;  %v7780_v23 = vor.u32 %v8271_v13, %v7777_v55  ;;  %v8244_v13 = vld [vmem:[%s12310_s0 + $0x104] sm:$0xf0] }
 0x525   :  { %v5107_v57 = vadd.f32 %v5051_v36, %v11604_v14  ;;  %v8241_v14 = vld [vmem:[%s12310_s0 + $0xf4] sm:$0xf] }
 0x526   :  { %v7628_v12 = vor.u32 %v8241_v14, %v7625_v53 }
 0x527   :  { %v4692_v56 = vpop.f32.mrf.mxu2 }
 0x528   :  { %v4693_v38 = vadd.f32 %v4692_v56, %v4623_v47  ;;  %v5386_v43 = vpop.f32.mrf.mxu0  ;;  %v4983_v49 = vpop.f32.mrf.mxu1  ;;  %v7632_v56 = vor.u32 %v8244_v13, %v7631_v54 }
 0x52a   :  { %v11947_v7 = vadd.f32 %v4693_v38, %v4308_v59  ;;  %v5052_v39 = vpop.f32.mrf.mxu3 }
 0x52b   :  { %v5053_v40 = vadd.f32 %v5052_v39, %v4983_v49  ;;  %5425 = vmatmul.bf16.gmra.mxu0 %v7776_v16  ;;  %v8276_v49 = vld [vmem:[%s12310_s0 + $0x104] sm:$0xf0]  ;;  %v8275_v39 = vld [vmem:[%s12310_s0 + $0x104] sm:$0xf] }
 0x52c   :  { %7853 = vmatmul.msk.bf16.gmra.mxu2 %vm253_vm0, %v7780_v23 }
 0x52d   :  { %v5108_v20 = vadd.f32 %v5053_v40, %v11626_v6  ;;  %v7783_v6 = vld [vmem:[%s12310_s0 + $0xf0] sm:$0xf] }
 0x52e   :  { %v7784_v10 = vor.u32 %v8274_v45, %v7783_v6 }
 0x52f   :  { %v5455_v30 = vpop.f32.mrf.mxu2  ;;  %7687 = vmatmul.msk.bf16.gmra.mxu3 %vm253_vm0, %v7628_v12 }
 0x530   :  { %v5456_v59 = vadd.f32 %v5455_v30, %v5386_v43  ;;  %v5388_v15 = vpop.f32.mrf.mxu0  ;;  %v4986_v61 = vpop.f32.mrf.mxu1 }
 0x532   :  { %v11958_v33 = vadd.f32 %v5456_v59, %v5105_v51  ;;  %v5055_v52 = vpop.f32.mrf.mxu3  ;;  %v7785_v51 = vld [vmem:[%s12310_s0 + $0xf8] sm:$0xf0] }
 0x533   :  { %v5056_v60 = vadd.f32 %v5055_v52, %v4986_v61  ;;  %5025 = vmatmul.bf16.gmra.mxu1 %v7624_v18  ;;  %v7788_v58 = vor.u32 %v8273_v35, %v7785_v51 }
 0x534   :  { %12381 = vst [vmem:[#allocation9_spill] sm:$0xff] %v11958_v33 }
 0x535   :  { %v5109_v28 = vadd.f32 %v5056_v60, %v11638_v37  ;;  %v8243_v37 = vld [vmem:[%s12310_s0 + $0x104] sm:$0xf] }
 0x536   :  { %v7636_v36 = vor.u32 %v8243_v37, %v7633_v63 }
 0x537   :  { %v5457_v50 = vpop.f32.mrf.mxu2 }
 0x538   :  { %v5458_v1 = vadd.f32 %v5457_v50, %v5388_v15  ;;  %v5391_v4 = vpop.f32.mrf.mxu0  ;;  %v4988_v48 = vpop.f32.mrf.mxu1 }
 0x53a   :  { %v11979_v47 = vadd.f32 %v5458_v1, %v5106_v9  ;;  %v5057_v27 = vpop.f32.mrf.mxu3 }
 0x53b   :  { %v5058_v29 = vadd.f32 %v5057_v27, %v4988_v48  ;;  %5430 = vmatmul.bf16.gmra.mxu0 %v7784_v10  ;;  %v8278_v10 = vld [vmem:[%s12310_s0 + $0x114] sm:$0xf0] }
 0x53c   :  { %12382 = vst [vmem:[#allocation11_spill] sm:$0xff] %v11979_v47  ;;  %7854 = vmatmul.msk.bf16.gmra.mxu2 %vm253_vm0, %v7788_v58 }
 0x53d   :  { %v5110_v21 = vadd.f32 %v5058_v29, %v11659_v62  ;;  %v7791_v62 = vld [vmem:[%s12310_s0 + $0x100] sm:$0xf] }
 0x53e   :  { %v7792_v2 = vor.u32 %v8276_v49, %v7791_v62 }
 0x53f   :  { %v5460_v55 = vpop.f32.mrf.mxu2  ;;  %7688 = vmatmul.msk.bf16.gmra.mxu3 %vm253_vm0, %v7636_v36 }
 0x540   :  { %v5461_v9 = vadd.f32 %v5460_v55, %v5391_v4  ;;  %v5393_v38 = vpop.f32.mrf.mxu0  ;;  %v4991_v16 = vpop.f32.mrf.mxu1 }
 0x542   :  { %v11990_v23 = vadd.f32 %v5461_v9, %v5107_v57  ;;  %v5060_v14 = vpop.f32.mrf.mxu3  ;;  %v7793_v57 = vld [vmem:[%s12310_s0 + $0x108] sm:$0xf0] }
 0x543   :  { %v5061_v53 = vadd.f32 %v5060_v14, %v4991_v16  ;;  %5030 = vmatmul.bf16.gmra.mxu1 %v7632_v56  ;;  %v7796_v0 = vor.u32 %v8275_v39, %v7793_v57 }
 0x544   :  { %12383 = vst [vmem:[#allocation5_spill] sm:$0xff] %v11990_v23 }
 0x545   :  { %v5111_v43 = vadd.f32 %v5061_v53, %v11670_v46 }
 0x547   :  { %v5462_v40 = vpop.f32.mrf.mxu2 }
 0x548   :  { %v5463_v12 = vadd.f32 %v5462_v40, %v5393_v38  ;;  %v5396_v30 = vpop.f32.mrf.mxu0  ;;  %v4993_v59 = vpop.f32.mrf.mxu1 }
 0x54a   :  { %v12005_v18 = vadd.f32 %v5463_v12, %v5108_v20  ;;  %v5062_v46 = vpop.f32.mrf.mxu3  ;;  %v7799_v20 = vld [vmem:[%s12310_s0 + $0x110] sm:$0xf] }
 0x54b   :  { %v5063_v15 = vadd.f32 %v5062_v46, %v4993_v59  ;;  %5435 = vmatmul.bf16.gmra.mxu0 %v7792_v2  ;;  %v7800_v63 = vor.u32 %v8278_v10, %v7799_v20 }
 0x54c   :  { %12384 = vst [vmem:[#allocation6_spill] sm:$0xff] %v12005_v18  ;;  %7855 = vmatmul.msk.bf16.gmra.mxu2 %vm253_vm0, %v7796_v0 }
 0x54d   :  { %v5112_v61 = vadd.f32 %v5063_v15, %v11691_v3  ;;  %v8277_v3 = vld [vmem:[%s12310_s0 + $0x114] sm:$0xf] }
 0x54f   :  { %v5465_v52 = vpop.f32.mrf.mxu2 }
 0x550   :  { %v5466_v60 = vadd.f32 %v5465_v52, %v5396_v30  ;;  %v5398_v6 = vpop.f32.mrf.mxu0  ;;  %v4996_v45 = vpop.f32.mrf.mxu1 }
 0x552   :  { %v12009_v35 = vadd.f32 %v5466_v60, %v5109_v28  ;;  %v5065_v51 = vpop.f32.mrf.mxu3  ;;  %v7801_v28 = vld [vmem:[%s12310_s0 + $0x118] sm:$0xf0] }
 0x553   :  { %v5066_v50 = vadd.f32 %v5065_v51, %v4996_v45  ;;  %v7804_v4 = vor.u32 %v8277_v3, %v7801_v28 }
 0x555   :  { %v5113_v1 = vadd.f32 %v5066_v50, %v11702_v26 }
 0x557   :  { %v5467_v58 = vpop.f32.mrf.mxu2 }
 0x558   :  { %v5468_v37 = vadd.f32 %v5467_v58, %v5398_v6  ;;  %v5401_v48 = vpop.f32.mrf.mxu0  ;;  %v4998_v27 = vpop.f32.mrf.mxu1 }
 0x55a   :  { %v12024_v29 = vadd.f32 %v5468_v37, %v5110_v21  ;;  %v5067_v26 = vpop.f32.mrf.mxu3 }
 0x55b   :  { %v5068_v36 = vadd.f32 %v5067_v26, %v4998_v27  ;;  %5440 = vmatmul.bf16.gmra.mxu0 %v7800_v63 }
 0x55c   :  { %12385 = vst [vmem:[#allocation13_spill] sm:$0xff] %v12024_v29  ;;  %7856 = vmatmul.msk.bf16.gmra.mxu2 %vm253_vm0, %v7804_v4 }
 0x55d   :  { %v5114_v54 = vadd.f32 %v5068_v36, %v11723_v11 }
 0x55f   :  { %v5470_v13 = vpop.f32.mrf.mxu2 }
 0x560   :  { %v5471_v55 = vadd.f32 %v5470_v13, %v5401_v48  ;;  %v5403_v9 = vpop.f32.mrf.mxu0  ;;  %v5001_v56 = vpop.f32.mrf.mxu1 }
 0x562   :  { %v12028_v38 = vadd.f32 %v5471_v55, %v5111_v43  ;;  %v5070_v16 = vpop.f32.mrf.mxu3 }
 0x563   :  { %v5071_v14 = vadd.f32 %v5070_v16, %v5001_v56 }
 0x564   :  { %12386 = vst [vmem:[#allocation4_spill] sm:$0xff] %v12028_v38 }
 0x565   :  { %v5115_v53 = vadd.f32 %v5071_v14, %v11734_v32 }
 0x567   :  { %v5472_v62 = vpop.f32.mrf.mxu2 }
 0x568   :  { %v5473_v21 = vadd.f32 %v5472_v62, %v5403_v9  ;;  %v5406_v49 = vpop.f32.mrf.mxu0  ;;  %v5003_v39 = vpop.f32.mrf.mxu1 }
 0x56a   :  { %v12031_v57 = vadd.f32 %v5473_v21, %v5112_v61  ;;  %v5072_v40 = vpop.f32.mrf.mxu3 }
 0x56b   :  { %v5073_v12 = vadd.f32 %v5072_v40, %v5003_v39 }
 0x56c   :  { %12387 = vst [vmem:[#allocation7_spill] sm:$0xff] %v12031_v57 }
 0x56d   :  { %v5116_v11 = vadd.f32 %v5073_v12, %v11755_v24 }
 0x56f   :  { %v5475_v2 = vpop.f32.mrf.mxu2 }
 0x570   :  { %v5476_v0 = vadd.f32 %v5475_v2, %v5406_v49  ;;  %v5408_v30 = vpop.f32.mrf.mxu0  ;;  %v5006_v59 = vpop.f32.mrf.mxu1 }
 0x572   :  { %v12034_v43 = vadd.f32 %v5476_v0, %v5113_v1  ;;  %v5075_v46 = vpop.f32.mrf.mxu3 }
 0x573   :  { %v5076_v15 = vadd.f32 %v5075_v46, %v5006_v59  ;;  %v5569_v59 = vmul.f32 %v11979_v47, %v11979_v47  ;;  %v5568_v46 = vmul.f32 %v11958_v33, %v11958_v33 }
 0x574   :  { %12388 = vst [vmem:[#allocation12_spill] sm:$0xff] %v12034_v43 }
 0x575   :  { %v5117_v32 = vadd.f32 %v5076_v15, %v11766_v19  ;;  %v5539_v15 = vadd.f32 %v11979_v47, %v11958_v33  ;;  %v5575_v47 = vmul.f32 %v12031_v57, %v12031_v57 }
 0x577   :  { %v5477_v52 = vpop.f32.mrf.mxu2 }
 0x578   :  { %v5478_v60 = vadd.f32 %v5477_v52, %v5408_v30  ;;  %v5411_v6 = vpop.f32.mrf.mxu0  ;;  %v12039_v61 = vpop.f32.mrf.mxu1 }
 0x57a   :  { %v12037_v45 = vadd.f32 %v5478_v60, %v5114_v54  ;;  %v12041_v51 = vpop.f32.mrf.mxu3  ;;  %v5592_v60 = vadd.f32 %v5569_v59, %v5568_v46  ;;  %v5573_v46 = vmul.f32 %v12024_v29, %v12024_v29 }
 0x57f   :  { %v5480_v24 = vpop.f32.mrf.mxu2 }
 0x580   :  { %v5481_v50 = vadd.f32 %v5480_v24, %v5411_v6  ;;  %v5413_v20 = vpop.f32.mrf.mxu0  ;;  %v12045_v1 = vpop.f32.mrf.mxu1  ;;  %v5540_v6 = vadd.f32 %v5539_v15, %v11990_v23  ;;  %v5571_v24 = vmul.f32 %v12005_v18, %v12005_v18 }
 0x582   :  { %v12043_v10 = vadd.f32 %v5481_v50, %v5115_v53  ;;  %v12047_v3 = vpop.f32.mrf.mxu3 }
 0x587   :  { %v5482_v28 = vpop.f32.mrf.mxu2 }
 0x588   :  { %v5483_v19 = vadd.f32 %v5482_v28, %v5413_v20  ;;  %v5416_v58 = vpop.f32.mrf.mxu0  ;;  %v12051_v4 = vpop.f32.mrf.mxu1  ;;  %v5541_v28 = vadd.f32 %v5540_v6, %v12005_v18 }
 0x58a   :  { %v12049_v37 = vadd.f32 %v5483_v19, %v5116_v11  ;;  %v5082_v48 = vpop.f32.mrf.mxu3  ;;  %v5572_v19 = vmul.f32 %v12009_v35, %v12009_v35  ;;  %v5542_v59 = vadd.f32 %v5541_v28, %v12009_v35  ;;  %v5576_v28 = vmul.f32 %v12034_v43, %v12034_v43 }
 0x58f   :  { %v5485_v63 = vpop.f32.mrf.mxu2 }
 0x590   :  { %v5486_v27 = vadd.f32 %v5485_v63, %v5416_v58  ;;  %v5418_v26 = vpop.f32.mrf.mxu0  ;;  %v12055_v55 = vpop.f32.mrf.mxu1 }
 0x592   :  { %v12053_v36 = vadd.f32 %v5486_v27, %v5117_v32  ;;  %v5085_v9 = vpop.f32.mrf.mxu3  ;;  %v5570_v32 = vmul.f32 %v11990_v23, %v11990_v23  ;;  %v5543_v23 = vadd.f32 %v5542_v59, %v12024_v29  ;;  %v5579_v29 = vmul.f32 %v12049_v37, %v12049_v37 }
 0x594   :  { %v5593_v20 = vadd.f32 %v5592_v60, %v5570_v32  ;;  %v5574_v32 = vmul.f32 %v12028_v38, %v12028_v38  ;;  %v5544_v18 = vadd.f32 %v5543_v23, %v12028_v38  ;;  %v5577_v23 = vmul.f32 %v12037_v45, %v12037_v45 }
 0x595   :  { %v5081_v38 = vadd.f32 %v12047_v3, %v12045_v1  ;;  %v5086_v3 = vadd.f32 %v5085_v9, %v12055_v55 }
 0x596   :  { %v5594_v27 = vadd.f32 %v5593_v20, %v5571_v24  ;;  %v5545_v20 = vadd.f32 %v5544_v18, %v12031_v57  ;;  %v5578_v57 = vmul.f32 %v12043_v10, %v12043_v10 }
 0x597   :  { %v5487_v54 = vpop.f32.mrf.mxu2  ;;  %v5119_v1 = vadd.f32 %v5081_v38, %v11798_v41 }
 0x598   :  { %v5421_v13 = vpop.f32.mrf.mxu0  ;;  %v12057_v14 = vpop.f32.mrf.mxu1  ;;  %v5595_v15 = vadd.f32 %v5594_v27, %v5572_v19  ;;  %v5078_v19 = vadd.f32 %v12041_v51, %v12039_v61  ;;  %v5546_v59 = vadd.f32 %v5545_v20, %v12034_v43 }
 0x59a   :  { %v12059_v53 = vpop.f32.mrf.mxu3  ;;  %v5596_v6 = vadd.f32 %v5595_v15, %v5573_v46  ;;  %v5547_v18 = vadd.f32 %v5546_v59, %v12037_v45  ;;  %v5118_v61 = vadd.f32 %v5078_v19, %v11787_v22 }
 0x59c   :  { %v5597_v24 = vadd.f32 %v5596_v6, %v5574_v32  ;;  %v5488_v32 = vadd.f32 %v5487_v54, %v5418_v26  ;;  %v5548_v43 = vadd.f32 %v5547_v18, %v12043_v10 }
 0x59e   :  { %v5598_v27 = vadd.f32 %v5597_v24, %v5575_v47  ;;  %v5083_v47 = vadd.f32 %v5082_v48, %v12051_v4  ;;  %v12130_v26 = vadd.f32 %v5488_v32, %v5118_v61  ;;  %v5549_v22 = vadd.f32 %v5548_v43, %v12049_v37 }
 0x59f   :  { %v5490_v56 = vpop.f32.mrf.mxu2  ;;  %v5580_v4 = vmul.f32 %v12053_v36, %v12053_v36 }
 0x5a0   :  { %v5423_v16 = vpop.f32.mrf.mxu0  ;;  %v12063_v49 = vpop.f32.mrf.mxu1  ;;  %v5599_v6 = vadd.f32 %v5598_v27, %v5576_v28  ;;  %v5491_v51 = vadd.f32 %v5490_v56, %v5421_v13  ;;  %v5120_v48 = vadd.f32 %v5083_v47, %v11819_v31  ;;  %v5088_v13 = vadd.f32 %v12059_v53, %v12057_v14 }
 0x5a1   :  { %v5550_v9 = vadd.f32 %v5549_v22, %v12053_v36  ;;  %v5581_v43 = vmul.f32 %v12130_v26, %v12130_v26 }
 0x5a2   :  { %v12065_v39 = vpop.f32.mrf.mxu3  ;;  %v5600_v20 = vadd.f32 %v5599_v6, %v5577_v23  ;;  %v12138_v56 = vadd.f32 %v5491_v51, %v5119_v1 }
 0x5a3   :  { %v5091_v14 = vadd.f32 %v12065_v39, %v12063_v49 }
 0x5a4   :  { %v5601_v28 = vadd.f32 %v5600_v20, %v5578_v57  ;;  %v5121_v57 = vadd.f32 %v5086_v3, %v11830_v8  ;;  %v5582_v8 = vmul.f32 %v12138_v56, %v12138_v56 }
 0x5a6   :  { %v5602_v55 = vadd.f32 %v5601_v28, %v5579_v29  ;;  %v5551_v29 = vadd.f32 %v5550_v9, %v12130_v26 }
 0x5a7   :  { %v5492_v62 = vpop.f32.mrf.mxu2 }
 0x5a8   :  { %v12061_v21 = vpop.f32.mrf.mxu0  ;;  %v12071_v2 = vpop.f32.mrf.mxu1  ;;  %v5493_v54 = vadd.f32 %v5492_v62, %v5423_v16  ;;  %v5603_v62 = vadd.f32 %v5602_v55, %v5580_v4  ;;  %v5552_v49 = vadd.f32 %v5551_v29, %v12138_v56 }
 0x5aa   :  { %v12073_v0 = vpop.f32.mrf.mxu3  ;;  %v12145_v16 = vadd.f32 %v5493_v54, %v5120_v48 }
 0x5ab   :  { %v5093_v59 = vadd.f32 %v12073_v0, %v12071_v2 }
 0x5ac   :  { %v5583_v39 = vmul.f32 %v12145_v16, %v12145_v16  ;;  %v5553_v2 = vadd.f32 %v5552_v49, %v12145_v16 }
 0x5af   :  { %v5495_v40 = vpop.f32.mrf.mxu2 }
 0x5b0   :  { %v12067_v12 = vpop.f32.mrf.mxu0  ;;  %v12095_v58 = vpop.f32.mrf.mxu1  ;;  %v5496_v41 = vadd.f32 %v5495_v40, %v12061_v21  ;;  %v5122_v40 = vadd.f32 %v5088_v13, %v11851_v25  ;;  %v5123_v25 = vadd.f32 %v5091_v14, %v11862_v42 }
 0x5b2   :  { %v12097_v63 = vpop.f32.mrf.mxu3  ;;  %v12155_v19 = vadd.f32 %v5496_v41, %v5121_v57 }
 0x5b3   :  { %v5096_v32 = vadd.f32 %v12097_v63, %v12095_v58 }
 0x5b4   :  { %v5584_v0 = vmul.f32 %v12155_v19, %v12155_v19  ;;  %v5554_v42 = vadd.f32 %v5553_v2, %v12155_v19 }
 0x5b5   :  { %v5125_v63 = vadd.f32 %v5096_v32, %v11894_v44 }
 0x5b7   :  { %v12069_v11 = vpop.f32.mrf.mxu2 }
 0x5b8   :  { %v12075_v30 = vpop.f32.mrf.mxu0  ;;  %v5028_v46 = vpop.f32.mrf.mxu1  ;;  %v5498_v31 = vadd.f32 %v12069_v11, %v12067_v12  ;;  %v5604_v11 = vadd.f32 %v5603_v62, %v5581_v43 }
 0x5ba   :  { %v5097_v15 = vpop.f32.mrf.mxu3  ;;  %v12164_v23 = vadd.f32 %v5498_v31, %v5122_v40  ;;  %v5605_v18 = vadd.f32 %v5604_v11, %v5582_v8 }
 0x5bc   :  { %v5606_v51 = vadd.f32 %v5605_v18, %v5583_v39  ;;  %v5585_v58 = vmul.f32 %v12164_v23, %v12164_v23 }
 0x5be   :  { %v5607_v3 = vadd.f32 %v5606_v51, %v5584_v0 }
 0x5bf   :  { %v12085_v52 = vpop.f32.mrf.mxu2 }
 0x5c0   :  { %v12090_v50 = vpop.f32.mrf.mxu0  ;;  %v5031_v53 = vpop.f32.mrf.mxu1  ;;  %v5501_v12 = vadd.f32 %v12085_v52, %v12075_v30  ;;  %v5124_v30 = vadd.f32 %v5093_v59, %v11883_v34  ;;  %v5098_v52 = vadd.f32 %v5097_v15, %v5028_v46  ;;  %v5555_v34 = vadd.f32 %v5554_v42, %v12164_v23 }
 0x5c1   :  { %v5608_v4 = vadd.f32 %v5607_v3, %v5585_v58 }
 0x5c2   :  { %v5100_v21 = vpop.f32.mrf.mxu3  ;;  %v12174_v61 = vadd.f32 %v5501_v12, %v5123_v25  ;;  %v5126_v15 = vadd.f32 %v5098_v52, %v11915_v5 }
 0x5c4   :  { %v5556_v44 = vadd.f32 %v5555_v34, %v12174_v61 }
 0x5c7   :  { %v5502_v60 = vpop.f32.mrf.mxu2 }
 0x5c8   :  { %v12108_v33 = vpop.f32.mrf.mxu0  ;;  %v5503_v6 = vadd.f32 %v5502_v60, %v12090_v50  ;;  %v5101_v60 = vadd.f32 %v5100_v21, %v5031_v53 }
 0x5ca   :  { %v12181_v20 = vadd.f32 %v5503_v6, %v5124_v30  ;;  %v5102_v54 = vpop.f32.mrf.mxu3  ;;  %v5127_v48 = vadd.f32 %v5101_v60, %v11926_v17 }
 0x5cc   :  { %v5587_v13 = vmul.f32 %v12181_v20, %v12181_v20  ;;  %v5557_v55 = vadd.f32 %v5556_v44, %v12181_v20 }
 0x5cf   :  { %v5505_v24 = vpop.f32.mrf.mxu2 }
 0x5d0   :  { %v5438_v38 = vpop.f32.mrf.mxu0  ;;  %v5506_v47 = vadd.f32 %v5505_v24, %v12108_v33  ;;  %v5586_v33 = vmul.f32 %v12174_v61, %v12174_v61  ;;  %v5033_v24 = vpop.f32.mrf.mxu1 }
 0x5d2   :  { %v12187_v28 = vadd.f32 %v5506_v47, %v5125_v63  ;;  %v5609_v5 = vadd.f32 %v5608_v4, %v5586_v33 }
 0x5d4   :  { %v5588_v9 = vmul.f32 %v12187_v28, %v12187_v28  ;;  %v5610_v43 = vadd.f32 %v5609_v5, %v5587_v13  ;;  %v5558_v31 = vadd.f32 %v5557_v55, %v12187_v28  ;;  %v12389_v55 = vld [vmem:[#allocation9_spill] sm:$0xff] }
 0x5d6   :  { %v5611_v21 = vadd.f32 %v5610_v43, %v5588_v9  ;;  %v12390_v43 = vld [vmem:[#allocation11_spill] sm:$0xff] }
 0x5d7   :  { %v5507_v27 = vpop.f32.mrf.mxu2 }
 0x5d8   :  { %v5441_v50 = vpop.f32.mrf.mxu0  ;;  %v5508_v1 = vadd.f32 %v5507_v27, %v5438_v38  ;;  %v5103_v38 = vadd.f32 %v5102_v54, %v5033_v24 }
 0x5da   :  { %v12193_v41 = vadd.f32 %v5508_v1, %v5126_v15  ;;  %v5128_v62 = vadd.f32 %v5103_v38, %v11947_v7 }
 0x5dc   :  { %v5589_v17 = vmul.f32 %v12193_v41, %v12193_v41  ;;  %v5559_v29 = vadd.f32 %v5558_v31, %v12193_v41 }
 0x5de   :  { %v5612_v27 = vadd.f32 %v5611_v21, %v5589_v17  ;;  %v12391_v17 = vld [vmem:[#allocation5_spill] sm:$0xff] }
 0x5df   :  { %v5510_v46 = vpop.f32.mrf.mxu2 }
 0x5e0   :  { %v5511_v22 = vadd.f32 %v5510_v46, %v5441_v50  ;;  %v5443_v14 = vpop.f32.mrf.mxu0 }
 0x5e2   :  { %v12198_v57 = vadd.f32 %v5511_v22, %v5127_v48  ;;  %v5636_v22 = vld [vmem:[%s12311_s2 + $0x1] sm:$0x1] }
 0x5e3   :  { %v5638_v48 = vld [vmem:[%s12312_s3 + $0x1] sm:$0x1] }
 0x5e4   :  { %v5590_v40 = vmul.f32 %v12198_v57, %v12198_v57  ;;  %v5560_v59 = vadd.f32 %v5559_v29, %v12198_v57  ;;  %v12393_v29 = vld [vmem:[#allocation13_spill] sm:$0xff] }
 0x5e6   :  { %v5613_v11 = vadd.f32 %v5612_v27, %v5590_v40 }
 0x5e7   :  { %v5512_v53 = vpop.f32.mrf.mxu2 }
 0x5e8   :  { %v5513_v8 = vadd.f32 %v5512_v53, %v5443_v14  ;;  %v12392_v14 = vld [vmem:[#allocation6_spill] sm:$0xff] }
 0x5ea   :  { %v5538_v12 = vadd.f32 %v5513_v8, %v5128_v62  ;;  %v12394_v8 = vld [vmem:[#allocation4_spill] sm:$0xff] }
 0x5ec   :  { %v5561_v49 = vadd.f32 %v5560_v59, %v5538_v12  ;;  %v5591_v39 = vmul.f32 %v5538_v12, %v5538_v12  ;;  %v12395_v59 = vld [vmem:[#allocation7_spill] sm:$0xff] }
 0x5ee   :  { %v5562_v25 = vrot.slane %v5561_v49, 4  ;;  %v5614_v32 = vadd.f32 %v5613_v11, %v5591_v39 }
 0x5f0   :  { %v5563_v6 = vadd.f32 %v5562_v25, %v5561_v49  ;;  %v5615_v7 = vrot.slane %v5614_v32, 4  ;;  %v12396_v49 = vld [vmem:[#allocation12_spill] sm:$0xff] }
 0x5f2   :  { %v5564_v18 = vrot.slane %v5563_v6, 2  ;;  %v5616_v2 = vadd.f32 %v5615_v7, %v5614_v32 }
 0x5f4   :  { %v5565_v0 = vadd.f32 %v5564_v18, %v5563_v6  ;;  %v5617_v30 = vrot.slane %v5616_v2, 2 }
 0x5f6   :  { %v5566_v52 = vrot.slane %v5565_v0, 1  ;;  %v5618_v47 = vadd.f32 %v5617_v30, %v5616_v2 }
 0x5f8   :  { %v5567_v51 = vadd.f32 %v5566_v52, %v5565_v0  ;;  %v5619_v42 = vrot.slane %v5618_v47, 1 }
 0x5fa   :  { %v5620_v58 = vadd.f32 %v5619_v42, %v5618_v47  ;;  %v5621_v50 = vmul.f32 0.0069444445, %v5567_v51 }
 0x5fc   :  { %v5622_v63 = vmul.f32 0.0069444445, %v5620_v58  ;;  %v5623_v60 = vmul.f32 %v5621_v50, %v5621_v50 }
 0x5fe   :  { %v5624_v1 = vsub.f32 %v5622_v63, %v5623_v60 }
 0x600   :  { %v5625_v3 = vadd.f32 0.001, %v5624_v1 }
 0x602   :  { %8291 = vrsqrt.f32 %v5625_v3  ;;  %vm5632_vm5 = vweird.f32 %v5625_v3 }
 0x608   :  { %v8292_v34 = vpop.eup %8291 }
 0x609   :  { %v5627_v46 = vmul.f32 %v8292_v34, %v5625_v3  ;;  %vm5633_vm4 = vweird.f32 %v8292_v34 }
 0x60a   :  { %vm5634_vm6 = vmor %vm5632_vm5, %vm5633_vm4 }
 0x60b   :  { %v5628_v15 = vmul.f32 %v8292_v34, %v5627_v46 }
 0x60d   :  { %v5629_v33 = vmul.f32 0.5, %v5628_v15 }
 0x60f   :  { %v5630_v24 = vsub.f32 1.5, %v5629_v33 }
 0x611   :  { %v5631_v54 = vmul.f32 %v8292_v34, %v5630_v24 }
 0x613   :  { %v5635_v4 = vsel %vm5634_vm6, %v8292_v34, %v5631_v54 }
 0x614   :  { %v5637_v44 = vmul.f32 %v5636_v22, %v5635_v4 }
 0x616   :  { %v5639_v13 = vmul.f32 %v5637_v44, %v5621_v50  ;;  %v5641_v38 = vperm.slane %v5637_v44, 0 }
 0x618   :  { %v5640_v5 = vsub.f32 %v5638_v48, %v5639_v13  ;;  %v5642_v9 = vmul.f32 %v5641_v38, %v12389_v55  ;;  %v5643_v31 = vmul.f32 %v5641_v38, %v12390_v43  ;;  %v5644_v62 = vmul.f32 %v5641_v38, %v12391_v17 }
 0x619   :  { %v5645_v53 = vmul.f32 %v5641_v38, %v12392_v14  ;;  %v5646_v21 = vmul.f32 %v5641_v38, %v12009_v35  ;;  %v5647_v40 = vmul.f32 %v5641_v38, %v12393_v29  ;;  %v5648_v27 = vmul.f32 %v5641_v38, %v12394_v8 }
 0x61a   :  { %v5649_v11 = vmul.f32 %v5641_v38, %v12395_v59  ;;  %v5650_v39 = vmul.f32 %v5641_v38, %v12396_v49  ;;  %v5651_v25 = vmul.f32 %v5641_v38, %v12037_v45  ;;  %v5652_v32 = vmul.f32 %v5641_v38, %v12043_v10 }
 0x61b   :  { %v5653_v6 = vmul.f32 %v5641_v38, %v12049_v37  ;;  %v5654_v7 = vmul.f32 %v5641_v38, %v12053_v36  ;;  %v5655_v18 = vmul.f32 %v5641_v38, %v12130_v26  ;;  %v5656_v35 = vmul.f32 %v5641_v38, %v12138_v56 }
 0x61c   :  { %v5657_v2 = vmul.f32 %v5641_v38, %v12145_v16  ;;  %v5664_v0 = vmul.f32 %v5641_v38, %v12198_v57  ;;  %v5658_v30 = vmul.f32 %v5641_v38, %v12155_v19  ;;  %v5659_v52 = vmul.f32 %v5641_v38, %v12164_v23 }
 0x61d   :  { %v5665_v47 = vmul.f32 %v5641_v38, %v5538_v12  ;;  %v5667_v45 = vperm.slane %v5640_v5, 0  ;;  %v5660_v10 = vmul.f32 %v5641_v38, %v12174_v61  ;;  %v5661_v37 = vmul.f32 %v5641_v38, %v12181_v20 }
 0x61e   :  { %v5662_v36 = vmul.f32 %v5641_v38, %v12187_v28  ;;  %v5663_v26 = vmul.f32 %v5641_v38, %v12193_v41 }
 0x61f   :  { %v5669_v51 = vadd.f32 %v5667_v45, %v5642_v9  ;;  %v5670_v56 = vadd.f32 %v5667_v45, %v5643_v31  ;;  %v5671_v42 = vadd.f32 %v5667_v45, %v5644_v62  ;;  %v5672_v16 = vadd.f32 %v5667_v45, %v5645_v53 }
 0x620   :  { %v5673_v58 = vadd.f32 %v5667_v45, %v5646_v21  ;;  %v5674_v57 = vadd.f32 %v5667_v45, %v5647_v40  ;;  %v5675_v50 = vadd.f32 %v5667_v45, %v5648_v27  ;;  %v5676_v19 = vadd.f32 %v5667_v45, %v5649_v11 }
 0x621   :  { %v5677_v63 = vadd.f32 %v5667_v45, %v5650_v39  ;;  %v5678_v23 = vadd.f32 %v5667_v45, %v5651_v25  ;;  %v5679_v12 = vadd.f32 %v5667_v45, %v5652_v32  ;;  %v5680_v60 = vadd.f32 %v5667_v45, %v5653_v6  ;;  %5693 = vst [vmem:[%s12313_s4 + $0x8] sm:$0xff] %v5669_v51 }
 0x622   :  { %v5681_v61 = vadd.f32 %v5667_v45, %v5654_v7  ;;  %v5682_v20 = vadd.f32 %v5667_v45, %v5655_v18  ;;  %v5683_v28 = vadd.f32 %v5667_v45, %v5656_v35  ;;  %v5684_v41 = vadd.f32 %v5667_v45, %v5657_v2  ;;  %5694 = vst [vmem:[%s12313_s4 + $0x18] sm:$0xff] %v5670_v56 }
 0x623   :  { %v5685_v1 = vadd.f32 %v5667_v45, %v5658_v30  ;;  %v5686_v3 = vadd.f32 %v5667_v45, %v5659_v52  ;;  %v5687_v34 = vadd.f32 %v5667_v45, %v5660_v10  ;;  %v5688_v46 = vadd.f32 %v5667_v45, %v5661_v37  ;;  %5695 = vst [vmem:[%s12313_s4 + $0x28] sm:$0xff] %v5671_v42 }
 0x624   :  { %v5689_v15 = vadd.f32 %v5667_v45, %v5662_v36  ;;  %v5690_v33 = vadd.f32 %v5667_v45, %v5663_v26  ;;  %v5691_v24 = vadd.f32 %v5667_v45, %v5664_v0  ;;  %v5692_v54 = vadd.f32 %v5667_v45, %v5665_v47  ;;  %5696 = vst [vmem:[%s12313_s4 + $0x38] sm:$0xff] %v5672_v16 }
 0x625   :  { %5697 = vst [vmem:[%s12313_s4 + $0x48] sm:$0xff] %v5673_v58 }
 0x626   :  { %5698 = vst [vmem:[%s12313_s4 + $0x58] sm:$0xff] %v5674_v57 }
 0x627   :  { %5699 = vst [vmem:[%s12313_s4 + $0x68] sm:$0xff] %v5675_v50 }
 0x628   :  { %5700 = vst [vmem:[%s12313_s4 + $0x78] sm:$0xff] %v5676_v19 }
 0x629   :  { %5701 = vst [vmem:[%s12313_s4 + $0x88] sm:$0xff] %v5677_v63 }
 0x62a   :  { %5702 = vst [vmem:[%s12313_s4 + $0x98] sm:$0xff] %v5678_v23 }
 0x62b   :  { %5703 = vst [vmem:[%s12313_s4 + $0xa8] sm:$0xff] %v5679_v12 }
 0x62c   :  { %5704 = vst [vmem:[%s12313_s4 + $0xb8] sm:$0xff] %v5680_v60 }
 0x62d   :  { %5705 = vst [vmem:[%s12313_s4 + $0xc8] sm:$0xff] %v5681_v61 }
 0x62e   :  { %5706 = vst [vmem:[%s12313_s4 + $0xd8] sm:$0xff] %v5682_v20 }
 0x62f   :  { %5707 = vst [vmem:[%s12313_s4 + $0xe8] sm:$0xff] %v5683_v28 }
 0x630   :  { %5708 = vst [vmem:[%s12313_s4 + $0xf8] sm:$0xff] %v5684_v41 }
 0x631   :  { %5709 = vst [vmem:[%s12313_s4 + $0x108] sm:$0xff] %v5685_v1 }
 0x632   :  { %5710 = vst [vmem:[%s12313_s4 + $0x118] sm:$0xff] %v5686_v3 }
 0x633   :  { %5711 = vst [vmem:[%s12313_s4 + $0x128] sm:$0xff] %v5687_v34 }
 0x634   :  { %5712 = vst [vmem:[%s12313_s4 + $0x138] sm:$0xff] %v5688_v46 }
 0x635   :  { %5713 = vst [vmem:[%s12313_s4 + $0x148] sm:$0xff] %v5689_v15 }
 0x636   :  { %5714 = vst [vmem:[%s12313_s4 + $0x158] sm:$0xff] %v5690_v33 }
 0x637   :  { %5715 = vst [vmem:[%s12313_s4 + $0x168] sm:$0xff] %v5691_v24 }
 0x638   :  { %5716 = vst [vmem:[%s12313_s4 + $0x178] sm:$0xff] %v5692_v54 }

</bundles_post_ra>
